<compile_context>
chip_gen: v7x
topology: tpu7x:2x2x1
jax: 0.10.0
libtpu: 0.0.40
codegen_flags: <defaults>
</compile_context>

<pallas_src>
import functools

import jax
import jax.numpy as jnp
from jax.experimental import pallas as pl
from jax.experimental.pallas import tpu as pltpu

BN_EPS = 1e-5
LANE = 128


def _round_up(x, m):
    return (x + m - 1) // m * m


def _cdiv(a, b):
    return -(-a // b)


def _pad_last(a, target):
    pad = target - a.shape[-1]
    if pad == 0:
        return a
    cfg = [(0, 0)] * (a.ndim - 1) + [(0, pad)]
    return jnp.pad(a, cfg)


def _pick_tm(m, target=1024):
    """Row tile for the expand matmul: ~`target` rows, >=2 grid steps, multiple of 16."""
    m16 = _round_up(max(m, 1), 16)
    n_tiles = max(2, _cdiv(m16, target))
    tm = _round_up(_cdiv(m16, n_tiles), 16)
    return max(16, min(tm, m16))


def _vmem_limit(nbytes, headroom=1.3, floor=8 << 20, ceil=96 << 20):
    """Per-call VMEM budget from the actual block/scratch bytes with ~30% headroom."""
    return int(min(ceil, max(floor, nbytes * headroom)))


# ---------------------------------------------------------------------------
# Kernel 1: expand 1x1 conv + BN + ReLU6 + fused per-sample channel-sum (for the
#           Dynamic_conv2d attention pool).  feat is stored in bf16 (HBM traffic).
# ---------------------------------------------------------------------------
def _expand_pool_kernel(x_ref, w_ref, s_ref, b_ref, feat_ref, pool_ref, *,
                        m_valid, tm, need_mask):
    j = pl.program_id(1)
    # f32 matmul (f32 x f32 -> f32): stage is HBM-bound, and bf16xbf16 dots are not
    # supported by every executor.  Accumulation and BN/ReLU6 in f32.
    y = jnp.dot(x_ref[0], w_ref[...], preferred_element_type=jnp.float32)
    y = y * s_ref[...] + b_ref[...]
    y = jnp.clip(y, 0.0, 6.0)
    feat_ref[0] = y.astype(feat_ref.dtype)          # bf16 store (half the HBM bytes)

    # per-sample channel sums accumulated across the M (row-tile) axis; padded rows masked.
    if need_mask:
        row = j * tm + jax.lax.broadcasted_iota(jnp.int32, (tm, 1), 0)
        ysum = jnp.sum(jnp.where(row < m_valid, y, 0.0), axis=0, keepdims=True)
    else:
        ysum = jnp.sum(y, axis=0, keepdims=True)

    @pl.when(j == 0)
    def _init():
        pool_ref[0] = ysum

    @pl.when(j > 0)
    def _acc():
        pool_ref[0] = pool_ref[0] + ysum


def expand_conv_bn_relu6_pool(x4d, w, scale, bias, *, tm_target=1024):
    """x4d: (N, H, W, Cin_pad) f32; w: (Cin_pad, Hid_pad) f32.
    Returns feat (N, H, W, Hid_pad) bf16 and per-sample channel sums (N, Hid_pad) f32."""
    n, h, wdt, cin = x4d.shape
    hidp = w.shape[1]
    m = h * wdt
    tm = _pick_tm(m, tm_target)
    mt = _cdiv(m, tm)
    m_pad = mt * tm
    x3 = x4d.reshape(n, m, cin)
    if m_pad != m:
        x3 = jnp.pad(x3, ((0, 0), (0, m_pad - m), (0, 0)))

    nbytes = (2 * tm * cin * 4            # x blocks (double buffered)
              + cin * hidp * 4            # weight block (resident, constant index map)
              + 4 * hidp * 4              # folded BN scale/bias
              + 2 * tm * hidp * 2         # bf16 feat output blocks
              + 2 * hidp * 4              # pooled-sum accumulator blocks
              + 2 * tm * hidp * 4)        # f32 matmul/activation temporaries

    kern = functools.partial(_expand_pool_kernel, m_valid=m, tm=tm,
                             need_mask=(m_pad != m))
    feat, pool = pl.pallas_call(
        kern,
        out_shape=(jax.ShapeDtypeStruct((n, m_pad, hidp), jnp.bfloat16),
                   jax.ShapeDtypeStruct((n, 1, hidp), jnp.float32)),
        grid=(n, mt),
        in_specs=[
            pl.BlockSpec((1, tm, cin), lambda i, j: (i, j, 0)),
            pl.BlockSpec((cin, hidp), lambda i, j: (0, 0)),
            pl.BlockSpec((1, hidp), lambda i, j: (0, 0)),
            pl.BlockSpec((1, hidp), lambda i, j: (0, 0)),
        ],
        out_specs=(pl.BlockSpec((1, tm, hidp), lambda i, j: (i, j, 0)),
                   pl.BlockSpec((1, 1, hidp), lambda i, j: (i, 0, 0))),
        compiler_params=pltpu.CompilerParams(
            dimension_semantics=("parallel", "arbitrary"),
            vmem_limit_bytes=_vmem_limit(nbytes)),
    )(x3, w, scale.reshape(1, hidp), bias.reshape(1, hidp))

    feat = feat[:, :m, :] if m_pad != m else feat
    feat = feat.reshape(n, h, wdt, hidp)
    return feat, pool.reshape(n, hidp)


# ---------------------------------------------------------------------------
# Kernel 2: FUSED dynamic depthwise 3x3 + BN + ReLU6 + project 1x1 + BN (+ residual)
# ---------------------------------------------------------------------------
def _fused_dw_project_kernel(*refs, stride, dilation, pad, col0,
                             h_in, w_in, h_out, w_out, residual):
    if residual:
        (feat_ref, w_ref, s2_ref, b2_ref, wp_ref, s3_ref, b3_ref,
         res_ref, o_ref, xpad_ref) = refs
    else:
        (feat_ref, w_ref, s2_ref, b2_ref, wp_ref, s3_ref, b3_ref,
         o_ref, xpad_ref) = refs
        res_ref = None

    hp, wpad, c = xpad_ref.shape
    co = wp_ref.shape[1]

    # Halo-only zeroing: the interior is fully overwritten every grid step, so only the
    # top/bottom pad rows and left/right column bands get a zero store (no full-frame memset).
    xpad_ref[0:pad, :, :] = jnp.zeros((pad, wpad, c), jnp.float32)
    xpad_ref[pad + h_in:hp, :, :] = jnp.zeros((hp - pad - h_in, wpad, c), jnp.float32)
    xpad_ref[:, 0:col0, :] = jnp.zeros((hp, col0, c), jnp.float32)
    xpad_ref[:, col0 + w_in:wpad, :] = jnp.zeros((hp, wpad - col0 - w_in, c), jnp.float32)
    # Sublane-aligned interior store (col0 is a multiple of 8); feat arrives bf16 -> upcast.
    xpad_ref[pad:pad + h_in, col0:col0 + w_in, :] = feat_ref[0].astype(jnp.float32)

    wk = w_ref[0].astype(jnp.float32)        # (3, 3, C) — read the aggregated weights once
    colS = col0 - pad                        # scratch column of output column 0's tap origin
    h_span = stride * (h_out - 1) + 1
    w_span = stride * (w_out - 1) + 1

    if stride == 1:
        def rows_at(h0):
            return xpad_ref[h0:h0 + h_span]
    else:
        xp_full = xpad_ref[...]

        def rows_at(h0):
            return xp_full[h0:h0 + h_span:stride]

    acc = jnp.zeros((h_out, w_span, c), jnp.float32)
    for kh in range(3):                      # 3 row slices, hoisted out of the kw loop
        rows = rows_at(kh * dilation)        # (h_out, wpad, C)
        for kw in range(3):
            w0 = colS + kw * dilation
            acc = acc + rows[:, w0:w0 + w_span, :] * wk[kh:kh + 1, kw:kw + 1, :]
    if stride != 1:
        acc = acc[:, ::stride, :]            # single strided column subsample (not 9)

    # depthwise BN + ReLU6 in f32
    dw = jnp.clip(acc * s2_ref[...] + b2_ref[...], 0.0, 6.0)

    # fused 1x1 projection (f32 MXU, f32 accumulate) + BN (+ residual); the wide hidden
    # tensor never leaves VMEM.  Keep the merged row dim a multiple of 8 so the reshape
    # before the matmul stays layout-preserving.
    wv = _round_up(w_out, 8)
    if wv != w_out:
        dw = jnp.concatenate(
            [dw, jnp.zeros((h_out, wv - w_out, c), jnp.float32)], axis=1)
    y = jnp.dot(dw.reshape(h_out * wv, c), wp_ref[...],
                preferred_element_type=jnp.float32)
    y = y.reshape(h_out, wv, co)
    if wv != w_out:
        y = y[:, :w_out, :]
    y = y * s3_ref[...] + b3_ref[...]
    if residual:
        y = y + res_ref[0].astype(jnp.float32)
    o_ref[0] = y.astype(o_ref.dtype)


def fused_dynamic_dw_project(feat, agg_w, s2, b2, w_proj, s3, b3, *,
                             stride, dilation, residual=None):
    # TODO(synk): for v7x (64 MiB VMEM) at large spatial sizes, tile H into row strips with
    # a 2*dilation halo (grid=(N, strips)) instead of one full-frame block per sample, and
    # use a bf16 scratch / bf16 tap accumulation on v6e/v7x only.
    n, h_in, w_in, cp = feat.shape
    co = w_proj.shape[1]
    pad = dilation
    col0 = _round_up(max(pad, 1), 8)                 # 8-aligned interior column offset
    hp = h_in + 2 * pad
    wpad = _round_up(col0 + w_in + pad, 8)
    h_out = (h_in + 2 * pad - dilation * 2 - 1) // stride + 1
    w_out = (w_in + 2 * pad - dilation * 2 - 1) // stride + 1
    w_span = stride * (w_out - 1) + 1

    inputs = [feat, agg_w, s2.reshape(1, 1, cp), b2.reshape(1, 1, cp),
              w_proj, s3.reshape(1, 1, co), b3.reshape(1, 1, co)]
    in_specs = [
        pl.BlockSpec((1, h_in, w_in, cp), lambda i: (i, 0, 0, 0)),
        pl.BlockSpec((1, 3, 3, cp), lambda i: (i, 0, 0, 0)),
        pl.BlockSpec((1, 1, cp), lambda i: (0, 0, 0)),
        pl.BlockSpec((1, 1, cp), lambda i: (0, 0, 0)),
        pl.BlockSpec((cp, co), lambda i: (0, 0)),     # projection weights: resident block
        pl.BlockSpec((1, 1, co), lambda i: (0, 0, 0)),
        pl.BlockSpec((1, 1, co), lambda i: (0, 0, 0)),
    ]
    if residual is not None:
        inputs.append(residual)
        in_specs.append(pl.BlockSpec((1, h_out, w_out, co), lambda i: (i, 0, 0, 0)))

    fbytes = feat.dtype.itemsize
    nbytes = (2 * h_in * w_in * cp * fbytes          # feat blocks (double buffered, bf16)
              + 2 * 9 * cp * 4                       # per-sample aggregated 3x3 weights
              + cp * co * 4 + 2 * (cp + co) * 4      # proj weights + folded BN vectors
              + 2 * h_out * w_out * co * 4           # output blocks
              + (2 * h_out * w_out * co * 4 if residual is not None else 0)
              + hp * wpad * cp * 4                   # zero-padded frame scratch
              + 2 * h_out * w_span * cp * 4          # acc / dw temporaries
              + h_out * w_out * co * 4)              # projection result

    kern = functools.partial(
        _fused_dw_project_kernel, stride=stride, dilation=dilation, pad=pad,
        col0=col0, h_in=h_in, w_in=w_in, h_out=h_out, w_out=w_out,
        residual=residual is not None)
    return pl.pallas_call(
        kern,
        out_shape=jax.ShapeDtypeStruct((n, h_out, w_out, co), jnp.float32),
        grid=(n,),
        in_specs=in_specs,
        out_specs=pl.BlockSpec((1, h_out, w_out, co), lambda i: (i, 0, 0, 0)),
        scratch_shapes=[pltpu.VMEM((hp, wpad, cp), jnp.float32)],
        compiler_params=pltpu.CompilerParams(
            dimension_semantics=("parallel",),
            vmem_limit_bytes=_vmem_limit(nbytes)),
    )(*inputs)


# ---------------------------------------------------------------------------
# Parameters (deterministic init) and forward wrapper
# ---------------------------------------------------------------------------
def _fold_bn(gamma, beta, mean, var, eps=BN_EPS):
    scale = gamma / jnp.sqrt(var + eps)
    bias = beta - mean * scale
    return scale, bias


def init_params(key, inp, oup, expand_ratio, K=8, ratio=0.25, temperature=34.0):
    hidden = int(round(inp * expand_ratio))
    hidden_planes = int(hidden * ratio) + 1        # attention2d hidden (in_planes != 3)
    keys = jax.random.split(key, 7)

    def nrm(k, shape, s=0.3):
        return s * jax.random.normal(k, shape, jnp.float32)

    p = {}
    p['w_expand'] = nrm(keys[0], (inp, hidden))                 # 1x1 expand conv (Cin, hid)
    p['dw_weight'] = nrm(keys[1], (K, hidden, 1, 3, 3))         # Dynamic_conv2d bank
    p['att_fc1_w'] = nrm(keys[2], (hidden, hidden_planes))      # attention fc1 (no bias)
    p['att_fc2_w'] = nrm(keys[3], (hidden_planes, K))           # attention fc2
    p['att_fc2_b'] = nrm(keys[4], (K,), 0.1)
    p['w_project'] = nrm(keys[5], (hidden, oup))                # 1x1 project conv

    def bn(k, c):
        kg, kb, km, kv = jax.random.split(k, 4)
        gamma = 1.0 + 0.1 * jax.random.normal(kg, (c,), jnp.float32)
        beta = 0.1 * jax.random.normal(kb, (c,), jnp.float32)
        mean = 0.1 * jax.random.normal(km, (c,), jnp.float32)
        var = 1.0 + 0.1 * jnp.abs(jax.random.normal(kv, (c,), jnp.float32))
        return _fold_bn(gamma, beta, mean, var)

    kbn = jax.random.split(keys[6], 3)
    p['bn1_scale'], p['bn1_bias'] = bn(kbn[0], hidden)
    p['bn2_scale'], p['bn2_bias'] = bn(kbn[1], hidden)
    p['bn3_scale'], p['bn3_bias'] = bn(kbn[2], oup)
    p['temperature'] = temperature
    return p


def inverted_residual_forward(x_nchw, params, *, stride, dilation, expand_ratio):
    n, cin, hh, ww = x_nchw.shape
    oup = params['w_project'].shape[1]
    cinp = _round_up(cin, LANE)
    oupp = _round_up(oup, LANE)

    # NCHW -> NHWC and lane-dense channel padding (boundary layout plumbing).
    x = jnp.transpose(x_nchw, (0, 2, 3, 1)).astype(jnp.float32)
    x_pad = _pad_last(x, cinp)

    # 1) expand 1x1 conv + BN + ReLU6 + fused channel-sum pool — skipped when expand_ratio==1
    if expand_ratio != 1:
        hid = params['w_expand'].shape[1]
        hidp = _round_up(hid, LANE)
        w_e = jnp.zeros((cinp, hidp), jnp.float32).at[:cin, :hid].set(params['w_expand'])
        s1 = _pad_last(params['bn1_scale'], hidp)
        b1 = _pad_last(params['bn1_bias'], hidp)
        feat, pool_sums = expand_conv_bn_relu6_pool(x_pad, w_e, s1, b1)
        pooled = pool_sums[:, :hid] / float(hh * ww)
    else:
        hid = cin
        hidp = cinp
        feat = x_pad
        pooled = jnp.mean(x_pad[..., :hid], axis=(1, 2))

    # 2) Dynamic_conv2d attention + kernel aggregation (tiny per-sample scalars: JAX glue)
    a = jnp.maximum(pooled @ params['att_fc1_w'], 0.0)
    logits = a @ params['att_fc2_w'] + params['att_fc2_b']
    attn = jax.nn.softmax(logits / params['temperature'], axis=-1)    # (N, K)
    kk = attn.shape[1]
    agg = (attn @ params['dw_weight'].reshape(kk, -1)).reshape(n, hid, 3, 3)
    agg = _pad_last(jnp.transpose(agg, (0, 2, 3, 1)), hidp)           # (N, 3, 3, hidp)

    s2 = _pad_last(params['bn2_scale'], hidp)
    b2 = _pad_last(params['bn2_bias'], hidp)
    w_p = jnp.zeros((hidp, oupp), jnp.float32).at[:hid, :oup].set(params['w_project'])
    s3 = _pad_last(params['bn3_scale'], oupp)
    b3 = _pad_last(params['bn3_bias'], oupp)

    identity = (stride == 1 and cin == oup)
    res = x_pad if identity else None                                 # cinp == oupp here

    # 3+4) fused depthwise 3x3 + BN + ReLU6 + project 1x1 + BN (+ residual)
    out = fused_dynamic_dw_project(feat, agg, s2, b2, w_p, s3, b3,
                                   stride=stride, dilation=dilation, residual=res)
    out = out[..., :oup]
    return jnp.transpose(out, (0, 3, 1, 2))                           # back to NCHW


# ---------------------------------------------------------------------------
# Pure-JAX reference (mirrors the PyTorch forward; the only rounding it mirrors
# from the kernel path is the bf16 storage of the expanded hidden tensor)
# ---------------------------------------------------------------------------
def reference_forward(x, p, *, stride, dilation, expand_ratio):
    n, cin, hh, ww = x.shape
    x = x.astype(jnp.float32)

    def bn(t, s, b):
        return t * s[None, :, None, None] + b[None, :, None, None]

    if expand_ratio != 1:
        h = jnp.einsum('nchw,co->nohw', x, p['w_expand'])
        h = jnp.clip(bn(h, p['bn1_scale'], p['bn1_bias']), 0.0, 6.0)
        pooled = jnp.mean(h, axis=(2, 3))                 # pool over f32 (pre-storage) values
        h = h.astype(jnp.bfloat16).astype(jnp.float32)    # kernel stores feat in bf16
    else:
        h = x
        pooled = jnp.mean(h, axis=(2, 3))
    hid = h.shape[1]
    a = jnp.maximum(pooled @ p['att_fc1_w'], 0.0)
    attn = jax.nn.softmax((a @ p['att_fc2_w'] + p['att_fc2_b']) / p['temperature'], axis=-1)
    kk = attn.shape[1]
    agg = (attn @ p['dw_weight'].reshape(kk, -1)).reshape(n, hid, 1, 3, 3)
    outs = []
    for i in range(n):
        outs.append(jax.lax.conv_general_dilated(
            h[i:i + 1], agg[i], window_strides=(stride, stride),
            padding=[(dilation, dilation), (dilation, dilation)],
            rhs_dilation=(dilation, dilation), feature_group_count=hid,
            dimension_numbers=('NCHW', 'OIHW', 'NCHW')))
    d = jnp.concatenate(outs, axis=0)
    d = jnp.clip(bn(d, p['bn2_scale'], p['bn2_bias']), 0.0, 6.0)
    o = jnp.einsum('nchw,co->nohw', d, p['w_project'])
    o = bn(o, p['bn3_scale'], p['bn3_bias'])
    if stride == 1 and cin == o.shape[1]:
        o = o + x
    return o


if __name__ == "__main__":
    key = jax.random.PRNGKey(0)
    kx, kp = jax.random.split(key)

    N, INP, OUP, H, W = 2, 4, 4, 16, 16
    STRIDE, DILATION, EXPAND = 1, 1, 2       # identity branch (stride=1, inp==oup)

    x = jax.random.normal(kx, (N, INP, H, W), jnp.float32)
    params = init_params(kp, INP, OUP, EXPAND)

    fwd = jax.jit(functools.partial(inverted_residual_forward, stride=STRIDE,
                                    dilation=DILATION, expand_ratio=EXPAND))
    out = jax.block_until_ready(fwd(x, params))

    ref = reference_forward(x, params, stride=STRIDE, dilation=DILATION,
                            expand_ratio=EXPAND)
    assert out.shape == (N, OUP, H, W)
    err = float(jnp.max(jnp.abs(out - ref)))
    assert err < 5e-3, f"max abs err {err}"
    print("KERNEL_OK")
</pallas_src>

<mosaic_0001>
module attributes {stable_mosaic.version = 11 : i64} {
  func.func @_expand_pool_kernel(%arg0: i32, %arg1: i32, %arg2: memref<1x128x128xf32, #tpu.memory_space<vmem>>, %arg3: memref<128x128xf32, #tpu.memory_space<vmem>>, %arg4: memref<1x128xf32, #tpu.memory_space<vmem>>, %arg5: memref<1x128xf32, #tpu.memory_space<vmem>>, %arg6: memref<1x128x128xbf16, #tpu.memory_space<vmem>>, %arg7: memref<1x1x128xf32, #tpu.memory_space<vmem>>) attributes {dimension_semantics = [#tpu.dimension_semantics<parallel>, #tpu.dimension_semantics<arbitrary>], iteration_bounds = array<i64: 2, 2>, scalar_prefetch = 0 : i64, scratch_operands = 0 : i64, tpu.core_type = #tpu.core_type<tc>, window_params = [{transform_indices = @transform_0, window_bounds = array<i64: 1, 128, 128>}, {pipeline_mode = #tpu.pipeline_mode<synchronous>, transform_indices = @transform_1, window_bounds = array<i64: 128, 128>}, {pipeline_mode = #tpu.pipeline_mode<synchronous>, transform_indices = @transform_2, window_bounds = array<i64: 1, 128>}, {pipeline_mode = #tpu.pipeline_mode<synchronous>, transform_indices = @transform_3, window_bounds = array<i64: 1, 128>}, {transform_indices = @transform_4, window_bounds = array<i64: 1, 128, 128>}, {transform_indices = @transform_5, window_bounds = array<i64: 1, 1, 128>}]} {
    %c0 = arith.constant 0 : index
    %c0_0 = arith.constant 0 : index
    %c0_1 = arith.constant 0 : index
    %0 = vector.load %arg2[%c0, %c0_0, %c0_1] : memref<1x128x128xf32, #tpu.memory_space<vmem>>, vector<1x128x128xf32>
    %1 = vector.shape_cast %0 : vector<1x128x128xf32> to vector<128x128xf32>
    %c0_2 = arith.constant 0 : index
    %c0_3 = arith.constant 0 : index
    %2 = vector.load %arg3[%c0_2, %c0_3] : memref<128x128xf32, #tpu.memory_space<vmem>>, vector<128x128xf32>
    %cst = arith.constant dense<0.000000e+00> : vector<128x128xf32>
    %3 = tpu.matmul %1, %2, %cst {dimension_numbers = #tpu.dot_dimension_numbers<[1], [0], [0], [1], [0, 0, 1, 1], [], []>} : vector<128x128xf32>, vector<128x128xf32>, vector<128x128xf32> -> vector<128x128xf32>
    %c0_4 = arith.constant 0 : index
    %c0_5 = arith.constant 0 : index
    %4 = vector.load %arg4[%c0_4, %c0_5] : memref<1x128xf32, #tpu.memory_space<vmem>>, vector<1x128xf32>
    %5 = vector.broadcast %4 : vector<1x128xf32> to vector<128x128xf32>
    %6 = arith.mulf %3, %5 : vector<128x128xf32>
    %c0_6 = arith.constant 0 : index
    %c0_7 = arith.constant 0 : index
    %7 = vector.load %arg5[%c0_6, %c0_7] : memref<1x128xf32, #tpu.memory_space<vmem>>, vector<1x128xf32>
    %8 = vector.broadcast %7 : vector<1x128xf32> to vector<128x128xf32>
    %9 = arith.addf %6, %8 : vector<128x128xf32>
    %cst_8 = arith.constant 0.000000e+00 : f32
    %cst_9 = arith.constant 6.000000e+00 : f32
    %10 = vector.broadcast %cst_8 : f32 to vector<128x128xf32>
    %11 = arith.maximumf %10, %9 : vector<128x128xf32>
    %12 = vector.broadcast %cst_9 : f32 to vector<128x128xf32>
    %13 = arith.minimumf %12, %11 : vector<128x128xf32>
    %14 = arith.truncf %13 : vector<128x128xf32> to vector<128x128xbf16>
    %c0_10 = arith.constant 0 : index
    %c0_11 = arith.constant 0 : index
    %c0_12 = arith.constant 0 : index
    %15 = vector.load %arg6[%c0_10, %c0_11, %c0_12] : memref<1x128x128xbf16, #tpu.memory_space<vmem>>, vector<1x128x128xbf16>
    %16 = vector.shape_cast %15 : vector<1x128x128xbf16> to vector<128x128xbf16>
    %17 = vector.shape_cast %14 : vector<128x128xbf16> to vector<1x128x128xbf16>
    tpu.vector_store %arg6[%c0_10, %c0_11, %c0_12], %17 {strides = array<i32>} : memref<1x128x128xbf16, #tpu.memory_space<vmem>>, vector<1x128x128xbf16>,
    %cst_13 = arith.constant dense<0.000000e+00> : vector<128xf32>
    %18 = vector.multi_reduction <add>, %13, %cst_13 [0] : vector<128x128xf32> to vector<128xf32>
    %19 = vector.shape_cast %18 : vector<128xf32> to vector<1x128xf32>
    %c0_i32 = arith.constant 0 : i32
    %20 = arith.cmpi eq, %arg1, %c0_i32 : i32
    %21 = arith.extui %20 : i1 to i32
    %c0_i32_14 = arith.constant 0 : i32
    %22 = arith.cmpi ne, %21, %c0_i32_14 : i32
    scf.if %22 {
      %c0_17 = arith.constant 0 : index
      %c0_18 = arith.constant 0 : index
      %c0_19 = arith.constant 0 : index
      %26 = vector.load %arg7[%c0_17, %c0_18, %c0_19] : memref<1x1x128xf32, #tpu.memory_space<vmem>>, vector<1x1x128xf32>
      %27 = vector.shape_cast %26 : vector<1x1x128xf32> to vector<1x128xf32>
      %28 = vector.shape_cast %19 : vector<1x128xf32> to vector<1x1x128xf32>
      tpu.vector_store %arg7[%c0_17, %c0_18, %c0_19], %28 {strides = array<i32>} : memref<1x1x128xf32, #tpu.memory_space<vmem>>, vector<1x1x128xf32>,
    } else {
    }
    %c0_i32_15 = arith.constant 0 : i32
    %23 = arith.cmpi sgt, %arg1, %c0_i32_15 : i32
    %24 = arith.extui %23 : i1 to i32
    %c0_i32_16 = arith.constant 0 : i32
    %25 = arith.cmpi ne, %24, %c0_i32_16 : i32
    scf.if %25 {
      %c0_17 = arith.constant 0 : index
      %c0_18 = arith.constant 0 : index
      %c0_19 = arith.constant 0 : index
      %26 = vector.load %arg7[%c0_17, %c0_18, %c0_19] : memref<1x1x128xf32, #tpu.memory_space<vmem>>, vector<1x1x128xf32>
      %27 = vector.shape_cast %26 : vector<1x1x128xf32> to vector<1x128xf32>
      %28 = arith.addf %27, %19 : vector<1x128xf32>
      %c0_20 = arith.constant 0 : index
      %c0_21 = arith.constant 0 : index
      %c0_22 = arith.constant 0 : index
      %29 = vector.load %arg7[%c0_20, %c0_21, %c0_22] : memref<1x1x128xf32, #tpu.memory_space<vmem>>, vector<1x1x128xf32>
      %30 = vector.shape_cast %29 : vector<1x1x128xf32> to vector<1x128xf32>
      %31 = vector.shape_cast %28 : vector<1x128xf32> to vector<1x1x128xf32>
      tpu.vector_store %arg7[%c0_20, %c0_21, %c0_22], %31 {strides = array<i32>} : memref<1x1x128xf32, #tpu.memory_space<vmem>>, vector<1x1x128xf32>,
    } else {
    }
    return
  }
  func.func @transform_0(%arg0: i32, %arg1: i32) -> (i32, i32, i32) {
    %c0_i32 = arith.constant 0 : i32
    %c0_i32_0 = arith.constant 0 : i32
    return %arg0, %arg1, %c0_i32 : i32, i32, i32
  }
  func.func @transform_1(%arg0: i32, %arg1: i32) -> (i32, i32) {
    %c0_i32 = arith.constant 0 : i32
    %c0_i32_0 = arith.constant 0 : i32
    %c0_i32_1 = arith.constant 0 : i32
    return %c0_i32, %c0_i32_0 : i32, i32
  }
  func.func @transform_2(%arg0: i32, %arg1: i32) -> (i32, i32) {
    %c0_i32 = arith.constant 0 : i32
    %c0_i32_0 = arith.constant 0 : i32
    %c0_i32_1 = arith.constant 0 : i32
    return %c0_i32, %c0_i32_0 : i32, i32
  }
  func.func @transform_3(%arg0: i32, %arg1: i32) -> (i32, i32) {
    %c0_i32 = arith.constant 0 : i32
    %c0_i32_0 = arith.constant 0 : i32
    %c0_i32_1 = arith.constant 0 : i32
    return %c0_i32, %c0_i32_0 : i32, i32
  }
  func.func @transform_4(%arg0: i32, %arg1: i32) -> (i32, i32, i32) {
    %c0_i32 = arith.constant 0 : i32
    %c0_i32_0 = arith.constant 0 : i32
    return %arg0, %arg1, %c0_i32 : i32, i32, i32
  }
  func.func @transform_5(%arg0: i32, %arg1: i32) -> (i32, i32, i32) {
    %c0_i32 = arith.constant 0 : i32
    %c0_i32_0 = arith.constant 0 : i32
    %c0_i32_1 = arith.constant 0 : i32
    return %arg0, %c0_i32, %c0_i32_0 : i32, i32, i32
  }
}

module attributes {stable_mosaic.version = 11 : i64} {
  func.func @_fused_dw_project_kernel(%arg0: i32, %arg1: memref<1x16x16x128xbf16, #tpu.memory_space<vmem>>, %arg2: memref<1x3x3x128xf32, #tpu.memory_space<vmem>>, %arg3: memref<1x1x128xf32, #tpu.memory_space<vmem>>, %arg4: memref<1x1x128xf32, #tpu.memory_space<vmem>>, %arg5: memref<128x128xf32, #tpu.memory_space<vmem>>, %arg6: memref<1x1x128xf32, #tpu.memory_space<vmem>>, %arg7: memref<1x1x128xf32, #tpu.memory_space<vmem>>, %arg8: memref<1x16x16x128xf32, #tpu.memory_space<vmem>>, %arg9: memref<1x16x16x128xf32, #tpu.memory_space<vmem>>, %arg10: memref<18x32x128xf32, #tpu.memory_space<vmem>>) attributes {dimension_semantics = [#tpu.dimension_semantics<parallel>], iteration_bounds = array<i64: 2>, scalar_prefetch = 0 : i64, scratch_operands = 1 : i64, tpu.core_type = #tpu.core_type<tc>, window_params = [{transform_indices = @transform_0, window_bounds = array<i64: 1, 16, 16, 128>}, {transform_indices = @transform_1, window_bounds = array<i64: 1, 3, 3, 128>}, {pipeline_mode = #tpu.pipeline_mode<synchronous>, transform_indices = @transform_2, window_bounds = array<i64: 1, 1, 128>}, {pipeline_mode = #tpu.pipeline_mode<synchronous>, transform_indices = @transform_3, window_bounds = array<i64: 1, 1, 128>}, {pipeline_mode = #tpu.pipeline_mode<synchronous>, transform_indices = @transform_4, window_bounds = array<i64: 128, 128>}, {pipeline_mode = #tpu.pipeline_mode<synchronous>, transform_indices = @transform_5, window_bounds = array<i64: 1, 1, 128>}, {pipeline_mode = #tpu.pipeline_mode<synchronous>, transform_indices = @transform_6, window_bounds = array<i64: 1, 1, 128>}, {transform_indices = @transform_7, window_bounds = array<i64: 1, 16, 16, 128>}, {transform_indices = @transform_8, window_bounds = array<i64: 1, 16, 16, 128>}]} {
    %cst = arith.constant 0.000000e+00 : f32
    %0 = vector.broadcast %cst : f32 to vector<1x32x128xf32>
    %c0 = arith.constant 0 : index
    %c0_0 = arith.constant 0 : index
    %c0_1 = arith.constant 0 : index
    %1 = vector.load %arg10[%c0, %c0_0, %c0_1] : memref<18x32x128xf32, #tpu.memory_space<vmem>>, vector<1x32x128xf32>
    tpu.vector_store %arg10[%c0, %c0_0, %c0_1], %0 {strides = array<i32>} : memref<18x32x128xf32, #tpu.memory_space<vmem>>, vector<1x32x128xf32>,
    %cst_2 = arith.constant 0.000000e+00 : f32
    %2 = vector.broadcast %cst_2 : f32 to vector<1x32x128xf32>
    %c17 = arith.constant 17 : index
    %c0_3 = arith.constant 0 : index
    %c0_4 = arith.constant 0 : index
    %3 = vector.load %arg10[%c17, %c0_3, %c0_4] : memref<18x32x128xf32, #tpu.memory_space<vmem>>, vector<1x32x128xf32>
    tpu.vector_store %arg10[%c17, %c0_3, %c0_4], %2 {strides = array<i32>} : memref<18x32x128xf32, #tpu.memory_space<vmem>>, vector<1x32x128xf32>,
    %cst_5 = arith.constant 0.000000e+00 : f32
    %4 = vector.broadcast %cst_5 : f32 to vector<18x8x128xf32>
    %c0_6 = arith.constant 0 : index
    %c0_7 = arith.constant 0 : index
    %c0_8 = arith.constant 0 : index
    %5 = vector.load %arg10[%c0_6, %c0_7, %c0_8] : memref<18x32x128xf32, #tpu.memory_space<vmem>>, vector<18x8x128xf32>
    tpu.vector_store %arg10[%c0_6, %c0_7, %c0_8], %4 {strides = array<i32>} : memref<18x32x128xf32, #tpu.memory_space<vmem>>, vector<18x8x128xf32>,
    %cst_9 = arith.constant 0.000000e+00 : f32
    %6 = vector.broadcast %cst_9 : f32 to vector<18x8x128xf32>
    %c0_10 = arith.constant 0 : index
    %c24 = arith.constant 24 : index
    %c0_11 = arith.constant 0 : index
    %7 = vector.load %arg10[%c0_10, %c24, %c0_11] : memref<18x32x128xf32, #tpu.memory_space<vmem>>, vector<18x8x128xf32>
    tpu.vector_store %arg10[%c0_10, %c24, %c0_11], %6 {strides = array<i32>} : memref<18x32x128xf32, #tpu.memory_space<vmem>>, vector<18x8x128xf32>,
    %c0_12 = arith.constant 0 : index
    %c0_13 = arith.constant 0 : index
    %c0_14 = arith.constant 0 : index
    %c0_15 = arith.constant 0 : index
    %8 = vector.load %arg1[%c0_12, %c0_13, %c0_14, %c0_15] : memref<1x16x16x128xbf16, #tpu.memory_space<vmem>>, vector<1x16x16x128xbf16>
    %9 = vector.shape_cast %8 : vector<1x16x16x128xbf16> to vector<16x16x128xbf16>
    %10 = arith.extf %9 : vector<16x16x128xbf16> to vector<16x16x128xf32>
    %c1 = arith.constant 1 : index
    %c8 = arith.constant 8 : index
    %c0_16 = arith.constant 0 : index
    %11 = vector.load %arg10[%c1, %c8, %c0_16] : memref<18x32x128xf32, #tpu.memory_space<vmem>>, vector<16x16x128xf32>
    tpu.vector_store %arg10[%c1, %c8, %c0_16], %10 {strides = array<i32>} : memref<18x32x128xf32, #tpu.memory_space<vmem>>, vector<16x16x128xf32>,
    %c0_17 = arith.constant 0 : index
    %c0_18 = arith.constant 0 : index
    %c0_19 = arith.constant 0 : index
    %c0_20 = arith.constant 0 : index
    %12 = vector.load %arg2[%c0_17, %c0_18, %c0_19, %c0_20] : memref<1x3x3x128xf32, #tpu.memory_space<vmem>>, vector<1x3x3x128xf32>
    %13 = vector.shape_cast %12 : vector<1x3x3x128xf32> to vector<3x3x128xf32>
    %cst_21 = arith.constant 0.000000e+00 : f32
    %14 = vector.broadcast %cst_21 : f32 to vector<16x16x128xf32>
    %c0_22 = arith.constant 0 : index
    %c0_23 = arith.constant 0 : index
    %c0_24 = arith.constant 0 : index
    %15 = vector.load %arg10[%c0_22, %c0_23, %c0_24] : memref<18x32x128xf32, #tpu.memory_space<vmem>>, vector<16x32x128xf32>
    %16 = vector.extract_strided_slice %15 {offsets = [0, 7, 0], sizes = [16, 16, 128], strides = [1, 1, 1]} : vector<16x32x128xf32> to vector<16x16x128xf32>
    %17 = vector.extract_strided_slice %13 {offsets = [0, 0, 0], sizes = [1, 1, 128], strides = [1, 1, 1]} : vector<3x3x128xf32> to vector<1x1x128xf32>
    %18 = vector.broadcast %17 : vector<1x1x128xf32> to vector<16x16x128xf32>
    %19 = arith.mulf %16, %18 : vector<16x16x128xf32>
    %20 = arith.addf %14, %19 : vector<16x16x128xf32>
    %21 = vector.extract_strided_slice %15 {offsets = [0, 8, 0], sizes = [16, 16, 128], strides = [1, 1, 1]} : vector<16x32x128xf32> to vector<16x16x128xf32>
    %22 = vector.extract_strided_slice %13 {offsets = [0, 1, 0], sizes = [1, 1, 128], strides = [1, 1, 1]} : vector<3x3x128xf32> to vector<1x1x128xf32>
    %23 = vector.broadcast %22 : vector<1x1x128xf32> to vector<16x16x128xf32>
    %24 = arith.mulf %21, %23 : vector<16x16x128xf32>
    %25 = arith.addf %20, %24 : vector<16x16x128xf32>
    %26 = vector.extract_strided_slice %15 {offsets = [0, 9, 0], sizes = [16, 16, 128], strides = [1, 1, 1]} : vector<16x32x128xf32> to vector<16x16x128xf32>
    %27 = vector.extract_strided_slice %13 {offsets = [0, 2, 0], sizes = [1, 1, 128], strides = [1, 1, 1]} : vector<3x3x128xf32> to vector<1x1x128xf32>
    %28 = vector.broadcast %27 : vector<1x1x128xf32> to vector<16x16x128xf32>
    %29 = arith.mulf %26, %28 : vector<16x16x128xf32>
    %30 = arith.addf %25, %29 : vector<16x16x128xf32>
    %c1_25 = arith.constant 1 : index
    %c0_26 = arith.constant 0 : index
    %c0_27 = arith.constant 0 : index
    %31 = vector.load %arg10[%c1_25, %c0_26, %c0_27] : memref<18x32x128xf32, #tpu.memory_space<vmem>>, vector<16x32x128xf32>
    %32 = vector.extract_strided_slice %31 {offsets = [0, 7, 0], sizes = [16, 16, 128], strides = [1, 1, 1]} : vector<16x32x128xf32> to vector<16x16x128xf32>
    %33 = vector.extract_strided_slice %13 {offsets = [1, 0, 0], sizes = [1, 1, 128], strides = [1, 1, 1]} : vector<3x3x128xf32> to vector<1x1x128xf32>
    %34 = vector.broadcast %33 : vector<1x1x128xf32> to vector<16x16x128xf32>
    %35 = arith.mulf %32, %34 : vector<16x16x128xf32>
    %36 = arith.addf %30, %35 : vector<16x16x128xf32>
    %37 = vector.extract_strided_slice %31 {offsets = [0, 8, 0], sizes = [16, 16, 128], strides = [1, 1, 1]} : vector<16x32x128xf32> to vector<16x16x128xf32>
    %38 = vector.extract_strided_slice %13 {offsets = [1, 1, 0], sizes = [1, 1, 128], strides = [1, 1, 1]} : vector<3x3x128xf32> to vector<1x1x128xf32>
    %39 = vector.broadcast %38 : vector<1x1x128xf32> to vector<16x16x128xf32>
    %40 = arith.mulf %37, %39 : vector<16x16x128xf32>
    %41 = arith.addf %36, %40 : vector<16x16x128xf32>
    %42 = vector.extract_strided_slice %31 {offsets = [0, 9, 0], sizes = [16, 16, 128], strides = [1, 1, 1]} : vector<16x32x128xf32> to vector<16x16x128xf32>
    %43 = vector.extract_strided_slice %13 {offsets = [1, 2, 0], sizes = [1, 1, 128], strides = [1, 1, 1]} : vector<3x3x128xf32> to vector<1x1x128xf32>
    %44 = vector.broadcast %43 : vector<1x1x128xf32> to vector<16x16x128xf32>
    %45 = arith.mulf %42, %44 : vector<16x16x128xf32>
    %46 = arith.addf %41, %45 : vector<16x16x128xf32>
    %c2 = arith.constant 2 : index
    %c0_28 = arith.constant 0 : index
    %c0_29 = arith.constant 0 : index
    %47 = vector.load %arg10[%c2, %c0_28, %c0_29] : memref<18x32x128xf32, #tpu.memory_space<vmem>>, vector<16x32x128xf32>
    %48 = vector.extract_strided_slice %47 {offsets = [0, 7, 0], sizes = [16, 16, 128], strides = [1, 1, 1]} : vector<16x32x128xf32> to vector<16x16x128xf32>
    %49 = vector.extract_strided_slice %13 {offsets = [2, 0, 0], sizes = [1, 1, 128], strides = [1, 1, 1]} : vector<3x3x128xf32> to vector<1x1x128xf32>
    %50 = vector.broadcast %49 : vector<1x1x128xf32> to vector<16x16x128xf32>
    %51 = arith.mulf %48, %50 : vector<16x16x128xf32>
    %52 = arith.addf %46, %51 : vector<16x16x128xf32>
    %53 = vector.extract_strided_slice %47 {offsets = [0, 8, 0], sizes = [16, 16, 128], strides = [1, 1, 1]} : vector<16x32x128xf32> to vector<16x16x128xf32>
    %54 = vector.extract_strided_slice %13 {offsets = [2, 1, 0], sizes = [1, 1, 128], strides = [1, 1, 1]} : vector<3x3x128xf32> to vector<1x1x128xf32>
    %55 = vector.broadcast %54 : vector<1x1x128xf32> to vector<16x16x128xf32>
    %56 = arith.mulf %53, %55 : vector<16x16x128xf32>
    %57 = arith.addf %52, %56 : vector<16x16x128xf32>
    %58 = vector.extract_strided_slice %47 {offsets = [0, 9, 0], sizes = [16, 16, 128], strides = [1, 1, 1]} : vector<16x32x128xf32> to vector<16x16x128xf32>
    %59 = vector.extract_strided_slice %13 {offsets = [2, 2, 0], sizes = [1, 1, 128], strides = [1, 1, 1]} : vector<3x3x128xf32> to vector<1x1x128xf32>
    %60 = vector.broadcast %59 : vector<1x1x128xf32> to vector<16x16x128xf32>
    %61 = arith.mulf %58, %60 : vector<16x16x128xf32>
    %62 = arith.addf %57, %61 : vector<16x16x128xf32>
    %c0_30 = arith.constant 0 : index
    %c0_31 = arith.constant 0 : index
    %c0_32 = arith.constant 0 : index
    %63 = vector.load %arg3[%c0_30, %c0_31, %c0_32] : memref<1x1x128xf32, #tpu.memory_space<vmem>>, vector<1x1x128xf32>
    %64 = vector.broadcast %63 : vector<1x1x128xf32> to vector<16x16x128xf32>
    %65 = arith.mulf %62, %64 : vector<16x16x128xf32>
    %c0_33 = arith.constant 0 : index
    %c0_34 = arith.constant 0 : index
    %c0_35 = arith.constant 0 : index
    %66 = vector.load %arg4[%c0_33, %c0_34, %c0_35] : memref<1x1x128xf32, #tpu.memory_space<vmem>>, vector<1x1x128xf32>
    %67 = vector.broadcast %66 : vector<1x1x128xf32> to vector<16x16x128xf32>
    %68 = arith.addf %65, %67 : vector<16x16x128xf32>
    %cst_36 = arith.constant 0.000000e+00 : f32
    %cst_37 = arith.constant 6.000000e+00 : f32
    %69 = vector.broadcast %cst_36 : f32 to vector<16x16x128xf32>
    %70 = arith.maximumf %69, %68 : vector<16x16x128xf32>
    %71 = vector.broadcast %cst_37 : f32 to vector<16x16x128xf32>
    %72 = arith.minimumf %71, %70 : vector<16x16x128xf32>
    %73 = vector.shape_cast %72 : vector<16x16x128xf32> to vector<256x128xf32>
    %c0_38 = arith.constant 0 : index
    %c0_39 = arith.constant 0 : index
    %74 = vector.load %arg5[%c0_38, %c0_39] : memref<128x128xf32, #tpu.memory_space<vmem>>, vector<128x128xf32>
    %cst_40 = arith.constant dense<0.000000e+00> : vector<256x128xf32>
    %75 = tpu.matmul %73, %74, %cst_40 {dimension_numbers = #tpu.dot_dimension_numbers<[1], [0], [0], [1], [0, 0, 1, 1], [], []>} : vector<256x128xf32>, vector<128x128xf32>, vector<256x128xf32> -> vector<256x128xf32>
    %76 = vector.shape_cast %75 : vector<256x128xf32> to vector<16x16x128xf32>
    %c0_41 = arith.constant 0 : index
    %c0_42 = arith.constant 0 : index
    %c0_43 = arith.constant 0 : index
    %77 = vector.load %arg6[%c0_41, %c0_42, %c0_43] : memref<1x1x128xf32, #tpu.memory_space<vmem>>, vector<1x1x128xf32>
    %78 = vector.broadcast %77 : vector<1x1x128xf32> to vector<16x16x128xf32>
    %79 = arith.mulf %76, %78 : vector<16x16x128xf32>
    %c0_44 = arith.constant 0 : index
    %c0_45 = arith.constant 0 : index
    %c0_46 = arith.constant 0 : index
    %80 = vector.load %arg7[%c0_44, %c0_45, %c0_46] : memref<1x1x128xf32, #tpu.memory_space<vmem>>, vector<1x1x128xf32>
    %81 = vector.broadcast %80 : vector<1x1x128xf32> to vector<16x16x128xf32>
    %82 = arith.addf %79, %81 : vector<16x16x128xf32>
    %c0_47 = arith.constant 0 : index
    %c0_48 = arith.constant 0 : index
    %c0_49 = arith.constant 0 : index
    %c0_50 = arith.constant 0 : index
    %83 = vector.load %arg8[%c0_47, %c0_48, %c0_49, %c0_50] : memref<1x16x16x128xf32, #tpu.memory_space<vmem>>, vector<1x16x16x128xf32>
    %84 = vector.shape_cast %83 : vector<1x16x16x128xf32> to vector<16x16x128xf32>
    %85 = arith.addf %82, %84 : vector<16x16x128xf32>
    %c0_51 = arith.constant 0 : index
    %c0_52 = arith.constant 0 : index
    %c0_53 = arith.constant 0 : index
    %c0_54 = arith.constant 0 : index
    %86 = vector.load %arg9[%c0_51, %c0_52, %c0_53, %c0_54] : memref<1x16x16x128xf32, #tpu.memory_space<vmem>>, vector<1x16x16x128xf32>
    %87 = vector.shape_cast %86 : vector<1x16x16x128xf32> to vector<16x16x128xf32>
    %88 = vector.shape_cast %85 : vector<16x16x128xf32> to vector<1x16x16x128xf32>
    tpu.vector_store %arg9[%c0_51, %c0_52, %c0_53, %c0_54], %88 {strides = array<i32>} : memref<1x16x16x128xf32, #tpu.memory_space<vmem>>, vector<1x16x16x128xf32>,
    return
  }
  func.func @transform_0(%arg0: i32) -> (i32, i32, i32, i32) {
    %c0_i32 = arith.constant 0 : i32
    %c0_i32_0 = arith.constant 0 : i32
    %c0_i32_1 = arith.constant 0 : i32
    %c0_i32_2 = arith.constant 0 : i32
    return %arg0, %c0_i32, %c0_i32_0, %c0_i32_1 : i32, i32, i32, i32
  }
  func.func @transform_1(%arg0: i32) -> (i32, i32, i32, i32) {
    %c0_i32 = arith.constant 0 : i32
    %c0_i32_0 = arith.constant 0 : i32
    %c0_i32_1 = arith.constant 0 : i32
    %c0_i32_2 = arith.constant 0 : i32
    return %arg0, %c0_i32, %c0_i32_0, %c0_i32_1 : i32, i32, i32, i32
  }
  func.func @transform_2(%arg0: i32) -> (i32, i32, i32) {
    %c0_i32 = arith.constant 0 : i32
    %c0_i32_0 = arith.constant 0 : i32
    %c0_i32_1 = arith.constant 0 : i32
    %c0_i32_2 = arith.constant 0 : i32
    return %c0_i32, %c0_i32_0, %c0_i32_1 : i32, i32, i32
  }
  func.func @transform_3(%arg0: i32) -> (i32, i32, i32) {
    %c0_i32 = arith.constant 0 : i32
    %c0_i32_0 = arith.constant 0 : i32
    %c0_i32_1 = arith.constant 0 : i32
    %c0_i32_2 = arith.constant 0 : i32
    return %c0_i32, %c0_i32_0, %c0_i32_1 : i32, i32, i32
  }
  func.func @transform_4(%arg0: i32) -> (i32, i32) {
    %c0_i32 = arith.constant 0 : i32
    %c0_i32_0 = arith.constant 0 : i32
    %c0_i32_1 = arith.constant 0 : i32
    return %c0_i32, %c0_i32_0 : i32, i32
  }
  func.func @transform_5(%arg0: i32) -> (i32, i32, i32) {
    %c0_i32 = arith.constant 0 : i32
    %c0_i32_0 = arith.constant 0 : i32
    %c0_i32_1 = arith.constant 0 : i32
    %c0_i32_2 = arith.constant 0 : i32
    return %c0_i32, %c0_i32_0, %c0_i32_1 : i32, i32, i32
  }
  func.func @transform_6(%arg0: i32) -> (i32, i32, i32) {
    %c0_i32 = arith.constant 0 : i32
    %c0_i32_0 = arith.constant 0 : i32
    %c0_i32_1 = arith.constant 0 : i32
    %c0_i32_2 = arith.constant 0 : i32
    return %c0_i32, %c0_i32_0, %c0_i32_1 : i32, i32, i32
  }
  func.func @transform_7(%arg0: i32) -> (i32, i32, i32, i32) {
    %c0_i32 = arith.constant 0 : i32
    %c0_i32_0 = arith.constant 0 : i32
    %c0_i32_1 = arith.constant 0 : i32
    %c0_i32_2 = arith.constant 0 : i32
    return %arg0, %c0_i32, %c0_i32_0, %c0_i32_1 : i32, i32, i32, i32
  }
  func.func @transform_8(%arg0: i32) -> (i32, i32, i32, i32) {
    %c0_i32 = arith.constant 0 : i32
    %c0_i32_0 = arith.constant 0 : i32
    %c0_i32_1 = arith.constant 0 : i32
    %c0_i32_2 = arith.constant 0 : i32
    return %arg0, %c0_i32, %c0_i32_0, %c0_i32_1 : i32, i32, i32, i32
  }
}

</mosaic_0001>

<bundles_post_ra>
// kernel: inverted_residual_forward.2
= control target key start
LH: loop header
LB: loop body
LE: loop exit
PB: predicated region body
PF: predicated region fallthrough
CT: control target
= control target key end

     0   :  { %s1098_s18 = smov 0   ;;  %s1100_s19 = smov 0   ;;  %s1292_s0 = inlined_call_operand.vmem [shape: f32[2,256,128], index: 0, kind: input, shape index: {}]   ;;  %s1293_s1 = inlined_call_operand.vmem [shape: f32[128,128], index: 1, kind: input, shape index: {}]   ;;  %s1294_s2 = inlined_call_operand.vmem [shape: f32[1,128], index: 2, kind: input, shape index: {}]   ;;  %s1295_s3 = inlined_call_operand.vmem [shape: f32[1,128], index: 3, kind: input, shape index: {}]   ;;  %s1296_s4 = inlined_call_operand.vmem [shape: bf16[2,256,128], index: 4, kind: output, shape index: {0}]   ;;  %s1297_s5 = inlined_call_operand.vmem [shape: f32[2,1,128], index: 5, kind: output, shape index: {1}]  }
   0x1   :  { %s1102_s20 = smov 0   ;;  %s1104_s21 = smov 0  }
   0x2   :  { %s1106_s22 = smov 0  }
   0x3 LB: > { %s25_s23 = sadd.s32 1, %s1058_s20  ;;  %s28_s24 = sadd.s32 1, %s1062_s21  ;;  %s1066_s22 = sphi %s1106_s22, %s16_s22   ;;  %s1062_s21 = sphi %s1104_s21, %s1301_s21   ;;  %s1058_s20 = sphi %s1102_s20, %s1300_s20   ;;  %s1054_s19 = sphi %s1100_s19, %s1299_s19   ;;  %s1050_s18 = sphi %s1098_s18, %s1298_s18  }
   0x4   : > { %p26_p0 = scmp.ge.s32.totalorder %s25_s23, 2  ;;  %p760_p1 = scmp.ge.s32.totalorder %s1066_s22, 1 }
   0x5   : > { %p211_p2 = scmp.lt.s32.totalorder %s1066_s22, 5 }
   0x6   : > { %s1303_s23 = smov (%p26_p0, %s25_s23), 0  ;;  %s1305_s24 = smov (!%p26_p0, %s28_s24), %s1062_s21 }
   0x7   : > { %p212_p3 = pnand %p760_p1, %p211_p2  ;;  %p30_p4 = scmp.ge.s32.totalorder %s1305_s24, 2 }
   0x8   : > { %v289_v0 = vld [vmem:[%s1293_s1] sm:$0xff] (!%p212_p3)  ;;  %v290_v1 = vld [vmem:[%s1293_s1 + $0x8] sm:$0xff] (!%p212_p3)  ;;  %v291_v2 = vld [vmem:[%s1293_s1 + $0x10] sm:$0xff] (!%p212_p3)  ;;  %s761_s6 = sshll.u32 (!%p212_p3), %s1050_s18, 4  ;;  %p251_p5 = scmp.lt.s32.totalorder (!%p212_p3), %s1054_s19, 1 }
   0x9   : > { %s1307_s24 = smov (%p30_p4, %s1305_s24), 0  ;;  %215 = sbr.rel (%p212_p3) target bundleno = 320 (0x140), region = 36 }
   0xa   : > { %v940_v3 = vpack.c.bf16 (!%p212_p3), %v290_v1, %v289_v0  ;;  %v292_v4 = vld [vmem:[%s1293_s1 + $0x18] sm:$0xff] (!%p212_p3)  ;;  %p253_p6 = scmp.lt.s32.totalorder (!%p212_p3), %s761_s6, 31  ;;  %v293_v6 = vld [vmem:[%s1293_s1 + $0x20] sm:$0xff] (!%p212_p3)  ;;  %v294_v7 = vld [vmem:[%s1293_s1 + $0x28] sm:$0xff] (!%p212_p3)  ;;  %p785_p7 = scmp.ne.s32.totalorder (!%p212_p3), %s1050_s18, 0 }
   0xb   : > { %v944_v5 = vpack.c.bf16 (!%p212_p3), %v292_v4, %v291_v2  ;;  %v948_v8 = vpack.c.bf16 (!%p212_p3), %v294_v7, %v293_v6  ;;  %v295_v9 = vld [vmem:[%s1293_s1 + $0x30] sm:$0xff] (!%p212_p3)  ;;  %v296_v10 = vld [vmem:[%s1293_s1 + $0x38] sm:$0xff] (!%p212_p3)  ;;  %v297_v13 = vld [vmem:[%s1293_s1 + $0x40] sm:$0xff] (!%p212_p3) }
   0xc   : > { %941 = vmatprep.subr.bf16.mxu0 (!%p212_p3), %v940_v3  ;;  %972 = vmatprep.subr.bf16.mxu1 (!%p212_p3), %v940_v3  ;;  %v952_v12 = vpack.c.bf16 (!%p212_p3), %v296_v10, %v295_v9  ;;  %v298_v14 = vld [vmem:[%s1293_s1 + $0x48] sm:$0xff] (!%p212_p3)  ;;  %v299_v17 = vld [vmem:[%s1293_s1 + $0x50] sm:$0xff] (!%p212_p3)  ;;  %v300_v18 = vld [vmem:[%s1293_s1 + $0x58] sm:$0xff] (!%p212_p3) }
   0xd   : > { %943 = vmatpush3.bf16.msra.mxu0 (!%p212_p3), %v940_v3  ;;  %980 = vmatpush3.bf16.msra.mxu1 (!%p212_p3), %v940_v3  ;;  %v956_v16 = vpack.c.bf16 (!%p212_p3), %v298_v14, %v297_v13  ;;  %v960_v19 = vpack.c.bf16 (!%p212_p3), %v300_v18, %v299_v17  ;;  %v301_v20 = vld [vmem:[%s1293_s1 + $0x60] sm:$0xff] (!%p212_p3)  ;;  %v302_v21 = vld [vmem:[%s1293_s1 + $0x68] sm:$0xff] (!%p212_p3)  ;;  %v303_v23 = vld [vmem:[%s1293_s1 + $0x70] sm:$0xff] (!%p212_p3) }
   0xe   : > { %945 = vmatprep.subr.bf16.mxu0 (!%p212_p3), %v944_v5  ;;  %973 = vmatprep.subr.bf16.mxu1 (!%p212_p3), %v944_v5  ;;  %v964_v22 = vpack.c.bf16 (!%p212_p3), %v302_v21, %v301_v20  ;;  %v304_v24 = vld [vmem:[%s1293_s1 + $0x78] sm:$0xff] (!%p212_p3)  ;;  %v1211_v40 = vld [vmem:[%s1294_s2] ss:$0 sm:$0xff] (!%p212_p3) }
   0xf   : > { %v968_v25 = vpack.c.bf16 (!%p212_p3), %v304_v24, %v303_v23  ;;  %v1216_v42 = vld [vmem:[%s1295_s3] ss:$0 sm:$0xff] (!%p212_p3) }
  0x10   : > { %s1309_s19 = smov (!%p251_p5, %s1054_s19), 1  ;;  %s1311_s6 = smov (!%p253_p6, %s761_s6), 31 }
  0x11   : > { %s762_s13 = sshll.u32 %s1309_s19, 5  ;;  %s1152_s16 = scalar_lea.vmem %s1297_s5, %s1309_s19  ;;  %947 = vmatpush3.bf16.msra.mxu0 %v944_v5  ;;  %981 = vmatpush3.bf16.msra.mxu1 %v944_v5 }
  0x12   : > { %s1154_s17 = sadd.s32 %s762_s13, %s1311_s6  ;;  %949 = vmatprep.subr.bf16.mxu0 %v948_v8  ;;  %974 = vmatprep.subr.bf16.mxu1 %v948_v8 }
  0x13   : > { %s763_s29 = sshll.u32 %s1154_s17, 3 }
  0x14   : > { %s1166_s19 = scalar_lea.vmem %s1292_s0, %s763_s29 }
  0x15   : > { %v273_v11 = vld [vmem:[%s1166_s19] sm:$0xff]  ;;  %951 = vmatpush3.bf16.msra.mxu0 %v948_v8  ;;  %982 = vmatpush3.bf16.msra.mxu1 %v948_v8  ;;  %v274_v26 = vld [vmem:[%s1166_s19 + $0x8] sm:$0xff]  ;;  %v275_v28 = vld [vmem:[%s1166_s19 + $0x10] sm:$0xff] }
  0x16   : > { %916 = vmatprep.mubr.f32.mxu0 %v273_v11  ;;  %v281_v15 = vld [vmem:[%s1166_s19 + $0x40] sm:$0xff]  ;;  %953 = vmatprep.subr.bf16.mxu0 %v952_v12  ;;  %v282_v27 = vld [vmem:[%s1166_s19 + $0x48] sm:$0xff]  ;;  %v283_v29 = vld [vmem:[%s1166_s19 + $0x50] sm:$0xff] }
  0x17   : > { %928 = vmatprep.mubr.f32.mxu1 %v281_v15  ;;  %975 = vmatprep.subr.bf16.mxu1 %v952_v12  ;;  %v276_v30 = vld [vmem:[%s1166_s19 + $0x18] sm:$0xff]  ;;  %v277_v32 = vld [vmem:[%s1166_s19 + $0x20] sm:$0xff]  ;;  %v278_v34 = vld [vmem:[%s1166_s19 + $0x28] sm:$0xff] }
  0x18   : > { %v284_v31 = vld [vmem:[%s1166_s19 + $0x58] sm:$0xff]  ;;  %v285_v33 = vld [vmem:[%s1166_s19 + $0x60] sm:$0xff]  ;;  %v286_v35 = vld [vmem:[%s1166_s19 + $0x68] sm:$0xff] }
  0x19   : > { %955 = vmatpush3.bf16.msra.mxu0 %v952_v12  ;;  %983 = vmatpush3.bf16.msra.mxu1 %v952_v12  ;;  %v279_v36 = vld [vmem:[%s1166_s19 + $0x30] sm:$0xff]  ;;  %v280_v38 = vld [vmem:[%s1166_s19 + $0x38] sm:$0xff] }
  0x1a   : > { %957 = vmatprep.subr.bf16.mxu0 %v956_v16  ;;  %976 = vmatprep.subr.bf16.mxu1 %v956_v16  ;;  %v287_v37 = vld [vmem:[%s1166_s19 + $0x70] sm:$0xff]  ;;  %v288_v39 = vld [vmem:[%s1166_s19 + $0x78] sm:$0xff]  ;;  %s766_s19 = sshll.u32 %s1154_s17, 2 }
  0x1b   : > { %s1242_s12 = scalar_lea.vmem %s1296_s4, %s766_s19 }
  0x1d   : > { %959 = vmatpush3.bf16.msra.mxu0 %v956_v16  ;;  %984 = vmatpush3.bf16.msra.mxu1 %v956_v16 }
  0x1e   : > { %961 = vmatprep.subr.bf16.mxu0 %v960_v19  ;;  %977 = vmatprep.subr.bf16.mxu1 %v960_v19 }
  0x21   : > { %963 = vmatpush3.bf16.msra.mxu0 %v960_v19  ;;  %985 = vmatpush3.bf16.msra.mxu1 %v960_v19 }
  0x22   : > { %965 = vmatprep.subr.bf16.mxu0 %v964_v22  ;;  %978 = vmatprep.subr.bf16.mxu1 %v964_v22 }
  0x25   : > { %967 = vmatpush3.bf16.msra.mxu0 %v964_v22  ;;  %986 = vmatpush3.bf16.msra.mxu1 %v964_v22 }
  0x26   : > { %969 = vmatprep.subr.bf16.mxu0 %v968_v25  ;;  %979 = vmatprep.subr.bf16.mxu1 %v968_v25 }
  0x29   : > { %971 = vmatpush3.bf16.msra.mxu0 %v968_v25  ;;  %987 = vmatpush3.bf16.msra.mxu1 %v968_v25 }
  0x2c   : > { %917 = vmatmul.mubr.f32.vlgmr.msra.gmra.mrb[0].mxu0 %v274_v26  ;;  %929 = vmatmul.mubr.f32.vlgmr.msra.gmra.mrb[0].mxu1 %v282_v27 }
  0x2d   : > { %919 = vmatprep.mubr.f32.mxu0 %v275_v28  ;;  %931 = vmatprep.mubr.f32.mxu1 %v283_v29 }
  0x30   : > { %920 = vmatmul.mubr.f32.gmra.mrb[2].mxu0 %v276_v30  ;;  %932 = vmatmul.mubr.f32.gmra.mrb[2].mxu1 %v284_v31 }
  0x31   : > { %922 = vmatprep.mubr.f32.mxu0 %v277_v32  ;;  %934 = vmatprep.mubr.f32.mxu1 %v285_v33 }
  0x34   : > { %923 = vmatmul.mubr.f32.gmra.mrb[4].mxu0 %v278_v34  ;;  %935 = vmatmul.mubr.f32.gmra.mrb[4].mxu1 %v286_v35 }
  0x35   : > { %925 = vmatprep.mubr.f32.mxu0 %v279_v36  ;;  %937 = vmatprep.mubr.f32.mxu1 %v287_v37 }
  0x38   : > { %926 = vmatmul.mubr.f32.gmra.mrb[6].mxu0 %v280_v38  ;;  %938 = vmatmul.mubr.f32.gmra.mrb[6].mxu1 %v288_v39 }
  0xff   : > { %v918_v41 = vpop.f32.mrb[0].mxu0  ;;  %v930_v43 = vpop.f32.mrb[0].mxu1 }
 0x100   : > { %v458_v44 = vmul.f32 %v918_v41, %v1211_v40  ;;  %v371_v45 = vpop.f32.mrb[1].mxu0  ;;  %v466_v46 = vmul.f32 %v930_v43, %v1211_v40  ;;  %v411_v47 = vpop.f32.mrb[1].mxu1 }
 0x101   : > { %v457_v48 = vmul.f32 %v1211_v40, %v371_v45  ;;  %v465_v49 = vmul.f32 %v1211_v40, %v411_v47 }
 0x102   : > { %v481_v50 = vadd.f32 %v1216_v42, %v458_v44  ;;  %v489_v51 = vadd.f32 %v1216_v42, %v466_v46 }
 0x103   : > { %v480_v52 = vadd.f32 %v1216_v42, %v457_v48  ;;  %v921_v53 = vpop.f32.mrb[2].mxu0  ;;  %v488_v54 = vadd.f32 %v1216_v42, %v465_v49  ;;  %v933_v55 = vpop.f32.mrb[2].mxu1 }
 0x104   : > { %v497_v56 = vmax.f32 %v481_v50, 0.0  ;;  %v460_v57 = vmul.f32 %v921_v53, %v1211_v40  ;;  %v381_v58 = vpop.f32.mrb[3].mxu0  ;;  %v505_v59 = vmax.f32 %v489_v51, 0.0  ;;  %v468_v60 = vmul.f32 %v933_v55, %v1211_v40  ;;  %v421_v61 = vpop.f32.mrb[3].mxu1 }
 0x105   : > { %v496_v62 = vmax.f32 %v480_v52, 0.0  ;;  %v459_v63 = vmul.f32 %v1211_v40, %v381_v58  ;;  %v504_v0 = vmax.f32 %v488_v54, 0.0  ;;  %v467_v1 = vmul.f32 %v1211_v40, %v421_v61 }
 0x106   : > { %v513_v2 = vmin.f32 %v497_v56, 6.0  ;;  %v483_v3 = vadd.f32 %v1216_v42, %v460_v57  ;;  %v1232_v4 = vmin.f32 %v505_v59, 6.0  ;;  %v491_v5 = vadd.f32 %v1216_v42, %v468_v60 }
 0x107   : > { %v512_v6 = vmin.f32 %v496_v62, 6.0  ;;  %v482_v7 = vadd.f32 %v1216_v42, %v459_v63  ;;  %v924_v8 = vpop.f32.mrb[4].mxu0  ;;  %v1236_v9 = vmin.f32 %v504_v0, 6.0  ;;  %v490_v10 = vadd.f32 %v1216_v42, %v467_v1  ;;  %v936_v11 = vpop.f32.mrb[4].mxu1 }
 0x108   : > { %v499_v12 = vmax.f32 %v483_v3, 0.0  ;;  %v462_v13 = vmul.f32 %v924_v8, %v1211_v40  ;;  %v391_v14 = vpop.f32.mrb[5].mxu0  ;;  %v507_v15 = vmax.f32 %v491_v5, 0.0  ;;  %v470_v16 = vmul.f32 %v936_v11, %v1211_v40  ;;  %v431_v17 = vpop.f32.mrb[5].mxu1 }
 0x109   : > { %v808_v18 = vpack.c.bf16 %v513_v2, %v512_v6  ;;  %v608_v19 = vadd.f32 %v513_v2, %v512_v6  ;;  %v498_v20 = vmax.f32 %v482_v7, 0.0  ;;  %v461_v21 = vmul.f32 %v1211_v40, %v391_v14 }
 0x10a   : > { %v515_v22 = vmin.f32 %v499_v12, 6.0  ;;  %v485_v23 = vadd.f32 %v1216_v42, %v462_v13  ;;  %v828_v24 = vpack.c.bf16 %v1232_v4, %v1236_v9  ;;  %v523_v25 = vmin.f32 %v507_v15, 6.0 }
 0x10b   : > { %809 = vst [vmem:[%s1242_s12] sm:$0xff] %v808_v18   ;;  %v514_v26 = vmin.f32 %v498_v20, 6.0  ;;  %v484_v27 = vadd.f32 %v1216_v42, %v461_v21  ;;  %v927_v28 = vpop.f32.mrb[6].mxu0  ;;  %v506_v29 = vmax.f32 %v490_v10, 0.0  ;;  %v493_v30 = vadd.f32 %v1216_v42, %v470_v16  ;;  %v939_v31 = vpop.f32.mrb[6].mxu1 }
 0x10c   : > { %v501_v32 = vmax.f32 %v485_v23, 0.0  ;;  %v464_v33 = vmul.f32 %v927_v28, %v1211_v40  ;;  %v401_v34 = vpop.f32.mrb[7].mxu0  ;;  %848 = vst [vmem:[%s1242_s12 + $0x20] sm:$0xff] %v828_v24   ;;  %v469_v35 = vmul.f32 %v1211_v40, %v431_v17  ;;  %v472_v36 = vmul.f32 %v939_v31, %v1211_v40  ;;  %v441_v37 = vpop.f32.mrb[7].mxu1 }
 0x10d   : > { %v813_v38 = vpack.c.bf16 %v515_v22, %v514_v26  ;;  %v609_v39 = vadd.f32 %v608_v19, %v514_v26  ;;  %v500_v41 = vmax.f32 %v484_v27, 0.0  ;;  %v463_v43 = vmul.f32 %v1211_v40, %v401_v34 }
 0x10e   : > { %v517_v44 = vmin.f32 %v501_v32, 6.0  ;;  %v487_v45 = vadd.f32 %v1216_v42, %v464_v33  ;;  %v522_v46 = vmin.f32 %v506_v29, 6.0  ;;  %v509_v47 = vmax.f32 %v493_v30, 0.0 }
 0x10f   : > { %845 = vst [vmem:[%s1242_s12 + $0x8] sm:$0xff] %v813_v38   ;;  %v516_v48 = vmin.f32 %v500_v41, 6.0  ;;  %v610_v49 = vadd.f32 %v609_v39, %v515_v22  ;;  %v486_v50 = vadd.f32 %v1216_v42, %v463_v43  ;;  %v492_v51 = vadd.f32 %v1216_v42, %v469_v35 }
 0x110   : > { %v503_v52 = vmax.f32 %v487_v45, 0.0  ;;  %v833_v53 = vpack.c.bf16 %v523_v25, %v522_v46  ;;  %v525_v54 = vmin.f32 %v509_v47, 6.0  ;;  %v495_v55 = vadd.f32 %v1216_v42, %v472_v36 }
 0x111   : > { %v818_v56 = vpack.c.bf16 %v517_v44, %v516_v48  ;;  %v611_v57 = vadd.f32 %v610_v49, %v516_v48  ;;  %v502_v58 = vmax.f32 %v486_v50, 0.0  ;;  %v508_v59 = vmax.f32 %v492_v51, 0.0 }
 0x112   : > { %v519_v60 = vmin.f32 %v503_v52, 6.0  ;;  %849 = vst [vmem:[%s1242_s12 + $0x28] sm:$0xff] %v833_v53   ;;  %v511_v61 = vmax.f32 %v495_v55, 0.0  ;;  %v471_v62 = vmul.f32 %v1211_v40, %v441_v37 }
 0x113   : > { %846 = vst [vmem:[%s1242_s12 + $0x10] sm:$0xff] %v818_v56   ;;  %v518_v63 = vmin.f32 %v502_v58, 6.0  ;;  %v612_v0 = vadd.f32 %v611_v57, %v517_v44  ;;  %v524_v1 = vmin.f32 %v508_v59, 6.0 }
 0x114   : > { %v494_v2 = vadd.f32 %v1216_v42, %v471_v62  ;;  %v527_v7 = vmin.f32 %v511_v61, 6.0 }
 0x115   : > { %v823_v3 = vpack.c.bf16 %v519_v60, %v518_v63  ;;  %v613_v5 = vadd.f32 %v612_v0, %v518_v63  ;;  %v838_v6 = vpack.c.bf16 %v525_v54, %v524_v1 }
 0x116   : > { %v510_v8 = vmax.f32 %v494_v2, 0.0 }
 0x117   : > { %847 = vst [vmem:[%s1242_s12 + $0x18] sm:$0xff] %v823_v3   ;;  %v614_v10 = vadd.f32 %v613_v5, %v519_v60  ;;  %850 = vst [vmem:[%s1242_s12 + $0x30] sm:$0xff] %v838_v6  }
 0x118   : > { %v526_v11 = vmin.f32 %v510_v8, 6.0 }
 0x119   : > { %v615_v12 = vadd.f32 %v614_v10, %v1236_v9 }
 0x11a   : > { %v843_v13 = vpack.c.bf16 %v527_v7, %v526_v11 }
 0x11b   : > { %v616_v40 = vadd.f32 %v615_v12, %v1232_v4 }
 0x11c   : > { %851 = vst [vmem:[%s1242_s12 + $0x38] sm:$0xff] %v843_v13  }
 0x11d   : > { %v617_v14 = vadd.f32 %v616_v40, %v522_v46 }
 0x11f   : > { %v618_v15 = vadd.f32 %v617_v14, %v523_v25 }
 0x121   : > { %v619_v16 = vadd.f32 %v618_v15, %v524_v1 }
 0x123   : > { %v620_v17 = vadd.f32 %v619_v16, %v525_v54 }
 0x125   : > { %v621_v42 = vadd.f32 %v620_v17, %v526_v11 }
 0x127   : > { %v622_v18 = vadd.f32 %v621_v42, %v527_v7 }
 0x129   : > { %v623_v19 = vrot.slane %v622_v18, 4 }
 0x12b   : > { %v624_v20 = vadd.f32 %v623_v19, %v622_v18 }
 0x12d   : > { %v625_v21 = vrot.slane %v624_v20, 2  ;;  %632 = sbr.rel (%p785_p7) target bundleno = 310 (0x136), region = 40 }
 0x12f   : > { %v626_v22 = vadd.f32 %v625_v21, %v624_v20 }
 0x131   : > { %v627_v23 = vrot.slane %v626_v22, 1 }
 0x133   : > { %v628_v24 = vadd.f32 %v627_v23, %v626_v22 }
 0x135   : > { %633 = vst [vmem:[%s1152_s16] sm:$0x1] %v628_v24 }
 0x136 PF: > { %p786_p8 = scmp.le.s32.totalorder %s1050_s18, 0 }
 0x138   : > { %637 = sbr.rel (%p786_p8) target bundleno = 320 (0x140), region = 44 }
 0x13c   : > { %v638_v4 = vld [vmem:[%s1152_s16] sm:$0x1] (!%p786_p8) }
 0x13d   : > { %v639_v9 = vadd.f32 (!%p786_p8), %v638_v4, %v628_v24 }
 0x13f   : > { %640 = vst [vmem:[%s1152_s16] sm:$0x1] %v639_v9 }
 0x140 PF: > { %s16_s22 = sadd.s32 1, %s1066_s22   ;;  %s1298_s18 = smov %s1058_s20 }
 0x141   : > { %p13_p9 = scmp.ge.s32.totalorder %s16_s22, 6   ;;  %s1299_s19 = smov %s1062_s21 }
 0x142   : > { %s1300_s20 = smov %s1303_s23  ;;  %s1301_s21 = smov %s1307_s24 }
 0x143   :  { %15 = sbr.rel (!%p13_p9) target bundleno = 3 (0x3), region = 86 }

// kernel: inverted_residual_forward.3
= control target key start
LH: loop header
LB: loop body
LE: loop exit
PB: predicated region body
PF: predicated region fallthrough
CT: control target
= control target key end

     0   :  { %s3653_s27 = smov 0   ;;  %s5178_s0 = inlined_call_operand.vmem [shape: bf16[2,16,16,128], index: 0, kind: input, shape index: {}]   ;;  %s5179_s1 = inlined_call_operand.vmem [shape: f32[2,3,3,128], index: 1, kind: input, shape index: {}]   ;;  %s5180_s2 = inlined_call_operand.vmem [shape: f32[1,1,128], index: 2, kind: input, shape index: {}]   ;;  %s5181_s3 = inlined_call_operand.vmem [shape: f32[1,1,128], index: 3, kind: input, shape index: {}]   ;;  %s5182_s4 = inlined_call_operand.vmem [shape: f32[128,128], index: 4, kind: input, shape index: {}]   ;;  %s5183_s5 = inlined_call_operand.vmem [shape: f32[1,1,128], index: 5, kind: input, shape index: {}]   ;;  %s5184_s6 = inlined_call_operand.vmem [shape: f32[1,1,128], index: 6, kind: input, shape index: {}]   ;;  %s5185_s7 = inlined_call_operand.vmem [shape: f32[2,16,16,128], index: 7, kind: input, shape index: {}]   ;;  %s5186_s8 = inlined_call_operand.vmem [shape: f32[2,16,16,128], index: 8, kind: output, shape index: {}]  }
   0x1 LB: > { %s3311_s28 = sadd.s32 4294967295, %s3606_s27   ;;  %p3315_p0 = scmp.ge.s32.totalorder %s3606_s27, 1  ;;  %s3606_s27 = sphi %s3653_s27, %s18_s27  }
   0x2   : > { %p282_p1 = scmp.lt.s32.totalorder %s3606_s27, 3 }
   0x4   : > { %p283_p2 = pnand %p3315_p0, %p282_p1 }
   0x5   : > { %v2817_v0 = vld [vmem:[%s5182_s4] sm:$0xff] (!%p283_p2)  ;;  %v2818_v1 = vld [vmem:[%s5182_s4 + $0x8] sm:$0xff] (!%p283_p2)  ;;  %v2819_v2 = vld [vmem:[%s5182_s4 + $0x10] sm:$0xff] (!%p283_p2)  ;;  %p326_p3 = scmp.lt.s32.totalorder (!%p283_p2), %s3311_s28, 1  ;;  %v555_v3 = vlaneseq (!%p283_p2)  ;;  %vm723_vm0 = vcmask (!%p283_p2), 1046528   ;;  %vm968_vm1 = vcmask (!%p283_p2), 1045504  }
   0x6   : > { %286 = sbr.rel (%p283_p2) target bundleno = 580 (0x244), region = 52  ;;  %v3539_v4 = vpack.c.bf16 (!%p283_p2), %v2818_v1, %v2817_v0  ;;  %v2820_v5 = vld [vmem:[%s5182_s4 + $0x18] sm:$0xff] (!%p283_p2)  ;;  %v2821_v6 = vld [vmem:[%s5182_s4 + $0x20] sm:$0xff] (!%p283_p2)  ;;  %v2822_v7 = vld [vmem:[%s5182_s4 + $0x28] sm:$0xff] (!%p283_p2)  ;;  %vm2704_vm2 = vcmask (!%p283_p2), 1040384  }
   0x7   : > { %v3543_v8 = vpack.c.bf16 (!%p283_p2), %v2820_v5, %v2819_v2  ;;  %v2823_v9 = vld [vmem:[%s5182_s4 + $0x30] sm:$0xff] (!%p283_p2)  ;;  %v2824_v10 = vld [vmem:[%s5182_s4 + $0x38] sm:$0xff] (!%p283_p2)  ;;  %v2825_v11 = vld [vmem:[%s5182_s4 + $0x40] sm:$0xff] (!%p283_p2)  ;;  %v556_v12 = vshrl.u32 (!%p283_p2), %v555_v3, 7  ;;  %v3547_v20 = vpack.c.bf16 (!%p283_p2), %v2822_v7, %v2821_v6 }
   0x8   : > { %3540 = vmatprep.subr.bf16.mxu0 (!%p283_p2), %v3539_v4  ;;  %3571 = vmatprep.subr.bf16.mxu1 (!%p283_p2), %v3539_v4  ;;  %v2826_v13 = vld [vmem:[%s5182_s4 + $0x48] sm:$0xff] (!%p283_p2)  ;;  %v2827_v14 = vld [vmem:[%s5182_s4 + $0x50] sm:$0xff] (!%p283_p2)  ;;  %v2828_v15 = vld [vmem:[%s5182_s4 + $0x58] sm:$0xff] (!%p283_p2)  ;;  %v3551_v24 = vpack.c.bf16 (!%p283_p2), %v2824_v10, %v2823_v9 }
   0x9   : > { %3542 = vmatpush3.bf16.msra.mxu0 (!%p283_p2), %v3539_v4  ;;  %3579 = vmatpush3.bf16.msra.mxu1 (!%p283_p2), %v3539_v4  ;;  %v2829_v16 = vld [vmem:[%s5182_s4 + $0x60] sm:$0xff] (!%p283_p2)  ;;  %v2830_v17 = vld [vmem:[%s5182_s4 + $0x68] sm:$0xff] (!%p283_p2)  ;;  %v2831_v18 = vld [vmem:[%s5182_s4 + $0x70] sm:$0xff] (!%p283_p2)  ;;  %v557_v19 = vsub.s32 (!%p283_p2), 0, %v556_v12  ;;  %v657_v22 = vsub.s32 (!%p283_p2), 1, %v556_v12  ;;  %v870_v23 = vsub.s32 (!%p283_p2), 2, %v556_v12  ;;  %v3718_v25 = vpack.c.bf16 (!%p283_p2), %v2826_v13, %v2825_v11 }
   0xa   : > { %3544 = vmatprep.subr.bf16.mxu0 (!%p283_p2), %v3543_v8  ;;  %3572 = vmatprep.subr.bf16.mxu1 (!%p283_p2), %v3543_v8  ;;  %v2832_v21 = vld [vmem:[%s5182_s4 + $0x78] sm:$0xff] (!%p283_p2)  ;;  %v3720_v26 = vpack.c.bf16 (!%p283_p2), %v2828_v15, %v2827_v14  ;;  %v3722_v27 = vpack.c.bf16 (!%p283_p2), %v2830_v17, %v2829_v16 }
   0xb   : > { %v3729_v30 = vpack.c.bf16 (!%p283_p2), %v2832_v21, %v2831_v18 }
   0xd   : > { %s5188_s28 = smov (!%p326_p3, %s3311_s28), 1  ;;  %3546 = vmatpush3.bf16.msra.mxu0 %v3543_v8  ;;  %3580 = vmatpush3.bf16.msra.mxu1 %v3543_v8 }
   0xe   : > { %s3329_s17 = sshll.u32 %s5188_s28, 7  ;;  %s3587_s18 = smul.u32 12, %s5188_s28  ;;  %3548 = vmatprep.subr.bf16.mxu0 %v3547_v20  ;;  %3573 = vmatprep.subr.bf16.mxu1 %v3547_v20 }
   0xf   : > { %s3716_s23 = scalar_lea.vmem %s5178_s0, %s3329_s17  ;;  %s3330_s19 = sshll.u32 %s5188_s28, 8 }
  0x10   : > { %s335_s26 = scalar_lea.vmem %s5179_s1, %s3587_s18  ;;  %v3333_v28 = vld [vmem:[%s3716_s23] sm:$0xff]   ;;  %v3396_v29 = vld [vmem:[%s3716_s23 + $0x8] sm:$0xff]   ;;  %v3402_v41 = vld [vmem:[%s3716_s23 + $0x38] sm:$0xff]   ;;  %s4992_s24 = scalar_lea.vmem %s5185_s7, %s3330_s19 }
  0x11   : > { %v3731_v31 = vunpack.c.l.bf16 %v3333_v28  ;;  %v3733_v32 = vunpack.c.h.bf16 %v3333_v28  ;;  %v3735_v33 = vunpack.c.l.bf16 %v3396_v29  ;;  %v488_v34 = vld [vmem:[%s335_s26] sm:$0x7]  ;;  %v489_v35 = vld [vmem:[%s335_s26 + $0x4] sm:$0x7]  ;;  %v490_v36 = vld [vmem:[%s335_s26 + $0x8] sm:$0x7]  ;;  %v3737_v37 = vunpack.c.h.bf16 %v3396_v29  ;;  %3550 = vmatpush3.bf16.msra.mxu0 %v3547_v20  ;;  %3581 = vmatpush3.bf16.msra.mxu1 %v3547_v20  ;;  %s5033_s9 = scalar_lea.vmem %s5186_s8, %s3330_s19 }
  0x12   : > { %v3739_v38 = vrot.slane %v488_v34, %v557_v19  ;;  %v3741_v39 = vrot.slane %v488_v34, %v657_v22  ;;  %v3743_v40 = vrot.slane %v488_v34, %v870_v23  ;;  %v3746_v42 = vrot.slane %v489_v35, %v557_v19  ;;  %3552 = vmatprep.subr.bf16.mxu0 %v3551_v24  ;;  %v3403_v18 = vld [vmem:[%s3716_s23 + $0x40] sm:$0xff]   ;;  %v3404_v34 = vld [vmem:[%s3716_s23 + $0x48] sm:$0xff]  }
  0x13   : > { %v3748_v43 = vrot.slane %v489_v35, %v657_v22  ;;  %v3750_v44 = vrot.slane %v489_v35, %v870_v23  ;;  %v3752_v45 = vunpack.c.l.bf16 %v3402_v41  ;;  %v3759_v49 = vrot.slane %v490_v36, %v557_v19  ;;  %3574 = vmatprep.subr.bf16.mxu1 %v3551_v24 }
  0x14   : > { %v3755_v46 = vmul.f32 0.0, %v3739_v38  ;;  %v659_v47 = vmul.f32 0.0, %v3741_v39  ;;  %v872_v48 = vmul.f32 0.0, %v3743_v40  ;;  %v3762_v50 = vmul.f32 0.0, %v3746_v42 }
  0x15   : > { %v1214_v51 = vmul.f32 %v3731_v31, %v3746_v42  ;;  %v1313_v52 = vmul.f32 %v3731_v31, %v3748_v43  ;;  %v1314_v53 = vmul.f32 %v3733_v32, %v3748_v43  ;;  %v1525_v56 = vmul.f32 %v3731_v31, %v3750_v44  ;;  %3554 = vmatpush3.bf16.msra.mxu0 %v3551_v24 }
  0x16   : > { %v724_v54 = vrot.slane %v659_v47, 1  ;;  %v3770_v55 = vrot.slane %v872_v48, 2  ;;  %v1526_v57 = vmul.f32 %v3733_v32, %v3750_v44  ;;  %v3777_v60 = vmul.f32 0.0, %v3759_v49  ;;  %3582 = vmatpush3.bf16.msra.mxu1 %v3551_v24  ;;  %3556 = vmatprep.subr.bf16.mxu0 %v3718_v25 }
  0x17   : > { %v1377_v58 = vrot.slane %v1313_v52, 1  ;;  %v1378_v59 = vrot.slane %v1314_v53, 1  ;;  %v1867_v61 = vmul.f32 %v3735_v33, %v3759_v49  ;;  %v1621_v63 = vrot.slane %v1525_v56, 2  ;;  %3575 = vmatprep.subr.bf16.mxu1 %v3718_v25 }
  0x18   : > { %v820_v62 = vadd.f32 %v724_v54, %v3755_v46  ;;  %v1622_v0 = vrot.slane %v1526_v57, 2  ;;  %v3782_v1 = vrot.slane %v490_v36, %v657_v22  ;;  %v3785_v3 = vrot.slane %v490_v36, %v870_v23 }
  0x19   : > { %v1379_v2 = vsel %vm723_vm0, %v1377_v58, %v1378_v59  ;;  %v1215_v4 = vmul.f32 %v3733_v32, %v3746_v42  ;;  %v1527_v5 = vmul.f32 0.0, %v3750_v44  ;;  %v3794_v9 = vunpack.c.h.bf16 %v3402_v41  ;;  %3558 = vmatpush3.bf16.msra.mxu0 %v3718_v25 }
  0x1a   : > { %v1097_v6 = vadd.f32 %v3770_v55, %v820_v62  ;;  %v1623_v7 = vsel %vm968_vm1, %v1621_v63, %v1622_v0  ;;  %v1966_v8 = vmul.f32 %v3735_v33, %v3782_v1  ;;  %v1967_v10 = vmul.f32 %v3737_v37, %v3782_v1  ;;  %3583 = vmatpush3.bf16.msra.mxu1 %v3718_v25  ;;  %v3397_v25 = vld [vmem:[%s3716_s23 + $0x10] sm:$0xff]  }
  0x1b   : > { %v2178_v11 = vmul.f32 %v3735_v33, %v3785_v3  ;;  %v2179_v12 = vmul.f32 %v3737_v37, %v3785_v3  ;;  %v3804_v13 = vrot.slane %v1527_v5, 2  ;;  %v2180_v29 = vmul.f32 0.0, %v3785_v3  ;;  %3560 = vmatprep.subr.bf16.mxu0 %v3720_v26  ;;  %3576 = vmatprep.subr.bf16.mxu1 %v3720_v26 }
  0x1c   : > { %v1261_v14 = vadd.f32 %v3762_v50, %v1097_v6  ;;  %v1262_v15 = vadd.f32 %v1214_v51, %v1097_v6  ;;  %v2030_v16 = vrot.slane %v1966_v8, 1  ;;  %v1263_v17 = vadd.f32 %v1215_v4, %v1097_v6 }
  0x1d   : > { %v2031_v19 = vrot.slane %v1967_v10, 1  ;;  %v2274_v20 = vrot.slane %v2178_v11, 2  ;;  %v2275_v21 = vrot.slane %v2179_v12, 2  ;;  %v1625_v22 = vsel %vm968_vm1, %v1622_v0, %v3804_v13  ;;  %3562 = vmatpush3.bf16.msra.mxu0 %v3720_v26  ;;  %v3855_v10 = vld [vmem:[%s5180_s2] ss:$0 sm:$0xff] }
  0x1e   : > { %v1473_v23 = vadd.f32 %v1377_v58, %v1261_v14  ;;  %v1474_v24 = vadd.f32 %v1379_v2, %v1262_v15  ;;  %v1475_v28 = vadd.f32 %v1378_v59, %v1263_v17  ;;  %v1868_v41 = vmul.f32 %v3737_v37, %v3759_v49  ;;  %3584 = vmatpush3.bf16.msra.mxu1 %v3720_v26 }
  0x1f   : > { %v2032_v35 = vsel %vm723_vm0, %v2030_v16, %v2031_v19  ;;  %v2276_v36 = vsel %vm968_vm1, %v2274_v20, %v2275_v21  ;;  %v3820_v47 = vunpack.c.l.bf16 %v3403_v18  ;;  %v3823_v53 = vrot.slane %v2180_v29, 2  ;;  %3564 = vmatprep.subr.bf16.mxu0 %v3722_v27  ;;  %3577 = vmatprep.subr.bf16.mxu1 %v3722_v27 }
  0x20   : > { %v1749_v48 = vadd.f32 %v1621_v63, %v1473_v23  ;;  %v1750_v51 = vadd.f32 %v1623_v7, %v1474_v24  ;;  %v1751_v52 = vadd.f32 %v1625_v22, %v1475_v28  ;;  %v3825_v54 = vunpack.c.h.bf16 %v3403_v18  ;;  %v3881_v24 = vld [vmem:[%s3716_s23 + $0x50] sm:$0xff]  }
  0x21   : > { %v3827_v56 = vunpack.c.l.bf16 %v3404_v34  ;;  %v3829_v57 = vunpack.c.h.bf16 %v3404_v34  ;;  %v584_v58 = vmul.f32 %v3752_v45, %v3739_v38  ;;  %v3836_v0 = vunpack.c.l.bf16 %v3397_v25  ;;  %3566 = vmatpush3.bf16.msra.mxu0 %v3722_v27 }
  0x22   : > { %v1914_v59 = vadd.f32 %v3777_v60, %v1749_v48  ;;  %v1915_v62 = vadd.f32 %v1867_v61, %v1750_v51  ;;  %v1916_v63 = vadd.f32 %v1868_v41, %v1751_v52  ;;  %v2278_v2 = vsel %vm968_vm1, %v2275_v21, %v3823_v53  ;;  %3585 = vmatpush3.bf16.msra.mxu1 %v3722_v27  ;;  %v3871_v21 = vld [vmem:[%s5181_s3] ss:$0 sm:$0xff] }
  0x23   : > { %v675_v4 = vmul.f32 %v3752_v45, %v3741_v39  ;;  %v3846_v5 = vmul.f32 %v3794_v9, %v3741_v39  ;;  %v3848_v26 = vunpack.c.h.bf16 %v3397_v25  ;;  %v896_v8 = vmul.f32 %v3752_v45, %v3743_v40  ;;  %3568 = vmatprep.subr.bf16.mxu0 %v3729_v30  ;;  %3578 = vmatprep.subr.bf16.mxu1 %v3729_v30 }
  0x24   : > { %v2126_v61 = vadd.f32 %v2030_v16, %v1914_v59  ;;  %v2127_v6 = vadd.f32 %v2032_v35, %v1915_v62  ;;  %v2128_v7 = vadd.f32 %v2031_v19, %v1916_v63  ;;  %v3860_v14 = vmul.f32 %v3794_v9, %v3743_v40 }
  0x25   : > { %v748_v11 = vrot.slane %v675_v4, 1  ;;  %v749_v12 = vrot.slane %v3846_v5, 1  ;;  %v1238_v15 = vmul.f32 %v3820_v47, %v3746_v42  ;;  %v1009_v19 = vrot.slane %v896_v8, 2  ;;  %3570 = vmatpush3.bf16.msra.mxu0 %v3729_v30 }
  0x26   : > { %v2402_v16 = vadd.f32 %v2274_v20, %v2126_v61  ;;  %v2403_v17 = vadd.f32 %v2276_v36, %v2127_v6  ;;  %v2404_v18 = vadd.f32 %v2278_v2, %v2128_v7  ;;  %v1010_v20 = vrot.slane %v3860_v14, 2  ;;  %3586 = vmatpush3.bf16.msra.mxu1 %v3729_v30 }
  0x27   : > { %v750_v22 = vsel %vm723_vm0, %v748_v11, %v749_v12  ;;  %v844_v27 = vadd.f32 %v748_v11, %v3755_v46  ;;  %v1329_v23 = vmul.f32 %v3820_v47, %v3748_v43  ;;  %v3889_v25 = vmul.f32 %v3825_v54, %v3748_v43 }
  0x28   : > { %v2457_v28 = vmul.f32 %v3855_v10, %v2402_v16  ;;  %v2458_v29 = vmul.f32 %v3855_v10, %v2403_v17  ;;  %v2459_v34 = vmul.f32 %v3855_v10, %v2404_v18  ;;  %v845_v35 = vadd.f32 %v750_v22, %v584_v58 }
  0x29   : > { %v1011_v36 = vsel %vm968_vm1, %v1009_v19, %v1010_v20  ;;  %v1121_v41 = vadd.f32 %v1009_v19, %v844_v27  ;;  %v1401_v48 = vrot.slane %v1329_v23, 1  ;;  %v3897_v58 = vunpack.c.l.bf16 %v3881_v24 }
  0x2a   : > { %v2512_v51 = vadd.f32 %v3871_v21, %v2457_v28  ;;  %v2513_v52 = vadd.f32 %v3871_v21, %v2458_v29  ;;  %v2514_v59 = vadd.f32 %v3871_v21, %v2459_v34  ;;  %v1122_v62 = vadd.f32 %v1011_v36, %v845_v35 }
  0x2b   : > { %v1285_v63 = vadd.f32 %v3762_v50, %v1121_v41  ;;  %v1402_v2 = vrot.slane %v3889_v25, 1  ;;  %v1549_v4 = vmul.f32 %v3820_v47, %v3750_v44  ;;  %v1550_v7 = vmul.f32 %v3825_v54, %v3750_v44 }
  0x2c   : > { %v2560_v61 = vmax.f32 %v2512_v51, 0.0  ;;  %v2561_v6 = vmax.f32 %v2513_v52, 0.0  ;;  %v2562_v30 = vmax.f32 %v2514_v59, 0.0  ;;  %v1286_v8 = vadd.f32 %v1238_v15, %v1122_v62 }
  0x2d   : > { %v1403_v11 = vsel %vm723_vm0, %v1401_v48, %v1402_v2  ;;  %v1497_v14 = vadd.f32 %v1401_v48, %v1285_v63  ;;  %v1661_v16 = vrot.slane %v1549_v4, 2  ;;  %v1662_v22 = vrot.slane %v1550_v7, 2 }
  0x2e   : > { %v2608_v17 = vmin.f32 %v2560_v61, 6.0  ;;  %v2609_v18 = vmin.f32 %v2561_v6, 6.0  ;;  %v2610_v19 = vmin.f32 %v2562_v30, 6.0  ;;  %v1498_v27 = vadd.f32 %v1403_v11, %v1286_v8 }
  0x2f   : > { %v1773_v23 = vadd.f32 %v1661_v16, %v1497_v14  ;;  %v1891_v28 = vmul.f32 %v3827_v56, %v3759_v49  ;;  %v1982_v29 = vmul.f32 %v3827_v56, %v3782_v1  ;;  %v1663_v36 = vsel %vm968_vm1, %v1661_v16, %v1662_v22 }
  0x30   : > { %v2705_v34 = vrot.slane %v2608_v17, 7  ;;  %v2706_v15 = vrot.slane %v2609_v18, 7  ;;  %v2708_v35 = vrot.slane %v2610_v19, 7  ;;  %v1774_v41 = vadd.f32 %v1663_v36, %v1498_v27 }
  0x31   : > { %v1938_v48 = vadd.f32 %v3777_v60, %v1773_v23  ;;  %v3916_v51 = vmul.f32 %v3829_v57, %v3782_v1  ;;  %v2054_v52 = vrot.slane %v1982_v29, 1  ;;  %v2202_v63 = vmul.f32 %v3827_v56, %v3785_v3 }
  0x32   : > { %v2707_v59 = vsel %vm2704_vm2, %v2705_v34, %v2706_v15  ;;  %v2709_v62 = vsel %vm2704_vm2, %v2706_v15, %v2708_v35  ;;  %v2203_v4 = vmul.f32 %v3829_v57, %v3785_v3  ;;  %v1939_v61 = vadd.f32 %v1891_v28, %v1774_v41 }
  0x33   : > { %3491 = vmatprep.mubr.f32.mxu0 %v2707_v59  ;;  %v2055_v6 = vrot.slane %v3916_v51, 1  ;;  %v2150_v30 = vadd.f32 %v2054_v52, %v1938_v48  ;;  %v585_v7 = vmul.f32 %v3794_v9, %v3739_v38  ;;  %v2314_v8 = vrot.slane %v2202_v63, 2 }
  0x34   : > { %3492 = vmatmul.mubr.f32.vlgmr.msra.gmra.mrb[0].mxu0 %v2709_v62  ;;  %v2315_v11 = vrot.slane %v2203_v4, 2  ;;  %v1013_v14 = vsel %vm968_vm1, %v1010_v20, %v3770_v55  ;;  %v1239_v16 = vmul.f32 %v3825_v54, %v3746_v42  ;;  %v1665_v19 = vsel %vm968_vm1, %v1662_v22, %v3804_v13 }
  0x35   : > { %v2056_v17 = vsel %vm723_vm0, %v2054_v52, %v2055_v6  ;;  %v846_v18 = vadd.f32 %v749_v12, %v585_v7  ;;  %v1892_v27 = vmul.f32 %v3829_v57, %v3759_v49  ;;  %v2426_v29 = vadd.f32 %v2314_v8, %v2150_v30 }
  0x36   : > { %v2151_v23 = vadd.f32 %v2056_v17, %v1939_v61  ;;  %v2316_v28 = vsel %vm968_vm1, %v2314_v8, %v2315_v11  ;;  %v2318_v20 = vsel %vm968_vm1, %v2315_v11, %v3823_v53  ;;  %v563_v15 = vmul.f32 %v3731_v31, %v3739_v38 }
  0x37   : > { %v1123_v34 = vadd.f32 %v1013_v14, %v846_v18  ;;  %v661_v5 = vmul.f32 %v3731_v31, %v3741_v39  ;;  %v3947_v12 = vmul.f32 %v3733_v32, %v3741_v39  ;;  %v2481_v35 = vmul.f32 %v3855_v10, %v2426_v29 }
  0x38   : > { %v2427_v22 = vadd.f32 %v2316_v28, %v2151_v23  ;;  %v875_v36 = vmul.f32 %v3731_v31, %v3743_v40  ;;  %v876_v41 = vmul.f32 %v3733_v32, %v3743_v40  ;;  %v1217_v59 = vmul.f32 %v3735_v33, %v3746_v42 }
  0x39   : > { %v1287_v48 = vadd.f32 %v1239_v16, %v1123_v34  ;;  %v727_v51 = vrot.slane %v661_v5, 1  ;;  %v728_v52 = vrot.slane %v3947_v12, 1  ;;  %v2536_v63 = vadd.f32 %v3871_v21, %v2481_v35 }
  0x3a   : > { %v2482_v62 = vmul.f32 %v3855_v10, %v2427_v22  ;;  %v974_v4 = vrot.slane %v875_v36, 2  ;;  %v975_v61 = vrot.slane %v876_v41, 2  ;;  %v1315_v8 = vmul.f32 %v3735_v33, %v3748_v43 }
  0x3b   : > { %v1499_v30 = vadd.f32 %v1402_v2, %v1287_v48  ;;  %v729_v31 = vsel %vm723_vm0, %v727_v51, %v728_v52  ;;  %v823_v7 = vadd.f32 %v727_v51, %v3755_v46  ;;  %v2584_v14 = vmax.f32 %v2536_v63, 0.0 }
  0x3c   : > { %v2537_v11 = vadd.f32 %v3871_v21, %v2482_v62  ;;  %v824_v16 = vadd.f32 %v729_v31, %v563_v15  ;;  %v976_v17 = vsel %vm968_vm1, %v974_v4, %v975_v61  ;;  %v3969_v28 = vmul.f32 %v3737_v37, %v3748_v43 }
  0x3d   : > { %v1775_v18 = vadd.f32 %v1665_v19, %v1499_v30  ;;  %v1100_v23 = vadd.f32 %v974_v4, %v823_v7  ;;  %v1380_v25 = vrot.slane %v1315_v8, 1  ;;  %v2632_v29 = vmin.f32 %v2584_v14, 6.0 }
  0x3e   : > { %v2585_v2 = vmax.f32 %v2537_v11, 0.0  ;;  %v1101_v34 = vadd.f32 %v976_v17, %v824_v16  ;;  %v1528_v5 = vmul.f32 %v3735_v33, %v3750_v44  ;;  %v1381_v15 = vrot.slane %v3969_v28, 1 }
  0x3f   : > { %v1940_v12 = vadd.f32 %v1892_v27, %v1775_v18  ;;  %v1264_v22 = vadd.f32 %v3762_v50, %v1100_v23  ;;  %v1529_v19 = vmul.f32 %v3737_v37, %v3750_v44  ;;  %v2745_v36 = vrot.slane %v2632_v29, 7 }
  0x40   : > { %v3977_v35 = vmin.f32 %v2585_v2, 6.0  ;;  %v1265_v41 = vadd.f32 %v1217_v59, %v1101_v34  ;;  %v1626_v48 = vrot.slane %v1528_v5, 2  ;;  %v1382_v62 = vsel %vm723_vm0, %v1380_v25, %v1381_v15 }
  0x41   : > { %v2152_v51 = vadd.f32 %v2055_v6, %v1940_v12  ;;  %v1476_v63 = vadd.f32 %v1380_v25, %v1264_v22  ;;  %v1627_v4 = vrot.slane %v1529_v19, 2  ;;  %v1870_v31 = vmul.f32 %v3836_v0, %v3759_v49 }
  0x42   : > { %v2746_v30 = vrot.slane %v3977_v35, 7  ;;  %v1477_v27 = vadd.f32 %v1382_v62, %v1265_v41  ;;  %v1968_v7 = vmul.f32 %v3836_v0, %v3782_v1  ;;  %v3988_v6 = vmul.f32 %v3848_v26, %v3782_v1 }
  0x43   : > { %v2428_v8 = vadd.f32 %v2318_v20, %v2152_v51  ;;  %v1628_v11 = vsel %vm968_vm1, %v1626_v48, %v1627_v4  ;;  %v1752_v14 = vadd.f32 %v1626_v48, %v1476_v63  ;;  %v2181_v18 = vmul.f32 %v3836_v0, %v3785_v3 }
  0x44   : > { %v2747_v59 = vsel %vm2704_vm2, %v2745_v36, %v2746_v30  ;;  %v1753_v16 = vadd.f32 %v1628_v11, %v1477_v27  ;;  %v2033_v17 = vrot.slane %v1968_v7, 1  ;;  %v2034_v20 = vrot.slane %v3988_v6, 1 }
  0x45   : > { %3515 = vmatprep.mubr.f32.mxu1 %v2747_v59  ;;  %v2483_v23 = vmul.f32 %v3855_v10, %v2428_v8  ;;  %v1917_v28 = vadd.f32 %v3777_v60, %v1752_v14  ;;  %v2182_v25 = vmul.f32 %v3848_v26, %v3785_v3  ;;  %v2279_v29 = vrot.slane %v2181_v18, 2 }
  0x46   : > { %v1918_v2 = vadd.f32 %v1870_v31, %v1753_v16  ;;  %v564_v34 = vmul.f32 %v3733_v32, %v3739_v38  ;;  %v978_v5 = vsel %vm968_vm1, %v975_v61, %v3770_v55  ;;  %v2035_v22 = vsel %vm723_vm0, %v2033_v17, %v2034_v20 }
  0x47   : > { %v2538_v12 = vadd.f32 %v3871_v21, %v2483_v23  ;;  %v2129_v19 = vadd.f32 %v2033_v17, %v1917_v28  ;;  %v2280_v35 = vrot.slane %v2182_v25, 2  ;;  %v1218_v48 = vmul.f32 %v3737_v37, %v3746_v42 }
  0x48   : > { %v2130_v36 = vadd.f32 %v2035_v22, %v1918_v2  ;;  %v825_v41 = vadd.f32 %v728_v52, %v564_v34  ;;  %v1630_v51 = vsel %vm968_vm1, %v1627_v4, %v3804_v13  ;;  %v1871_v61 = vmul.f32 %v3848_v26, %v3759_v49 }
  0x49   : > { %v2586_v62 = vmax.f32 %v2538_v12, 0.0  ;;  %v2281_v32 = vsel %vm968_vm1, %v2279_v29, %v2280_v35  ;;  %v2405_v63 = vadd.f32 %v2279_v29, %v2129_v19  ;;  %v2283_v7 = vsel %vm968_vm1, %v2280_v35, %v3823_v53 }
  0x4a   : > { %v2406_v27 = vadd.f32 %v2281_v32, %v2130_v36  ;;  %v1102_v31 = vadd.f32 %v978_v5, %v825_v41  ;;  %v4014_v52 = vunpack.c.h.bf16 %v3881_v24  ;;  %v587_v4 = vmul.f32 %v3820_v47, %v3739_v38 }
  0x4b   : > { %v2634_v8 = vmin.f32 %v2586_v62, 6.0  ;;  %v2460_v11 = vmul.f32 %v3855_v10, %v2405_v63  ;;  %v677_v14 = vmul.f32 %v3820_v47, %v3741_v39  ;;  %v4024_v16 = vmul.f32 %v3825_v54, %v3741_v39 }
  0x4c   : > { %v2461_v6 = vmul.f32 %v3855_v10, %v2406_v27  ;;  %v1266_v59 = vadd.f32 %v1218_v48, %v1102_v31  ;;  %v899_v24 = vmul.f32 %v3820_v47, %v3743_v40  ;;  %v900_v28 = vmul.f32 %v3825_v54, %v3743_v40 }
  0x4d   : > { %v2748_v17 = vrot.slane %v2634_v8, 7  ;;  %v2515_v18 = vadd.f32 %v3871_v21, %v2460_v11  ;;  %v751_v23 = vrot.slane %v677_v14, 1  ;;  %v752_v29 = vrot.slane %v4024_v16, 1 }
  0x4e   : > { %v2516_v25 = vadd.f32 %v3871_v21, %v2461_v6  ;;  %v1478_v2 = vadd.f32 %v1381_v15, %v1266_v59  ;;  %v1014_v34 = vrot.slane %v899_v24, 2  ;;  %v1015_v19 = vrot.slane %v900_v28, 2 }
  0x4f   : > { %v2749_v5 = vsel %vm2704_vm2, %v2746_v30, %v2748_v17  ;;  %v2563_v12 = vmax.f32 %v2515_v18, 0.0  ;;  %v847_v22 = vadd.f32 %v751_v23, %v3755_v46  ;;  %v753_v41 = vsel %vm723_vm0, %v751_v23, %v752_v29 }
  0x50   : > { %3516 = vmatmul.mubr.f32.vlgmr.msra.gmra.mrb[0].mxu1 %v2749_v5  ;;  %v2564_v35 = vmax.f32 %v2516_v25, 0.0  ;;  %v1754_v36 = vadd.f32 %v1630_v51, %v1478_v2  ;;  %v1241_v48 = vmul.f32 %v3827_v56, %v3746_v42  ;;  %v848_v32 = vadd.f32 %v753_v41, %v587_v4 }
  0x51   : > { %v2611_v62 = vmin.f32 %v2563_v12, 6.0  ;;  %v1016_v15 = vsel %vm968_vm1, %v1014_v34, %v1015_v19  ;;  %v1124_v63 = vadd.f32 %v1014_v34, %v847_v22  ;;  %v1331_v31 = vmul.f32 %v3827_v56, %v3748_v43 }
  0x52   : > { %v4039_v27 = vmin.f32 %v2564_v35, 6.0  ;;  %v1919_v30 = vadd.f32 %v1871_v61, %v1754_v36  ;;  %v1332_v8 = vmul.f32 %v3829_v57, %v3748_v43  ;;  %v1125_v11 = vadd.f32 %v1016_v15, %v848_v32 }
  0x53   : > { %v2710_v51 = vrot.slane %v2611_v62, 7  ;;  %v1288_v14 = vadd.f32 %v3762_v50, %v1124_v63  ;;  %v1552_v6 = vmul.f32 %v3827_v56, %v3750_v44  ;;  %v1404_v16 = vrot.slane %v1331_v31, 1 }
  0x54   : > { %v2711_v4 = vrot.slane %v4039_v27, 7  ;;  %v2131_v59 = vadd.f32 %v2034_v20, %v1919_v30  ;;  %v1405_v24 = vrot.slane %v1332_v8, 1  ;;  %v1289_v17 = vadd.f32 %v1241_v48, %v1125_v11 }
  0x55   : > { %v1553_v61 = vmul.f32 %v3829_v57, %v3750_v44  ;;  %v1666_v18 = vrot.slane %v1552_v6, 2  ;;  %v1894_v23 = vmul.f32 %v3897_v58, %v3759_v49  ;;  %v1500_v34 = vadd.f32 %v1404_v16, %v1288_v14 }
  0x56   : > { %v2712_v28 = vsel %vm2704_vm2, %v2710_v51, %v2711_v4  ;;  %v2407_v25 = vadd.f32 %v2283_v7, %v2131_v59  ;;  %v1406_v2 = vsel %vm723_vm0, %v1404_v16, %v1405_v24  ;;  %v1984_v20 = vmul.f32 %v3897_v58, %v3782_v1 }
  0x57   : > { %3494 = vmatprep.mubr.f32.mxu0 %v2712_v28  ;;  %v1501_v5 = vadd.f32 %v1406_v2, %v1289_v17  ;;  %v1667_v12 = vrot.slane %v1553_v61, 2  ;;  %v4059_v22 = vmul.f32 %v4014_v52, %v3782_v1  ;;  %v1776_v36 = vadd.f32 %v1666_v18, %v1500_v34  ;;  %v3398_v61 = vld [vmem:[%s3716_s23 + $0x18] sm:$0xff]  }
  0x58   : > { %v2462_v35 = vmul.f32 %v3855_v10, %v2407_v25  ;;  %v2205_v41 = vmul.f32 %v3897_v58, %v3785_v3  ;;  %v2206_v7 = vmul.f32 %v4014_v52, %v3785_v3  ;;  %v2057_v62 = vrot.slane %v1984_v20, 1 }
  0x59   : > { %v1668_v48 = vsel %vm968_vm1, %v1666_v18, %v1667_v12  ;;  %v2058_v32 = vrot.slane %v4059_v22, 1  ;;  %v588_v15 = vmul.f32 %v3825_v54, %v3739_v38  ;;  %v1941_v30 = vadd.f32 %v3777_v60, %v1776_v36 }
  0x5a   : > { %v2517_v63 = vadd.f32 %v3871_v21, %v2462_v35  ;;  %v1777_v27 = vadd.f32 %v1668_v48, %v1501_v5  ;;  %v2319_v31 = vrot.slane %v2205_v41, 2  ;;  %v2320_v51 = vrot.slane %v2206_v7, 2 }
  0x5b   : > { %v2059_v8 = vsel %vm723_vm0, %v2057_v62, %v2058_v32  ;;  %v849_v11 = vadd.f32 %v752_v29, %v588_v15  ;;  %v1018_v14 = vsel %vm968_vm1, %v1015_v19, %v3770_v55  ;;  %v2153_v16 = vadd.f32 %v2057_v62, %v1941_v30 }
  0x5c   : > { %v2565_v6 = vmax.f32 %v2517_v63, 0.0  ;;  %v1942_v59 = vadd.f32 %v1894_v23, %v1777_v27  ;;  %v1242_v17 = vmul.f32 %v3829_v57, %v3746_v42  ;;  %v2321_v18 = vsel %vm968_vm1, %v2319_v31, %v2320_v51 }
  0x5d   : > { %v1126_v28 = vadd.f32 %v1018_v14, %v849_v11  ;;  %v1670_v25 = vsel %vm968_vm1, %v1667_v12, %v3804_v13  ;;  %v1895_v2 = vmul.f32 %v4014_v52, %v3759_v49  ;;  %v2429_v5 = vadd.f32 %v2319_v31, %v2153_v16 }
  0x5e   : > { %v2613_v29 = vmin.f32 %v2565_v6, 6.0  ;;  %v2154_v34 = vadd.f32 %v2059_v8, %v1942_v59  ;;  %v2323_v19 = vsel %vm968_vm1, %v2320_v51, %v3823_v53  ;;  %v4085_v20 = vunpack.c.l.bf16 %v3398_v61 }
  0x5f   : > { %v1290_v23 = vadd.f32 %v1242_v17, %v1126_v28  ;;  %v4087_v22 = vunpack.c.h.bf16 %v3398_v61  ;;  %v566_v35 = vmul.f32 %v3735_v33, %v3739_v38  ;;  %v2484_v12 = vmul.f32 %v3855_v10, %v2429_v5 }
  0x60   : > { %v2713_v36 = vrot.slane %v2613_v29, 7  ;;  %v2430_v41 = vadd.f32 %v2321_v18, %v2154_v34  ;;  %v663_v7 = vmul.f32 %v3735_v33, %v3741_v39  ;;  %v4096_v62 = vmul.f32 %v3737_v37, %v3741_v39 }
  0x61   : > { %v1502_v48 = vadd.f32 %v1405_v24, %v1290_v23  ;;  %v878_v15 = vmul.f32 %v3735_v33, %v3743_v40  ;;  %v879_v63 = vmul.f32 %v3737_v37, %v3743_v40  ;;  %v2539_v31 = vadd.f32 %v3871_v21, %v2484_v12 }
  0x62   : > { %v2714_v27 = vsel %vm2704_vm2, %v2711_v4, %v2713_v36  ;;  %v2485_v30 = vmul.f32 %v3855_v10, %v2430_v41  ;;  %v730_v8 = vrot.slane %v663_v7, 1  ;;  %v731_v24 = vrot.slane %v4096_v62, 1 }
  0x63   : > { %3495 = vmatmul.mubr.f32.gmra.mrb[2].mxu0 %v2714_v27  ;;  %v1778_v51 = vadd.f32 %v1670_v25, %v1502_v48  ;;  %v979_v11 = vrot.slane %v878_v15, 2  ;;  %v980_v14 = vrot.slane %v879_v63, 2  ;;  %v2587_v59 = vmax.f32 %v2539_v31, 0.0 }
  0x64   : > { %v2540_v6 = vadd.f32 %v3871_v21, %v2485_v30  ;;  %v826_v33 = vadd.f32 %v730_v8, %v3755_v46  ;;  %v1220_v16 = vmul.f32 %v3836_v0, %v3746_v42  ;;  %v732_v17 = vsel %vm723_vm0, %v730_v8, %v731_v24 }
  0x65   : > { %v1943_v4 = vadd.f32 %v1895_v2, %v1778_v51  ;;  %v981_v61 = vsel %vm968_vm1, %v979_v11, %v980_v14  ;;  %v1317_v18 = vmul.f32 %v3836_v0, %v3748_v43  ;;  %v2635_v25 = vmin.f32 %v2587_v59, 6.0 }
  0x66   : > { %v2588_v28 = vmax.f32 %v2540_v6, 0.0  ;;  %v827_v29 = vadd.f32 %v732_v17, %v566_v35  ;;  %v1103_v34 = vadd.f32 %v979_v11, %v826_v33  ;;  %v4116_v23 = vmul.f32 %v3848_v26, %v3748_v43 }
  0x67   : > { %v2155_v5 = vadd.f32 %v2058_v32, %v1943_v4  ;;  %v1383_v36 = vrot.slane %v1317_v18, 1  ;;  %v1531_v2 = vmul.f32 %v3836_v0, %v3750_v44  ;;  %v2750_v12 = vrot.slane %v2635_v25, 7 }
  0x68   : > { %v2636_v41 = vmin.f32 %v2588_v28, 6.0  ;;  %v1104_v7 = vadd.f32 %v981_v61, %v827_v29  ;;  %v1267_v48 = vadd.f32 %v3762_v50, %v1103_v34  ;;  %v1384_v15 = vrot.slane %v4116_v23, 1 }
  0x69   : > { %v2431_v62 = vadd.f32 %v2323_v19, %v2155_v5  ;;  %v1532_v35 = vmul.f32 %v3848_v26, %v3750_v44  ;;  %v1631_v32 = vrot.slane %v1531_v2, 2  ;;  %v1873_v31 = vmul.f32 %v4085_v20, %v3759_v49 }
  0x6a   : > { %v2751_v63 = vrot.slane %v2636_v41, 7  ;;  %v1268_v27 = vadd.f32 %v1220_v16, %v1104_v7  ;;  %v1479_v30 = vadd.f32 %v1383_v36, %v1267_v48  ;;  %v1385_v51 = vsel %vm723_vm0, %v1383_v36, %v1384_v15 }
  0x6b   : > { %v2486_v8 = vmul.f32 %v3855_v10, %v2431_v62  ;;  %v1632_v11 = vrot.slane %v1532_v35, 2  ;;  %v1970_v19 = vmul.f32 %v4085_v20, %v3782_v1  ;;  %v4133_v4 = vmul.f32 %v4087_v22, %v3782_v1  ;;  %v3406_v62 = vld [vmem:[%s3716_s23 + $0x58] sm:$0xff]  }
  0x6c   : > { %v2752_v6 = vsel %vm2704_vm2, %v2750_v12, %v2751_v63  ;;  %v1480_v59 = vadd.f32 %v1385_v51, %v1268_v27  ;;  %v1755_v33 = vadd.f32 %v1631_v32, %v1479_v30  ;;  %v2184_v18 = vmul.f32 %v4085_v20, %v3785_v3 }
  0x6d   : > { %3518 = vmatprep.mubr.f32.mxu1 %v2752_v6  ;;  %v2541_v16 = vadd.f32 %v3871_v21, %v2486_v8  ;;  %v1633_v17 = vsel %vm968_vm1, %v1631_v32, %v1632_v11  ;;  %v2036_v61 = vrot.slane %v1970_v19, 1  ;;  %v2037_v29 = vrot.slane %v4133_v4, 1 }
  0x6e   : > { %v1756_v28 = vadd.f32 %v1633_v17, %v1480_v59  ;;  %v1920_v25 = vadd.f32 %v3777_v60, %v1755_v33  ;;  %v2185_v34 = vmul.f32 %v4087_v22, %v3785_v3  ;;  %v2284_v23 = vrot.slane %v2184_v18, 2 }
  0x6f   : > { %v2589_v5 = vmax.f32 %v2541_v16, 0.0  ;;  %v567_v36 = vmul.f32 %v3737_v37, %v3739_v38  ;;  %v983_v2 = vsel %vm968_vm1, %v980_v14, %v3770_v55  ;;  %v2038_v12 = vsel %vm723_vm0, %v2036_v61, %v2037_v29 }
  0x70   : > { %v1921_v41 = vadd.f32 %v1873_v31, %v1756_v28  ;;  %v2132_v7 = vadd.f32 %v2036_v61, %v1920_v25  ;;  %v2285_v48 = vrot.slane %v2185_v34, 2  ;;  %v1221_v27 = vmul.f32 %v3848_v26, %v3746_v42 }
  0x71   : > { %v2637_v35 = vmin.f32 %v2589_v5, 6.0  ;;  %v828_v32 = vadd.f32 %v731_v24, %v567_v36  ;;  %v1635_v30 = vsel %vm968_vm1, %v1632_v11, %v3804_v13  ;;  %v1874_v14 = vmul.f32 %v4087_v22, %v3759_v49 }
  0x72   : > { %v2133_v8 = vadd.f32 %v2038_v12, %v1921_v41  ;;  %v2286_v37 = vsel %vm968_vm1, %v2284_v23, %v2285_v48  ;;  %v2408_v51 = vadd.f32 %v2284_v23, %v2132_v7  ;;  %v2288_v6 = vsel %vm968_vm1, %v2285_v48, %v3823_v53 }
  0x73   : > { %v2753_v31 = vrot.slane %v2637_v35, 7  ;;  %v1105_v19 = vadd.f32 %v983_v2, %v828_v32  ;;  %v4158_v59 = vunpack.c.l.bf16 %v3406_v62  ;;  %v4161_v4 = vunpack.c.h.bf16 %v3406_v62 }
  0x74   : > { %v2409_v24 = vadd.f32 %v2286_v37, %v2133_v8  ;;  %v2463_v33 = vmul.f32 %v3855_v10, %v2408_v51  ;;  %v590_v11 = vmul.f32 %v3827_v56, %v3739_v38  ;;  %v679_v61 = vmul.f32 %v3827_v56, %v3741_v39 }
  0x75   : > { %v2754_v16 = vsel %vm2704_vm2, %v2751_v63, %v2753_v31  ;;  %v1269_v17 = vadd.f32 %v1221_v27, %v1105_v19  ;;  %v4170_v18 = vmul.f32 %v3829_v57, %v3741_v39  ;;  %v902_v34 = vmul.f32 %v3827_v56, %v3743_v40 }
  0x76   : > { %3519 = vmatmul.mubr.f32.gmra.mrb[2].mxu1 %v2754_v16  ;;  %v2464_v28 = vmul.f32 %v3855_v10, %v2409_v24  ;;  %v2518_v25 = vadd.f32 %v3871_v21, %v2463_v33  ;;  %v903_v5 = vmul.f32 %v3829_v57, %v3743_v40  ;;  %v754_v23 = vrot.slane %v679_v61, 1 }
  0x77   : > { %v1481_v63 = vadd.f32 %v1384_v15, %v1269_v17  ;;  %v755_v36 = vrot.slane %v4170_v18, 1  ;;  %v1244_v2 = vmul.f32 %v3897_v58, %v3746_v42  ;;  %v1019_v7 = vrot.slane %v902_v34, 2 }
  0x78   : > { %v2519_v41 = vadd.f32 %v3871_v21, %v2464_v28  ;;  %v2566_v12 = vmax.f32 %v2518_v25, 0.0  ;;  %v1020_v48 = vrot.slane %v903_v5, 2  ;;  %v850_v56 = vadd.f32 %v754_v23, %v3755_v46 }
  0x79   : > { %v1757_v62 = vadd.f32 %v1635_v30, %v1481_v63  ;;  %v756_v35 = vsel %vm723_vm0, %v754_v23, %v755_v36  ;;  %v1333_v32 = vmul.f32 %v3897_v58, %v3748_v43  ;;  %v4189_v19 = vmul.f32 %v4014_v52, %v3748_v43 }
  0x7a   : > { %v2567_v15 = vmax.f32 %v2519_v41, 0.0  ;;  %v2614_v27 = vmin.f32 %v2566_v12, 6.0  ;;  %v851_v8 = vadd.f32 %v756_v35, %v590_v11  ;;  %v1021_v37 = vsel %vm968_vm1, %v1019_v7, %v1020_v48 }
  0x7b   : > { %v1922_v51 = vadd.f32 %v1874_v14, %v1757_v62  ;;  %v1127_v31 = vadd.f32 %v1019_v7, %v850_v56  ;;  %v1407_v24 = vrot.slane %v1333_v32, 1  ;;  %v1555_v17 = vmul.f32 %v3897_v58, %v3750_v44 }
  0x7c   : > { %v4191_v30 = vmin.f32 %v2567_v15, 6.0  ;;  %v2715_v33 = vrot.slane %v2614_v27, 7  ;;  %v1128_v16 = vadd.f32 %v1021_v37, %v851_v8  ;;  %v1408_v11 = vrot.slane %v4189_v19, 1 }
  0x7d   : > { %v2134_v61 = vadd.f32 %v2037_v29, %v1922_v51  ;;  %v1291_v18 = vadd.f32 %v3762_v50, %v1127_v31  ;;  %v1556_v14 = vmul.f32 %v4014_v52, %v3750_v44  ;;  %v1671_v34 = vrot.slane %v1555_v17, 2 }
  0x7e   : > { %v2716_v28 = vrot.slane %v4191_v30, 7  ;;  %v1292_v25 = vadd.f32 %v1244_v2, %v1128_v16  ;;  %v1897_v5 = vmul.f32 %v4158_v59, %v3759_v49  ;;  %v1409_v23 = vsel %vm723_vm0, %v1407_v24, %v1408_v11 }
  0x7f   : > { %v2410_v63 = vadd.f32 %v2288_v6, %v2134_v61  ;;  %v1503_v41 = vadd.f32 %v1407_v24, %v1291_v18  ;;  %v1672_v12 = vrot.slane %v1556_v14, 2  ;;  %v1986_v62 = vmul.f32 %v4158_v59, %v3782_v1 }
  0x80   : > { %v2717_v29 = vsel %vm2704_vm2, %v2715_v33, %v2716_v28  ;;  %v1504_v7 = vadd.f32 %v1409_v23, %v1292_v25  ;;  %v4208_v35 = vmul.f32 %v4161_v4, %v3782_v1  ;;  %v2208_v32 = vmul.f32 %v4158_v59, %v3785_v3 }
  0x81   : > { %3497 = vmatprep.mubr.f32.mxu0 %v2717_v29  ;;  %v2465_v2 = vmul.f32 %v3855_v10, %v2410_v63  ;;  %v1673_v56 = vsel %vm968_vm1, %v1671_v34, %v1672_v12  ;;  %v1779_v6 = vadd.f32 %v1671_v34, %v1503_v41  ;;  %v2060_v27 = vrot.slane %v1986_v62, 1  ;;  %v3399_v34 = vld [vmem:[%s3716_s23 + $0x20] sm:$0xff]  }
  0x82   : > { %v1780_v15 = vadd.f32 %v1673_v56, %v1504_v7  ;;  %v2061_v8 = vrot.slane %v4208_v35, 1  ;;  %v2209_v37 = vmul.f32 %v4161_v4, %v3785_v3  ;;  %v2324_v19 = vrot.slane %v2208_v32, 2 }
  0x83   : > { %v2520_v51 = vadd.f32 %v3871_v21, %v2465_v2  ;;  %v1944_v31 = vadd.f32 %v3777_v60, %v1779_v6  ;;  %v591_v24 = vmul.f32 %v3829_v57, %v3739_v38  ;;  %v1023_v17 = vsel %vm968_vm1, %v1020_v48, %v3770_v55 }
  0x84   : > { %v1945_v30 = vadd.f32 %v1897_v5, %v1780_v15  ;;  %v2062_v33 = vsel %vm723_vm0, %v2060_v27, %v2061_v8  ;;  %v2325_v16 = vrot.slane %v2209_v37, 2  ;;  %v1245_v25 = vmul.f32 %v4014_v52, %v3746_v42 }
  0x85   : > { %v2568_v61 = vmax.f32 %v2520_v51, 0.0  ;;  %v2156_v18 = vadd.f32 %v2060_v27, %v1944_v31  ;;  %v852_v14 = vadd.f32 %v755_v36, %v591_v24  ;;  %v1675_v57 = vsel %vm968_vm1, %v1672_v12, %v3804_v13 }
  0x86   : > { %v2157_v63 = vadd.f32 %v2062_v33, %v1945_v30  ;;  %v2326_v23 = vsel %vm968_vm1, %v2324_v19, %v2325_v16  ;;  %v1898_v5 = vmul.f32 %v4161_v4, %v3759_v49  ;;  %v2328_v48 = vsel %vm968_vm1, %v2325_v16, %v3823_v53 }
  0x87   : > { %v2616_v41 = vmin.f32 %v2568_v61, 6.0  ;;  %v2432_v29 = vadd.f32 %v2324_v19, %v2156_v18  ;;  %v1129_v7 = vadd.f32 %v1023_v17, %v852_v14  ;;  %v4234_v62 = vunpack.c.l.bf16 %v3399_v34 }
  0x88   : > { %v2433_v36 = vadd.f32 %v2326_v23, %v2157_v63  ;;  %v4236_v35 = vunpack.c.h.bf16 %v3399_v34  ;;  %v569_v2 = vmul.f32 %v3836_v0, %v3739_v38  ;;  %v665_v32 = vmul.f32 %v3836_v0, %v3741_v39 }
  0x89   : > { %v2718_v56 = vrot.slane %v2616_v41, 7  ;;  %v2487_v12 = vmul.f32 %v3855_v10, %v2432_v29  ;;  %v1293_v6 = vadd.f32 %v1245_v25, %v1129_v7  ;;  %v4246_v27 = vmul.f32 %v3848_v26, %v3741_v39 }
  0x8a   : > { %v2488_v15 = vmul.f32 %v3855_v10, %v2433_v36  ;;  %v881_v37 = vmul.f32 %v3836_v0, %v3743_v40  ;;  %v882_v51 = vmul.f32 %v3848_v26, %v3743_v40  ;;  %v733_v30 = vrot.slane %v665_v32, 1 }
  0x8b   : > { %v2719_v31 = vsel %vm2704_vm2, %v2716_v28, %v2718_v56  ;;  %v2542_v19 = vadd.f32 %v3871_v21, %v2487_v12  ;;  %v1505_v24 = vadd.f32 %v1408_v11, %v1293_v6  ;;  %v734_v16 = vrot.slane %v4246_v27, 1 }
  0x8c   : > { %3498 = vmatmul.mubr.f32.gmra.mrb[4].mxu0 %v2719_v31  ;;  %v2543_v33 = vadd.f32 %v3871_v21, %v2488_v15  ;;  %v984_v17 = vrot.slane %v881_v37, 2  ;;  %v985_v61 = vrot.slane %v882_v51, 2  ;;  %v829_v0 = vadd.f32 %v733_v30, %v3755_v46 }
  0x8d   : > { %v2590_v18 = vmax.f32 %v2542_v19, 0.0  ;;  %v1781_v14 = vadd.f32 %v1675_v57, %v1505_v24  ;;  %v1223_v25 = vmul.f32 %v4085_v20, %v3746_v42  ;;  %v735_v28 = vsel %vm723_vm0, %v733_v30, %v734_v16 }
  0x8e   : > { %v2591_v34 = vmax.f32 %v2543_v33, 0.0  ;;  %v986_v11 = vsel %vm968_vm1, %v984_v17, %v985_v61  ;;  %v1319_v63 = vmul.f32 %v4085_v20, %v3748_v43  ;;  %v830_v29 = vadd.f32 %v735_v28, %v569_v2 }
  0x8f   : > { %v2638_v23 = vmin.f32 %v2590_v18, 6.0  ;;  %v1946_v41 = vadd.f32 %v1898_v5, %v1781_v14  ;;  %v1106_v7 = vadd.f32 %v984_v17, %v829_v0  ;;  %v4267_v57 = vmul.f32 %v4087_v22, %v3748_v43 }
  0x90   : > { %v4263_v36 = vmin.f32 %v2591_v34, 6.0  ;;  %v1386_v56 = vrot.slane %v1319_v63, 1  ;;  %v1534_v12 = vmul.f32 %v4085_v20, %v3750_v44  ;;  %v1107_v15 = vadd.f32 %v986_v11, %v830_v29 }
  0x91   : > { %v2755_v6 = vrot.slane %v2638_v23, 7  ;;  %v2158_v32 = vadd.f32 %v2061_v8, %v1946_v41  ;;  %v1270_v27 = vadd.f32 %v3762_v50, %v1106_v7  ;;  %v1387_v5 = vrot.slane %v4267_v57, 1 }
  0x92   : > { %v2756_v37 = vrot.slane %v4263_v36, 7  ;;  %v1535_v2 = vmul.f32 %v4087_v22, %v3750_v44  ;;  %v1636_v51 = vrot.slane %v1534_v12, 2  ;;  %v1271_v19 = vadd.f32 %v1223_v25, %v1107_v15 }
  0x93   : > { %v2434_v31 = vadd.f32 %v2328_v48, %v2158_v32  ;;  %v1482_v24 = vadd.f32 %v1386_v56, %v1270_v27  ;;  %v1876_v30 = vmul.f32 %v4234_v62, %v3759_v49  ;;  %v1388_v8 = vsel %vm723_vm0, %v1386_v56, %v1387_v5 }
  0x94   : > { %v2757_v33 = vsel %vm2704_vm2, %v2755_v6, %v2756_v37  ;;  %v1637_v17 = vrot.slane %v1535_v2, 2  ;;  %v1972_v18 = vmul.f32 %v4234_v62, %v3782_v1  ;;  %v1483_v0 = vadd.f32 %v1388_v8, %v1271_v19  ;;  %v3407_v2 = vld [vmem:[%s3716_s23 + $0x60] sm:$0xff]  }
  0x95   : > { %3521 = vmatprep.mubr.f32.mxu1 %v2757_v33  ;;  %v2489_v14 = vmul.f32 %v3855_v10, %v2434_v31  ;;  %v1758_v34 = vadd.f32 %v1636_v51, %v1482_v24  ;;  %v4285_v48 = vmul.f32 %v4236_v35, %v3782_v1  ;;  %v2187_v11 = vmul.f32 %v4234_v62, %v3785_v3 }
  0x96   : > { %v1638_v25 = vsel %vm968_vm1, %v1636_v51, %v1637_v17  ;;  %v2039_v28 = vrot.slane %v1972_v18, 1  ;;  %v2188_v63 = vmul.f32 %v4236_v35, %v3785_v3  ;;  %v570_v56 = vmul.f32 %v3848_v26, %v3739_v38 }
  0x97   : > { %v2544_v23 = vadd.f32 %v3871_v21, %v2489_v14  ;;  %v1759_v41 = vadd.f32 %v1638_v25, %v1483_v0  ;;  %v1923_v29 = vadd.f32 %v3777_v60, %v1758_v34  ;;  %v2040_v7 = vrot.slane %v4285_v48, 1 }
  0x98   : > { %v2289_v36 = vrot.slane %v2187_v11, 2  ;;  %v2290_v57 = vrot.slane %v2188_v63, 2  ;;  %v988_v12 = vsel %vm968_vm1, %v985_v61, %v3770_v55  ;;  %v831_v31 = vadd.f32 %v734_v16, %v570_v56 }
  0x99   : > { %v2592_v6 = vmax.f32 %v2544_v23, 0.0  ;;  %v1924_v32 = vadd.f32 %v1876_v30, %v1759_v41  ;;  %v2041_v15 = vsel %vm723_vm0, %v2039_v28, %v2040_v7  ;;  %v2135_v27 = vadd.f32 %v2039_v28, %v1923_v29 }
  0x9a   : > { %v2291_v51 = vsel %vm968_vm1, %v2289_v36, %v2290_v57  ;;  %v1224_v19 = vmul.f32 %v4087_v22, %v3746_v42  ;;  %v1640_v24 = vsel %vm968_vm1, %v1637_v17, %v3804_v13  ;;  %v1877_v61 = vmul.f32 %v4236_v35, %v3759_v49 }
  0x9b   : > { %v2640_v33 = vmin.f32 %v2592_v6, 6.0  ;;  %v2136_v26 = vadd.f32 %v2041_v15, %v1924_v32  ;;  %v2411_v8 = vadd.f32 %v2289_v36, %v2135_v27  ;;  %v1108_v30 = vadd.f32 %v988_v12, %v831_v31 }
  0x9c   : > { %v2293_v18 = vsel %vm968_vm1, %v2290_v57, %v3823_v53  ;;  %v4310_v14 = vunpack.c.l.bf16 %v3407_v2  ;;  %v4312_v0 = vunpack.c.h.bf16 %v3407_v2  ;;  %v593_v17 = vmul.f32 %v3897_v58, %v3739_v38 }
  0x9d   : > { %v2758_v16 = vrot.slane %v2640_v33, 7  ;;  %v2412_v34 = vadd.f32 %v2291_v51, %v2136_v26  ;;  %v2466_v48 = vmul.f32 %v3855_v10, %v2411_v8  ;;  %v1272_v25 = vadd.f32 %v1224_v19, %v1108_v30  ;;  %v4329_v10 = vld [vmem:[%s5180_s2] ss:$0 sm:$0xff] }
  0x9e   : > { %v681_v28 = vmul.f32 %v3897_v58, %v3741_v39  ;;  %v4321_v11 = vmul.f32 %v4014_v52, %v3741_v39  ;;  %v905_v63 = vmul.f32 %v3897_v58, %v3743_v40  ;;  %v906_v36 = vmul.f32 %v4014_v52, %v3743_v40 }
  0x9f   : > { %v2759_v23 = vsel %vm2704_vm2, %v2756_v37, %v2758_v16  ;;  %v2467_v41 = vmul.f32 %v4329_v10, %v2412_v34  ;;  %v2521_v29 = vadd.f32 %v3871_v21, %v2466_v48  ;;  %v1484_v57 = vadd.f32 %v1387_v5, %v1272_v25 }
  0xa0   : > { %3522 = vmatmul.mubr.f32.gmra.mrb[4].mxu1 %v2759_v23  ;;  %v757_v56 = vrot.slane %v681_v28, 1  ;;  %v758_v12 = vrot.slane %v4321_v11, 1  ;;  %v1024_v58 = vrot.slane %v905_v63, 2  ;;  %v1025_v32 = vrot.slane %v906_v36, 2 }
  0xa1   : > { %v2522_v37 = vadd.f32 %v3871_v21, %v2467_v41  ;;  %v2569_v6 = vmax.f32 %v2521_v29, 0.0  ;;  %v1247_v15 = vmul.f32 %v4158_v59, %v3746_v42  ;;  %v1760_v27 = vadd.f32 %v1640_v24, %v1484_v57 }
  0xa2   : > { %v759_v2 = vsel %vm723_vm0, %v757_v56, %v758_v12  ;;  %v853_v51 = vadd.f32 %v757_v56, %v3755_v46  ;;  %v1335_v31 = vmul.f32 %v4158_v59, %v3748_v43  ;;  %v1026_v26 = vsel %vm968_vm1, %v1024_v58, %v1025_v32 }
  0xa3   : > { %v2570_v5 = vmax.f32 %v2522_v37, 0.0  ;;  %v2617_v19 = vmin.f32 %v2569_v6, 6.0  ;;  %v854_v33 = vadd.f32 %v759_v2, %v593_v17  ;;  %v1925_v8 = vadd.f32 %v1877_v61, %v1760_v27 }
  0xa4   : > { %v1130_v21 = vadd.f32 %v1024_v58, %v853_v51  ;;  %v4346_v30 = vmul.f32 %v4161_v4, %v3748_v43  ;;  %v1410_v16 = vrot.slane %v1335_v31, 1  ;;  %v1558_v25 = vmul.f32 %v4158_v59, %v3750_v44 }
  0xa5   : > { %v4348_v24 = vmin.f32 %v2570_v5, 6.0  ;;  %v2720_v34 = vrot.slane %v2617_v19, 7  ;;  %v1131_v48 = vadd.f32 %v1026_v26, %v854_v33  ;;  %v2137_v28 = vadd.f32 %v2040_v7, %v1925_v8  ;;  %v4377_v26 = vld [vmem:[%s5181_s3] ss:$0 sm:$0xff] }
  0xa6   : > { %v1294_v11 = vadd.f32 %v3762_v50, %v1130_v21  ;;  %v1411_v17 = vrot.slane %v4346_v30, 1  ;;  %v1559_v61 = vmul.f32 %v4161_v4, %v3750_v44  ;;  %v1676_v41 = vrot.slane %v1558_v25, 2 }
  0xa7   : > { %v2721_v63 = vrot.slane %v4348_v24, 7  ;;  %v1295_v23 = vadd.f32 %v1247_v15, %v1131_v48  ;;  %v1900_v29 = vmul.f32 %v4310_v14, %v3759_v49  ;;  %v2413_v36 = vadd.f32 %v2293_v18, %v2137_v28 }
  0xa8   : > { %v1412_v57 = vsel %vm723_vm0, %v1410_v16, %v1411_v17  ;;  %v1506_v56 = vadd.f32 %v1410_v16, %v1294_v11  ;;  %v1677_v58 = vrot.slane %v1559_v61, 2  ;;  %v1988_v6 = vmul.f32 %v4310_v14, %v3782_v1 }
  0xa9   : > { %v2722_v7 = vsel %vm2704_vm2, %v2720_v34, %v2721_v63  ;;  %v1507_v37 = vadd.f32 %v1412_v57, %v1295_v23  ;;  %v4365_v27 = vmul.f32 %v4312_v0, %v3782_v1  ;;  %v2468_v15 = vmul.f32 %v4329_v10, %v2413_v36 }
  0xaa   : > { %3500 = vmatprep.mubr.f32.mxu0 %v2722_v7  ;;  %v1678_v2 = vsel %vm968_vm1, %v1676_v41, %v1677_v58  ;;  %v1782_v18 = vadd.f32 %v1676_v41, %v1506_v56  ;;  %v2211_v51 = vmul.f32 %v4310_v14, %v3785_v3  ;;  %v2063_v5 = vrot.slane %v1988_v6, 1  ;;  %v3400_v41 = vld [vmem:[%s3716_s23 + $0x28] sm:$0xff]  }
  0xab   : > { %v1783_v31 = vadd.f32 %v1678_v2, %v1507_v37  ;;  %v2064_v19 = vrot.slane %v4365_v27, 1  ;;  %v2212_v33 = vmul.f32 %v4312_v0, %v3785_v3  ;;  %v2523_v8 = vadd.f32 %v4377_v26, %v2468_v15 }
  0xac   : > { %v1947_v21 = vadd.f32 %v3777_v60, %v1782_v18  ;;  %v2329_v30 = vrot.slane %v2211_v51, 2  ;;  %v594_v16 = vmul.f32 %v4014_v52, %v3739_v38  ;;  %v1028_v25 = vsel %vm968_vm1, %v1025_v32, %v3770_v55 }
  0xad   : > { %v1948_v24 = vadd.f32 %v1900_v29, %v1783_v31  ;;  %v2065_v34 = vsel %vm723_vm0, %v2063_v5, %v2064_v19  ;;  %v2330_v48 = vrot.slane %v2212_v33, 2  ;;  %v2571_v28 = vmax.f32 %v2523_v8, 0.0 }
  0xae   : > { %v2159_v11 = vadd.f32 %v2063_v5, %v1947_v21  ;;  %v855_v61 = vadd.f32 %v758_v12, %v594_v16  ;;  %v1248_v23 = vmul.f32 %v4161_v4, %v3746_v42  ;;  %v1680_v52 = vsel %vm968_vm1, %v1677_v58, %v3804_v13 }
  0xaf   : > { %v2160_v36 = vadd.f32 %v2065_v34, %v1948_v24  ;;  %v2331_v57 = vsel %vm968_vm1, %v2329_v30, %v2330_v48  ;;  %v1901_v29 = vmul.f32 %v4312_v0, %v3759_v49  ;;  %v2619_v56 = vmin.f32 %v2571_v28, 6.0 }
  0xb0   : > { %v2435_v7 = vadd.f32 %v2329_v30, %v2159_v11  ;;  %v1132_v37 = vadd.f32 %v1028_v25, %v855_v61  ;;  %v2333_v32 = vsel %vm968_vm1, %v2330_v48, %v3823_v53  ;;  %v4396_v6 = vunpack.c.l.bf16 %v3400_v41 }
  0xb1   : > { %v2436_v12 = vadd.f32 %v2331_v57, %v2160_v36  ;;  %v4398_v27 = vunpack.c.h.bf16 %v3400_v41  ;;  %v572_v15 = vmul.f32 %v4085_v20, %v3739_v38  ;;  %v2723_v2 = vrot.slane %v2619_v56, 7 }
  0xb2   : > { %v2490_v58 = vmul.f32 %v4329_v10, %v2435_v7  ;;  %v1296_v18 = vadd.f32 %v1248_v23, %v1132_v37  ;;  %v667_v51 = vmul.f32 %v4085_v20, %v3741_v39  ;;  %v4408_v5 = vmul.f32 %v4087_v22, %v3741_v39 }
  0xb3   : > { %v2491_v31 = vmul.f32 %v4329_v10, %v2436_v12  ;;  %v884_v33 = vmul.f32 %v4085_v20, %v3743_v40  ;;  %v885_v8 = vmul.f32 %v4087_v22, %v3743_v40  ;;  %v2724_v21 = vsel %vm2704_vm2, %v2721_v63, %v2723_v2 }
  0xb4   : > { %v2545_v30 = vadd.f32 %v4377_v26, %v2490_v58  ;;  %v1508_v16 = vadd.f32 %v1411_v17, %v1296_v18  ;;  %v736_v24 = vrot.slane %v667_v51, 1  ;;  %3501 = vmatmul.mubr.f32.gmra.mrb[6].mxu0 %v2724_v21  ;;  %v737_v48 = vrot.slane %v4408_v5, 1 }
  0xb5   : > { %v2546_v34 = vadd.f32 %v4377_v26, %v2491_v31  ;;  %v989_v25 = vrot.slane %v884_v33, 2  ;;  %v990_v28 = vrot.slane %v885_v8, 2  ;;  %v1226_v23 = vmul.f32 %v4234_v62, %v3746_v42 }
  0xb6   : > { %v2593_v11 = vmax.f32 %v2545_v30, 0.0  ;;  %v1784_v61 = vadd.f32 %v1680_v52, %v1508_v16  ;;  %v832_v20 = vadd.f32 %v736_v24, %v3755_v46  ;;  %v738_v63 = vsel %vm723_vm0, %v736_v24, %v737_v48 }
  0xb7   : > { %v2594_v41 = vmax.f32 %v2546_v34, 0.0  ;;  %v991_v17 = vsel %vm968_vm1, %v989_v25, %v990_v28  ;;  %v1321_v36 = vmul.f32 %v4234_v62, %v3748_v43  ;;  %v833_v7 = vadd.f32 %v738_v63, %v572_v15 }
  0xb8   : > { %v2641_v57 = vmin.f32 %v2593_v11, 6.0  ;;  %v1949_v56 = vadd.f32 %v1901_v29, %v1784_v61  ;;  %v1109_v37 = vadd.f32 %v989_v25, %v832_v20  ;;  %v4429_v52 = vmul.f32 %v4236_v35, %v3748_v43 }
  0xb9   : > { %v4425_v12 = vmin.f32 %v2594_v41, 6.0  ;;  %v1389_v2 = vrot.slane %v1321_v36, 1  ;;  %v1537_v58 = vmul.f32 %v4234_v62, %v3750_v44  ;;  %v1110_v31 = vadd.f32 %v991_v17, %v833_v7 }
  0xba   : > { %v2760_v18 = vrot.slane %v2641_v57, 7  ;;  %v2161_v51 = vadd.f32 %v2064_v19, %v1949_v56  ;;  %v1273_v5 = vadd.f32 %v3762_v50, %v1109_v37  ;;  %v1390_v29 = vrot.slane %v4429_v52, 1 }
  0xbb   : > { %v2761_v33 = vrot.slane %v4425_v12, 7  ;;  %v1538_v15 = vmul.f32 %v4236_v35, %v3750_v44  ;;  %v1641_v8 = vrot.slane %v1537_v58, 2  ;;  %v1274_v30 = vadd.f32 %v1226_v23, %v1110_v31 }
  0xbc   : > { %v2437_v21 = vadd.f32 %v2333_v32, %v2161_v51  ;;  %v1485_v16 = vadd.f32 %v1389_v2, %v1273_v5  ;;  %v1879_v24 = vmul.f32 %v4396_v6, %v3759_v49  ;;  %v1391_v19 = vsel %vm723_vm0, %v1389_v2, %v1390_v29 }
  0xbd   : > { %v2762_v34 = vsel %vm2704_vm2, %v2760_v18, %v2761_v33  ;;  %v1642_v25 = vrot.slane %v1538_v15, 2  ;;  %v1974_v11 = vmul.f32 %v4396_v6, %v3782_v1  ;;  %v1486_v20 = vadd.f32 %v1391_v19, %v1274_v30  ;;  %v3408_v15 = vld [vmem:[%s3716_s23 + $0x68] sm:$0xff]  }
  0xbe   : > { %3524 = vmatprep.mubr.f32.mxu1 %v2762_v34  ;;  %v2492_v61 = vmul.f32 %v4329_v10, %v2437_v21  ;;  %v1761_v41 = vadd.f32 %v1641_v8, %v1485_v16  ;;  %v4447_v32 = vmul.f32 %v4398_v27, %v3782_v1  ;;  %v2190_v17 = vmul.f32 %v4396_v6, %v3785_v3 }
  0xbf   : > { %v1643_v23 = vsel %vm968_vm1, %v1641_v8, %v1642_v25  ;;  %v2042_v63 = vrot.slane %v1974_v11, 1  ;;  %v2191_v36 = vmul.f32 %v4398_v27, %v3785_v3  ;;  %v573_v2 = vmul.f32 %v4087_v22, %v3739_v38 }
  0xc0   : > { %v2547_v57 = vadd.f32 %v4377_v26, %v2492_v61  ;;  %v1762_v56 = vadd.f32 %v1643_v23, %v1486_v20  ;;  %v1926_v7 = vadd.f32 %v3777_v60, %v1761_v41  ;;  %v2043_v37 = vrot.slane %v4447_v32, 1 }
  0xc1   : > { %v2294_v12 = vrot.slane %v2190_v17, 2  ;;  %v2295_v52 = vrot.slane %v2191_v36, 2  ;;  %v993_v58 = vsel %vm968_vm1, %v990_v28, %v3770_v55  ;;  %v834_v21 = vadd.f32 %v737_v48, %v573_v2 }
  0xc2   : > { %v2595_v18 = vmax.f32 %v2547_v57, 0.0  ;;  %v1927_v51 = vadd.f32 %v1879_v24, %v1762_v56  ;;  %v2044_v31 = vsel %vm723_vm0, %v2042_v63, %v2043_v37  ;;  %v2138_v5 = vadd.f32 %v2042_v63, %v1926_v7 }
  0xc3   : > { %v2296_v8 = vsel %vm968_vm1, %v2294_v12, %v2295_v52  ;;  %v1227_v30 = vmul.f32 %v4236_v35, %v3746_v42  ;;  %v1645_v16 = vsel %vm968_vm1, %v1642_v25, %v3804_v13  ;;  %v1880_v28 = vmul.f32 %v4398_v27, %v3759_v49 }
  0xc4   : > { %v2643_v34 = vmin.f32 %v2595_v18, 6.0  ;;  %v2139_v22 = vadd.f32 %v2044_v31, %v1927_v51  ;;  %v2414_v19 = vadd.f32 %v2294_v12, %v2138_v5  ;;  %v1111_v24 = vadd.f32 %v993_v58, %v834_v21 }
  0xc5   : > { %v2298_v11 = vsel %vm968_vm1, %v2295_v52, %v3823_v53  ;;  %v4472_v61 = vunpack.c.l.bf16 %v3408_v15  ;;  %v4474_v20 = vunpack.c.h.bf16 %v3408_v15  ;;  %v596_v25 = vmul.f32 %v4158_v59, %v3739_v38 }
  0xc6   : > { %v2763_v48 = vrot.slane %v2643_v34, 7  ;;  %v2415_v41 = vadd.f32 %v2296_v8, %v2139_v22  ;;  %v2469_v32 = vmul.f32 %v4329_v10, %v2414_v19  ;;  %v1275_v23 = vadd.f32 %v1227_v30, %v1111_v24 }
  0xc7   : > { %v683_v63 = vmul.f32 %v4158_v59, %v3741_v39  ;;  %v4483_v17 = vmul.f32 %v4161_v4, %v3741_v39  ;;  %v908_v36 = vmul.f32 %v4158_v59, %v3743_v40  ;;  %v909_v12 = vmul.f32 %v4161_v4, %v3743_v40 }
  0xc8   : > { %v2764_v57 = vsel %vm2704_vm2, %v2761_v33, %v2763_v48  ;;  %v2470_v56 = vmul.f32 %v4329_v10, %v2415_v41  ;;  %v2524_v7 = vadd.f32 %v4377_v26, %v2469_v32  ;;  %v1487_v52 = vadd.f32 %v1390_v29, %v1275_v23 }
  0xc9   : > { %3525 = vmatmul.mubr.f32.gmra.mrb[6].mxu1 %v2764_v57  ;;  %v760_v2 = vrot.slane %v683_v63, 1  ;;  %v761_v58 = vrot.slane %v4483_v17, 1  ;;  %v1029_v18 = vrot.slane %v908_v36, 2  ;;  %v1030_v5 = vrot.slane %v909_v12, 2 }
  0xca   : > { %v2525_v51 = vadd.f32 %v4377_v26, %v2470_v56  ;;  %v2572_v31 = vmax.f32 %v2524_v7, 0.0  ;;  %v1250_v59 = vmul.f32 %v4310_v14, %v3746_v42  ;;  %v1763_v33 = vadd.f32 %v1645_v16, %v1487_v52 }
  0xcb   : > { %v762_v15 = vsel %vm723_vm0, %v760_v2, %v761_v58  ;;  %v856_v8 = vadd.f32 %v760_v2, %v3755_v46  ;;  %v1337_v21 = vmul.f32 %v4310_v14, %v3748_v43  ;;  %v1031_v22 = vsel %vm968_vm1, %v1029_v18, %v1030_v5 }
  0xcc   : > { %v2573_v29 = vmax.f32 %v2525_v51, 0.0  ;;  %v2620_v30 = vmin.f32 %v2572_v31, 6.0  ;;  %v857_v34 = vadd.f32 %v762_v15, %v596_v25  ;;  %v1928_v19 = vadd.f32 %v1880_v28, %v1763_v33 }
  0xcd   : > { %v1133_v24 = vadd.f32 %v1029_v18, %v856_v8  ;;  %v4503_v48 = vmul.f32 %v4312_v0, %v3748_v43  ;;  %v1413_v41 = vrot.slane %v1337_v21, 1  ;;  %v1561_v63 = vmul.f32 %v4310_v14, %v3750_v44 }
  0xce   : > { %v4505_v16 = vmin.f32 %v2573_v29, 6.0  ;;  %v2725_v32 = vrot.slane %v2620_v30, 7  ;;  %v1134_v23 = vadd.f32 %v1031_v22, %v857_v34  ;;  %v2140_v17 = vadd.f32 %v2043_v37, %v1928_v19 }
  0xcf   : > { %v1297_v36 = vadd.f32 %v3762_v50, %v1133_v24  ;;  %v1414_v25 = vrot.slane %v4503_v48, 1  ;;  %v1562_v28 = vmul.f32 %v4312_v0, %v3750_v44  ;;  %v1681_v7 = vrot.slane %v1561_v63, 2 }
  0xd0   : > { %v2726_v57 = vrot.slane %v4505_v16, 7  ;;  %v1298_v56 = vadd.f32 %v1250_v59, %v1134_v23  ;;  %v1903_v12 = vmul.f32 %v4472_v61, %v3759_v49  ;;  %v2416_v52 = vadd.f32 %v2298_v11, %v2140_v17 }
  0xd1   : > { %v1415_v2 = vsel %vm723_vm0, %v1413_v41, %v1414_v25  ;;  %v1509_v18 = vadd.f32 %v1413_v41, %v1297_v36  ;;  %v1682_v51 = vrot.slane %v1562_v28, 2  ;;  %v1990_v33 = vmul.f32 %v4472_v61, %v3782_v1 }
  0xd2   : > { %v2727_v37 = vsel %vm2704_vm2, %v2725_v32, %v2726_v57  ;;  %v1510_v31 = vadd.f32 %v1415_v2, %v1298_v56  ;;  %v4522_v15 = vmul.f32 %v4474_v20, %v3782_v1  ;;  %v2471_v59 = vmul.f32 %v4329_v10, %v2416_v52 }
  0xd3   : > { %3503 = vmatprep.mubr.f32.mxu0 %v2727_v37  ;;  %v1683_v8 = vsel %vm968_vm1, %v1681_v7, %v1682_v51  ;;  %v1785_v11 = vadd.f32 %v1681_v7, %v1509_v18  ;;  %v2214_v21 = vmul.f32 %v4472_v61, %v3785_v3  ;;  %v2066_v30 = vrot.slane %v1990_v33, 1  ;;  %v3401_v7 = vld [vmem:[%s3716_s23 + $0x30] sm:$0xff]  }
  0xd4   : > { %v1786_v29 = vadd.f32 %v1683_v8, %v1510_v31  ;;  %v2067_v34 = vrot.slane %v4522_v15, 1  ;;  %v2215_v22 = vmul.f32 %v4474_v20, %v3785_v3  ;;  %v2526_v19 = vadd.f32 %v4377_v26, %v2471_v59 }
  0xd5   : > { %v1950_v24 = vadd.f32 %v3777_v60, %v1785_v11  ;;  %v2334_v48 = vrot.slane %v2214_v21, 2  ;;  %v597_v41 = vmul.f32 %v4161_v4, %v3739_v38  ;;  %v1033_v63 = vsel %vm968_vm1, %v1030_v5, %v3770_v55 }
  0xd6   : > { %v1951_v16 = vadd.f32 %v1903_v12, %v1786_v29  ;;  %v2068_v32 = vsel %vm723_vm0, %v2066_v30, %v2067_v34  ;;  %v2335_v23 = vrot.slane %v2215_v22, 2  ;;  %v2574_v17 = vmax.f32 %v2526_v19, 0.0 }
  0xd7   : > { %v2162_v36 = vadd.f32 %v2066_v30, %v1950_v24  ;;  %v858_v28 = vadd.f32 %v761_v58, %v597_v41  ;;  %v1251_v56 = vmul.f32 %v4312_v0, %v3746_v42  ;;  %v1685_v4 = vsel %vm968_vm1, %v1682_v51, %v3804_v13 }
  0xd8   : > { %v2163_v52 = vadd.f32 %v2068_v32, %v1951_v16  ;;  %v2336_v2 = vsel %vm968_vm1, %v2334_v48, %v2335_v23  ;;  %v1904_v12 = vmul.f32 %v4474_v20, %v3759_v49  ;;  %v2622_v18 = vmin.f32 %v2574_v17, 6.0 }
  0xd9   : > { %v2438_v37 = vadd.f32 %v2334_v48, %v2162_v36  ;;  %v1135_v31 = vadd.f32 %v1033_v63, %v858_v28  ;;  %v2338_v5 = vsel %vm968_vm1, %v2335_v23, %v3823_v53  ;;  %v4548_v33 = vunpack.c.l.bf16 %v3401_v7 }
  0xda   : > { %v2439_v58 = vadd.f32 %v2336_v2, %v2163_v52  ;;  %v4550_v15 = vunpack.c.h.bf16 %v3401_v7  ;;  %v575_v59 = vmul.f32 %v4234_v62, %v3739_v38  ;;  %v2728_v8 = vrot.slane %v2622_v18, 7 }
  0xdb   : > { %v2493_v51 = vmul.f32 %v4329_v10, %v2438_v37  ;;  %v1299_v11 = vadd.f32 %v1251_v56, %v1135_v31  ;;  %v669_v21 = vmul.f32 %v4234_v62, %v3741_v39  ;;  %v4560_v30 = vmul.f32 %v4236_v35, %v3741_v39 }
  0xdc   : > { %v2494_v29 = vmul.f32 %v4329_v10, %v2439_v58  ;;  %v887_v22 = vmul.f32 %v4234_v62, %v3743_v40  ;;  %v888_v19 = vmul.f32 %v4236_v35, %v3743_v40  ;;  %v2729_v24 = vsel %vm2704_vm2, %v2726_v57, %v2728_v8 }
  0xdd   : > { %v2548_v48 = vadd.f32 %v4377_v26, %v2493_v51  ;;  %v1511_v41 = vadd.f32 %v1414_v25, %v1299_v11  ;;  %v739_v16 = vrot.slane %v669_v21, 1  ;;  %3504 = vmatmul.mubr.f32.gmra.mrb[8].mxu0 %v2729_v24  ;;  %v740_v23 = vrot.slane %v4560_v30, 1 }
  0xde   : > { %v2549_v32 = vadd.f32 %v4377_v26, %v2494_v29  ;;  %v994_v63 = vrot.slane %v887_v22, 2  ;;  %v995_v17 = vrot.slane %v888_v19, 2  ;;  %v1229_v56 = vmul.f32 %v4396_v6, %v3746_v42 }
  0xdf   : > { %v2596_v36 = vmax.f32 %v2548_v48, 0.0  ;;  %v1787_v28 = vadd.f32 %v1685_v4, %v1511_v41  ;;  %v835_v62 = vadd.f32 %v739_v16, %v3755_v46  ;;  %v741_v57 = vsel %vm723_vm0, %v739_v16, %v740_v23 }
  0xe0   : > { %v2597_v7 = vmax.f32 %v2549_v32, 0.0  ;;  %v996_v25 = vsel %vm968_vm1, %v994_v63, %v995_v17  ;;  %v1323_v52 = vmul.f32 %v4396_v6, %v3748_v43  ;;  %v836_v37 = vadd.f32 %v741_v57, %v575_v59 }
  0xe1   : > { %v2644_v2 = vmin.f32 %v2596_v36, 6.0  ;;  %v1952_v18 = vadd.f32 %v1904_v12, %v1787_v28  ;;  %v1112_v31 = vadd.f32 %v994_v63, %v835_v62  ;;  %v4581_v4 = vmul.f32 %v4398_v27, %v3748_v43 }
  0xe2   : > { %v4577_v58 = vmin.f32 %v2597_v7, 6.0  ;;  %v1392_v8 = vrot.slane %v1323_v52, 1  ;;  %v1540_v51 = vmul.f32 %v4396_v6, %v3750_v44  ;;  %v1113_v29 = vadd.f32 %v996_v25, %v836_v37 }
  0xe3   : > { %v2765_v11 = vrot.slane %v2644_v2, 7  ;;  %v2164_v21 = vadd.f32 %v2067_v34, %v1952_v18  ;;  %v1276_v30 = vadd.f32 %v3762_v50, %v1112_v31  ;;  %v1393_v12 = vrot.slane %v4581_v4, 1 }
  0xe4   : > { %v2766_v22 = vrot.slane %v4577_v58, 7  ;;  %v1541_v59 = vmul.f32 %v4398_v27, %v3750_v44  ;;  %v1646_v19 = vrot.slane %v1540_v51, 2  ;;  %v1277_v48 = vadd.f32 %v1229_v56, %v1113_v29 }
  0xe5   : > { %v2440_v24 = vadd.f32 %v2338_v5, %v2164_v21  ;;  %v1488_v41 = vadd.f32 %v1392_v8, %v1276_v30  ;;  %v1882_v16 = vmul.f32 %v4548_v33, %v3759_v49  ;;  %v1394_v34 = vsel %vm723_vm0, %v1392_v8, %v1393_v12 }
  0xe6   : > { %v2767_v32 = vsel %vm2704_vm2, %v2765_v11, %v2766_v22  ;;  %v1647_v63 = vrot.slane %v1541_v59, 2  ;;  %v1976_v36 = vmul.f32 %v4548_v33, %v3782_v1  ;;  %v1489_v62 = vadd.f32 %v1394_v34, %v1277_v48  ;;  %v3409_v59 = vld [vmem:[%s3716_s23 + $0x70] sm:$0xff]  }
  0xe7   : > { %3527 = vmatprep.mubr.f32.mxu1 %v2767_v32  ;;  %v2495_v28 = vmul.f32 %v4329_v10, %v2440_v24  ;;  %v1764_v7 = vadd.f32 %v1646_v19, %v1488_v41  ;;  %v4599_v5 = vmul.f32 %v4550_v15, %v3782_v1  ;;  %v2193_v25 = vmul.f32 %v4548_v33, %v3785_v3 }
  0xe8   : > { %v1648_v56 = vsel %vm968_vm1, %v1646_v19, %v1647_v63  ;;  %v2045_v57 = vrot.slane %v1976_v36, 1  ;;  %v2194_v52 = vmul.f32 %v4550_v15, %v3785_v3  ;;  %v576_v8 = vmul.f32 %v4236_v35, %v3739_v38 }
  0xe9   : > { %v2550_v2 = vadd.f32 %v4377_v26, %v2495_v28  ;;  %v1765_v18 = vadd.f32 %v1648_v56, %v1489_v62  ;;  %v1929_v37 = vadd.f32 %v3777_v60, %v1764_v7  ;;  %v2046_v31 = vrot.slane %v4599_v5, 1 }
  0xea   : > { %v2299_v58 = vrot.slane %v2193_v25, 2  ;;  %v2300_v4 = vrot.slane %v2194_v52, 2  ;;  %v998_v51 = vsel %vm968_vm1, %v995_v17, %v3770_v55  ;;  %v837_v24 = vadd.f32 %v740_v23, %v576_v8 }
  0xeb   : > { %v2598_v11 = vmax.f32 %v2550_v2, 0.0  ;;  %v1930_v21 = vadd.f32 %v1882_v16, %v1765_v18  ;;  %v2047_v29 = vsel %vm723_vm0, %v2045_v57, %v2046_v31  ;;  %v2141_v30 = vadd.f32 %v2045_v57, %v1929_v37 }
  0xec   : > { %v2301_v19 = vsel %vm968_vm1, %v2299_v58, %v2300_v4  ;;  %v1230_v48 = vmul.f32 %v4398_v27, %v3746_v42  ;;  %v1650_v41 = vsel %vm968_vm1, %v1647_v63, %v3804_v13  ;;  %v1883_v17 = vmul.f32 %v4550_v15, %v3759_v49 }
  0xed   : > { %v2646_v32 = vmin.f32 %v2598_v11, 6.0  ;;  %v2142_v35 = vadd.f32 %v2047_v29, %v1930_v21  ;;  %v2417_v34 = vadd.f32 %v2299_v58, %v2141_v30  ;;  %v1114_v16 = vadd.f32 %v998_v51, %v837_v24 }
  0xee   : > { %v2303_v36 = vsel %vm968_vm1, %v2300_v4, %v3823_v53  ;;  %v4624_v28 = vunpack.c.l.bf16 %v3409_v59  ;;  %v4626_v62 = vunpack.c.h.bf16 %v3409_v59  ;;  %v599_v63 = vmul.f32 %v4310_v14, %v3739_v38 }
  0xef   : > { %v2768_v23 = vrot.slane %v2646_v32, 7  ;;  %v2418_v7 = vadd.f32 %v2301_v19, %v2142_v35  ;;  %v2472_v5 = vmul.f32 %v4329_v10, %v2417_v34  ;;  %v1278_v56 = vadd.f32 %v1230_v48, %v1114_v16 }
  0xf0   : > { %v685_v57 = vmul.f32 %v4310_v14, %v3741_v39  ;;  %v4635_v25 = vmul.f32 %v4312_v0, %v3741_v39  ;;  %v911_v52 = vmul.f32 %v4310_v14, %v3743_v40  ;;  %v912_v58 = vmul.f32 %v4312_v0, %v3743_v40 }
  0xf1   : > { %v2769_v2 = vsel %vm2704_vm2, %v2766_v22, %v2768_v23  ;;  %v2473_v18 = vmul.f32 %v4329_v10, %v2418_v7  ;;  %v2527_v37 = vadd.f32 %v4377_v26, %v2472_v5  ;;  %v1490_v4 = vadd.f32 %v1393_v12, %v1278_v56 }
  0xf2   : > { %3528 = vmatmul.mubr.f32.gmra.mrb[8].mxu1 %v2769_v2  ;;  %v763_v8 = vrot.slane %v685_v57, 1  ;;  %v764_v51 = vrot.slane %v4635_v25, 1  ;;  %v1034_v11 = vrot.slane %v911_v52, 2  ;;  %v1035_v30 = vrot.slane %v912_v58, 2 }
  0xf3   : > { %v2528_v21 = vadd.f32 %v4377_v26, %v2473_v18  ;;  %v2575_v29 = vmax.f32 %v2527_v37, 0.0  ;;  %v1253_v14 = vmul.f32 %v4472_v61, %v3746_v42  ;;  %v1766_v22 = vadd.f32 %v1650_v41, %v1490_v4 }
  0xf4   : > { %v765_v59 = vsel %vm723_vm0, %v763_v8, %v764_v51  ;;  %v859_v19 = vadd.f32 %v763_v8, %v3755_v46  ;;  %v1339_v24 = vmul.f32 %v4472_v61, %v3748_v43  ;;  %v1036_v35 = vsel %vm968_vm1, %v1034_v11, %v1035_v30 }
  0xf5   : > { %v2576_v12 = vmax.f32 %v2528_v21, 0.0  ;;  %v2623_v48 = vmin.f32 %v2575_v29, 6.0  ;;  %v860_v32 = vadd.f32 %v765_v59, %v599_v63  ;;  %v1931_v34 = vadd.f32 %v1883_v17, %v1766_v22 }
  0xf6   : > { %v1136_v16 = vadd.f32 %v1034_v11, %v859_v19  ;;  %v4655_v23 = vmul.f32 %v4474_v20, %v3748_v43  ;;  %v1416_v7 = vrot.slane %v1339_v24, 1  ;;  %v1564_v57 = vmul.f32 %v4472_v61, %v3750_v44 }
  0xf7   : > { %v4657_v41 = vmin.f32 %v2576_v12, 6.0  ;;  %v2730_v5 = vrot.slane %v2623_v48, 7  ;;  %v1137_v56 = vadd.f32 %v1036_v35, %v860_v32  ;;  %v2143_v25 = vadd.f32 %v2046_v31, %v1931_v34 }
  0xf8   : > { %v1300_v52 = vadd.f32 %v3762_v50, %v1136_v16  ;;  %v1417_v63 = vrot.slane %v4655_v23, 1  ;;  %v1565_v17 = vmul.f32 %v4474_v20, %v3750_v44  ;;  %v1686_v37 = vrot.slane %v1564_v57, 2 }
  0xf9   : > { %v2731_v2 = vrot.slane %v4657_v41, 7  ;;  %v1301_v18 = vadd.f32 %v1253_v14, %v1137_v56  ;;  %v1906_v58 = vmul.f32 %v4624_v28, %v3759_v49  ;;  %v2419_v4 = vadd.f32 %v2303_v36, %v2143_v25 }
  0xfa   : > { %v1418_v8 = vsel %vm723_vm0, %v1416_v7, %v1417_v63  ;;  %v1512_v11 = vadd.f32 %v1416_v7, %v1300_v52  ;;  %v1687_v21 = vrot.slane %v1565_v17, 2  ;;  %v1992_v22 = vmul.f32 %v4624_v28, %v3782_v1 }
  0xfb   : > { %v2732_v31 = vsel %vm2704_vm2, %v2730_v5, %v2731_v2  ;;  %v1513_v29 = vadd.f32 %v1418_v8, %v1301_v18  ;;  %v4674_v59 = vmul.f32 %v4626_v62, %v3782_v1  ;;  %v2474_v14 = vmul.f32 %v4329_v10, %v2419_v4 }
  0xfc   : > { %3506 = vmatprep.mubr.f32.mxu0 %v2732_v31  ;;  %v1688_v19 = vsel %vm968_vm1, %v1686_v37, %v1687_v21  ;;  %v1788_v36 = vadd.f32 %v1686_v37, %v1512_v11  ;;  %v2217_v24 = vmul.f32 %v4624_v28, %v3785_v3  ;;  %v2069_v48 = vrot.slane %v1992_v22, 1 }
  0xfd   : > { %v1789_v12 = vadd.f32 %v1688_v19, %v1513_v29  ;;  %v2070_v32 = vrot.slane %v4674_v59, 1  ;;  %v2218_v35 = vmul.f32 %v4626_v62, %v3785_v3  ;;  %v2529_v34 = vadd.f32 %v4377_v26, %v2474_v14 }
  0xfe   : > { %v1953_v16 = vadd.f32 %v3777_v60, %v1788_v36  ;;  %v2339_v23 = vrot.slane %v2217_v24, 2  ;;  %v600_v7 = vmul.f32 %v4312_v0, %v3739_v38  ;;  %v1038_v57 = vsel %vm968_vm1, %v1035_v30, %v3770_v55 }
  0xff   : > { %v1954_v41 = vadd.f32 %v1906_v58, %v1789_v12  ;;  %v2071_v5 = vsel %vm723_vm0, %v2069_v48, %v2070_v32  ;;  %v2340_v56 = vrot.slane %v2218_v35, 2  ;;  %v2577_v25 = vmax.f32 %v2529_v34, 0.0 }
 0x100   : > { %v2165_v52 = vadd.f32 %v2069_v48, %v1953_v16  ;;  %v861_v17 = vadd.f32 %v764_v51, %v600_v7  ;;  %v1254_v18 = vmul.f32 %v4474_v20, %v3746_v42  ;;  %v1690_v8 = vsel %vm968_vm1, %v1687_v21, %v3804_v13 }
 0x101   : > { %v2166_v37 = vadd.f32 %v2071_v5, %v1954_v41  ;;  %v2341_v4 = vsel %vm968_vm1, %v2339_v23, %v2340_v56  ;;  %v1907_v0 = vmul.f32 %v4626_v62, %v3759_v49  ;;  %v2625_v58 = vmin.f32 %v2577_v25, 6.0 }
 0x102   : > { %v2441_v11 = vadd.f32 %v2339_v23, %v2165_v52  ;;  %v1138_v31 = vadd.f32 %v1038_v57, %v861_v17  ;;  %v2343_v30 = vsel %vm968_vm1, %v2340_v56, %v3823_v53  ;;  %v578_v51 = vmul.f32 %v4396_v6, %v3739_v38 }
 0x103   : > { %v2442_v29 = vadd.f32 %v2341_v4, %v2166_v37  ;;  %v671_v22 = vmul.f32 %v4396_v6, %v3741_v39  ;;  %v4705_v59 = vmul.f32 %v4398_v27, %v3741_v39  ;;  %v2733_v21 = vrot.slane %v2625_v58, 7 }
 0x104   : > { %v2496_v14 = vmul.f32 %v4329_v10, %v2441_v11  ;;  %v1302_v19 = vadd.f32 %v1254_v18, %v1138_v31  ;;  %v890_v36 = vmul.f32 %v4396_v6, %v3743_v40  ;;  %v891_v35 = vmul.f32 %v4398_v27, %v3743_v40 }
 0x105   : > { %v2497_v24 = vmul.f32 %v4329_v10, %v2442_v29  ;;  %v742_v12 = vrot.slane %v671_v22, 1  ;;  %v743_v48 = vrot.slane %v4705_v59, 1  ;;  %v2734_v34 = vsel %vm2704_vm2, %v2731_v2, %v2733_v21 }
 0x106   : > { %v2551_v16 = vadd.f32 %v4377_v26, %v2496_v14  ;;  %v1514_v23 = vadd.f32 %v1417_v63, %v1302_v19  ;;  %v999_v7 = vrot.slane %v890_v36, 2  ;;  %3507 = vmatmul.mubr.f32.gmra.mrb[10].mxu0 %v2734_v34  ;;  %v1000_v56 = vrot.slane %v891_v35, 2 }
 0x107   : > { %v2552_v41 = vadd.f32 %v4377_v26, %v2497_v24  ;;  %v744_v5 = vsel %vm723_vm0, %v742_v12, %v743_v48  ;;  %v838_v6 = vadd.f32 %v742_v12, %v3755_v46  ;;  %v4719_v57 = vpop.f32.mrb[0].mxu0  ;;  %v1232_v2 = vmul.f32 %v4548_v33, %v3746_v42 }
 0x108   : > { %v2599_v25 = vmax.f32 %v2551_v16, 0.0  ;;  %v1790_v52 = vadd.f32 %v1690_v8, %v1514_v23  ;;  %v839_v17 = vadd.f32 %v744_v5, %v578_v51  ;;  %v4723_v18 = vpop.f32.mrb[1].mxu0  ;;  %v1001_v37 = vsel %vm968_vm1, %v999_v7, %v1000_v56 }
 0x109   : > { %v2600_v63 = vmax.f32 %v2552_v41, 0.0  ;;  %v1115_v4 = vadd.f32 %v999_v7, %v838_v6  ;;  %v1325_v58 = vmul.f32 %v4548_v33, %v3748_v43  ;;  %v1326_v22 = vmul.f32 %v4550_v15, %v3748_v43 }
 0x10a   : > { %v2647_v11 = vmin.f32 %v2599_v25, 6.0  ;;  %v1955_v31 = vadd.f32 %v1907_v0, %v1790_v52  ;;  %v1116_v29 = vadd.f32 %v1001_v37, %v839_v17  ;;  %v1543_v21 = vmul.f32 %v4548_v33, %v3750_v44 }
 0x10b   : > { %v4730_v8 = vmin.f32 %v2600_v63, 6.0  ;;  %v1279_v51 = vadd.f32 %v3762_v50, %v1115_v4  ;;  %v1395_v59 = vrot.slane %v1325_v58, 1  ;;  %v1396_v24 = vrot.slane %v1326_v22, 1 }
 0x10c   : > { %v2770_v14 = vrot.slane %v2647_v11, 7  ;;  %v2167_v19 = vadd.f32 %v2070_v32, %v1955_v31  ;;  %v1280_v36 = vadd.f32 %v1232_v2, %v1116_v29  ;;  %v1544_v0 = vmul.f32 %v4550_v15, %v3750_v44 }
 0x10d   : > { %v2771_v12 = vrot.slane %v4730_v8, 7  ;;  %v1491_v35 = vadd.f32 %v1395_v59, %v1279_v51  ;;  %v1651_v34 = vrot.slane %v1543_v21, 2  ;;  %v1397_v23 = vsel %vm723_vm0, %v1395_v59, %v1396_v24 }
 0x10e   : > { %v2443_v16 = vadd.f32 %v2343_v30, %v2167_v19  ;;  %v1885_v7 = vmul.f32 %v3752_v45, %v3759_v49  ;;  %v1978_v41 = vmul.f32 %v3752_v45, %v3782_v1  ;;  %v1492_v5 = vadd.f32 %v1397_v23, %v1280_v36 }
 0x10f   : > { %v2772_v32 = vsel %vm2704_vm2, %v2770_v14, %v2771_v12  ;;  %v1652_v6 = vrot.slane %v1544_v0, 2  ;;  %v1767_v25 = vadd.f32 %v1651_v34, %v1491_v35  ;;  %v4747_v17 = vmul.f32 %v3794_v9, %v3782_v1 }
 0x110   : > { %3530 = vmatprep.mubr.f32.mxu1 %v2772_v32  ;;  %v2498_v52 = vmul.f32 %v4329_v10, %v2443_v16  ;;  %v2048_v30 = vrot.slane %v1978_v41, 1  ;;  %v2196_v2 = vmul.f32 %v3752_v45, %v3785_v3  ;;  %v2197_v4 = vmul.f32 %v3794_v9, %v3785_v3 }
 0x111   : > { %v1653_v63 = vsel %vm968_vm1, %v1651_v34, %v1652_v6  ;;  %v1932_v37 = vadd.f32 %v3777_v60, %v1767_v25  ;;  %v579_v58 = vmul.f32 %v4398_v27, %v3739_v38  ;;  %v2049_v29 = vrot.slane %v4747_v17, 1  ;;  %v3410_v27 = vld [vmem:[%s3716_s23 + $0x78] sm:$0xff]  }
 0x112   : > { %v2553_v11 = vadd.f32 %v4377_v26, %v2498_v52  ;;  %v1768_v31 = vadd.f32 %v1653_v63, %v1492_v5  ;;  %v2304_v22 = vrot.slane %v2196_v2, 2  ;;  %v2305_v51 = vrot.slane %v2197_v4, 2 }
 0x113   : > { %v2144_v8 = vadd.f32 %v2048_v30, %v1932_v37  ;;  %v840_v59 = vadd.f32 %v743_v48, %v579_v58  ;;  %v1003_v21 = vsel %vm968_vm1, %v1000_v56, %v3770_v55  ;;  %v2050_v36 = vsel %vm723_vm0, %v2048_v30, %v2049_v29 }
 0x114   : > { %v2601_v14 = vmax.f32 %v2553_v11, 0.0  ;;  %v1933_v19 = vadd.f32 %v1885_v7, %v1768_v31  ;;  %v1233_v35 = vmul.f32 %v4550_v15, %v3746_v42  ;;  %v2306_v0 = vsel %vm968_vm1, %v2304_v22, %v2305_v51 }
 0x115   : > { %v2420_v34 = vadd.f32 %v2304_v22, %v2144_v8  ;;  %v1117_v16 = vadd.f32 %v1003_v21, %v840_v59  ;;  %v1655_v23 = vsel %vm968_vm1, %v1652_v6, %v3804_v13  ;;  %v1886_v56 = vmul.f32 %v3794_v9, %v3759_v49 }
 0x116   : > { %v2649_v41 = vmin.f32 %v2601_v14, 6.0  ;;  %v2145_v48 = vadd.f32 %v2050_v36, %v1933_v19  ;;  %v2308_v7 = vsel %vm968_vm1, %v2305_v51, %v3823_v53  ;;  %v4773_v25 = vunpack.c.l.bf16 %v3410_v27 }
 0x117   : > { %v2475_v32 = vmul.f32 %v4329_v10, %v2420_v34  ;;  %v1281_v5 = vadd.f32 %v1233_v35, %v1117_v16  ;;  %v4775_v52 = vunpack.c.h.bf16 %v3410_v27  ;;  %v602_v6 = vmul.f32 %v4472_v61, %v3739_v38 }
 0x118   : > { %v2773_v17 = vrot.slane %v2649_v41, 7  ;;  %v2421_v30 = vadd.f32 %v2306_v0, %v2145_v48  ;;  %v687_v2 = vmul.f32 %v4472_v61, %v3741_v39  ;;  %v4784_v4 = vmul.f32 %v4474_v20, %v3741_v39 }
 0x119   : > { %v2530_v63 = vadd.f32 %v4377_v26, %v2475_v32  ;;  %v1493_v37 = vadd.f32 %v1396_v24, %v1281_v5  ;;  %v914_v58 = vmul.f32 %v4472_v61, %v3743_v40  ;;  %v915_v8 = vmul.f32 %v4474_v20, %v3743_v40 }
 0x11a   : > { %v2774_v11 = vsel %vm2704_vm2, %v2771_v12, %v2773_v17  ;;  %v2476_v31 = vmul.f32 %v4329_v10, %v2421_v30  ;;  %v766_v22 = vrot.slane %v687_v2, 1  ;;  %v767_v24 = vrot.slane %v4784_v4, 1 }
 0x11b   : > { %3531 = vmatmul.mubr.f32.gmra.mrb[10].mxu1 %v2774_v11  ;;  %v2578_v51 = vmax.f32 %v2530_v63, 0.0  ;;  %v1769_v59 = vadd.f32 %v1655_v23, %v1493_v37  ;;  %v1039_v21 = vrot.slane %v914_v58, 2  ;;  %v1040_v36 = vrot.slane %v915_v8, 2 }
 0x11c   : > { %v2531_v14 = vadd.f32 %v4377_v26, %v2476_v31  ;;  %v862_v19 = vadd.f32 %v766_v22, %v3755_v46  ;;  %v1256_v61 = vmul.f32 %v4624_v28, %v3746_v42  ;;  %v768_v35 = vsel %vm723_vm0, %v766_v22, %v767_v24  ;;  %v4816_v22 = vld [vmem:[%s5180_s2] ss:$0 sm:$0xff] }
 0x11d   : > { %v2626_v12 = vmin.f32 %v2578_v51, 6.0  ;;  %v1934_v10 = vadd.f32 %v1886_v56, %v1769_v59  ;;  %v1341_v27 = vmul.f32 %v4624_v28, %v3748_v43  ;;  %v863_v34 = vadd.f32 %v768_v35, %v602_v6 }
 0x11e   : > { %v2579_v0 = vmax.f32 %v2531_v14, 0.0  ;;  %v1041_v16 = vsel %vm968_vm1, %v1039_v21, %v1040_v36  ;;  %v1139_v23 = vadd.f32 %v1039_v21, %v862_v19  ;;  %v4803_v32 = vmul.f32 %v4626_v62, %v3748_v43 }
 0x11f   : > { %v2735_v41 = vrot.slane %v2626_v12, 7  ;;  %v2146_v48 = vadd.f32 %v2049_v29, %v1934_v10  ;;  %v1419_v5 = vrot.slane %v1341_v27, 1  ;;  %v1140_v30 = vadd.f32 %v1041_v16, %v863_v34 }
 0x120   : > { %v2627_v17 = vmin.f32 %v2579_v0, 6.0  ;;  %v1303_v56 = vadd.f32 %v3762_v50, %v1139_v23  ;;  %v1567_v2 = vmul.f32 %v4624_v28, %v3750_v44  ;;  %v1420_v6 = vrot.slane %v4803_v32, 1 }
 0x121   : > { %v2422_v63 = vadd.f32 %v2308_v7, %v2146_v48  ;;  %v1568_v37 = vmul.f32 %v4626_v62, %v3750_v44  ;;  %v1909_v29 = vmul.f32 %v4773_v25, %v3759_v49  ;;  %v1304_v58 = vadd.f32 %v1256_v61, %v1140_v30 }
 0x122   : > { %v2736_v4 = vrot.slane %v2627_v17, 7  ;;  %v1515_v11 = vadd.f32 %v1419_v5, %v1303_v56  ;;  %v1691_v31 = vrot.slane %v1567_v2, 2  ;;  %v1421_v7 = vsel %vm723_vm0, %v1419_v5, %v1420_v6 }
 0x123   : > { %v2477_v8 = vmul.f32 %v4816_v22, %v2422_v63  ;;  %v1692_v51 = vrot.slane %v1568_v37, 2  ;;  %v1994_v59 = vmul.f32 %v4773_v25, %v3782_v1  ;;  %v4822_v21 = vpop.f32.mrb[0].mxu1  ;;  %v1516_v19 = vadd.f32 %v1421_v7, %v1304_v58 }
 0x124   : > { %v2737_v14 = vsel %vm2704_vm2, %v2735_v41, %v2736_v4  ;;  %v1791_v61 = vadd.f32 %v1691_v31, %v1515_v11  ;;  %v4827_v12 = vmul.f32 %v4775_v52, %v3782_v1  ;;  %v4829_v10 = vpop.f32.mrb[1].mxu1  ;;  %v2220_v34 = vmul.f32 %v4773_v25, %v3785_v3 }
 0x125   : > { %3509 = vmatprep.mubr.f32.mxu0 %v2737_v14  ;;  %v2532_v35 = vadd.f32 %v4377_v26, %v2477_v8  ;;  %v1693_v27 = vsel %vm968_vm1, %v1691_v31, %v1692_v51  ;;  %v2072_v0 = vrot.slane %v1994_v59, 1  ;;  %v2221_v48 = vmul.f32 %v4775_v52, %v3785_v3 }
 0x126   : > { %v1792_v16 = vadd.f32 %v1693_v27, %v1516_v19  ;;  %v1956_v23 = vadd.f32 %v3777_v60, %v1791_v61  ;;  %v2073_v41 = vrot.slane %v4827_v12, 1  ;;  %v2344_v5 = vrot.slane %v2220_v34, 2 }
 0x127   : > { %v2580_v32 = vmax.f32 %v2532_v35, 0.0  ;;  %v603_v17 = vmul.f32 %v4474_v20, %v3739_v38  ;;  %v1043_v26 = vsel %vm968_vm1, %v1040_v36, %v3770_v55  ;;  %v2345_v63 = vrot.slane %v2221_v48, 2 }
 0x128   : > { %v1957_v30 = vadd.f32 %v1909_v29, %v1792_v16  ;;  %v2074_v56 = vsel %vm723_vm0, %v2072_v0, %v2073_v41  ;;  %v2168_v2 = vadd.f32 %v2072_v0, %v1956_v23  ;;  %v1257_v11 = vmul.f32 %v4626_v62, %v3746_v42  ;;  %v4873_v23 = vld [vmem:[%s5181_s3] ss:$0 sm:$0xff] }
 0x129   : > { %v2628_v37 = vmin.f32 %v2580_v32, 6.0  ;;  %v864_v58 = vadd.f32 %v767_v24, %v603_v17  ;;  %v1695_v31 = vsel %vm968_vm1, %v1692_v51, %v3804_v13  ;;  %v2346_v7 = vsel %vm968_vm1, %v2344_v5, %v2345_v63 }
 0x12a   : > { %v2169_v8 = vadd.f32 %v2074_v56, %v1957_v30  ;;  %v2444_v20 = vadd.f32 %v2344_v5, %v2168_v2  ;;  %v1910_v36 = vmul.f32 %v4775_v52, %v3759_v49  ;;  %v2348_v14 = vsel %vm968_vm1, %v2345_v63, %v3823_v53 }
 0x12b   : > { %v2738_v29 = vrot.slane %v2628_v37, 7  ;;  %v1141_v59 = vadd.f32 %v1043_v26, %v864_v58  ;;  %v581_v24 = vmul.f32 %v4548_v33, %v3739_v38  ;;  %v673_v51 = vmul.f32 %v4548_v33, %v3741_v39 }
 0x12c   : > { %v2445_v19 = vadd.f32 %v2346_v7, %v2169_v8  ;;  %v2499_v61 = vmul.f32 %v4816_v22, %v2444_v20  ;;  %v4860_v12 = vmul.f32 %v4550_v15, %v3741_v39  ;;  %v893_v0 = vmul.f32 %v4548_v33, %v3743_v40 }
 0x12d   : > { %v2739_v35 = vsel %vm2704_vm2, %v2736_v4, %v2738_v29  ;;  %v1305_v27 = vadd.f32 %v1257_v11, %v1141_v59  ;;  %v4867_v34 = vmul.f32 %v4550_v15, %v3743_v40  ;;  %v745_v32 = vrot.slane %v673_v51, 1 }
 0x12e   : > { %3510 = vmatmul.mubr.f32.gmra.mrb[12].mxu0 %v2739_v35  ;;  %v2500_v16 = vmul.f32 %v4816_v22, %v2445_v19  ;;  %v2554_v48 = vadd.f32 %v4873_v23, %v2499_v61  ;;  %v746_v4 = vrot.slane %v4860_v12, 1  ;;  %v1004_v17 = vrot.slane %v893_v0, 2 }
 0x12f   : > { %v1517_v5 = vadd.f32 %v1420_v6, %v1305_v27  ;;  %v1005_v33 = vrot.slane %v4867_v34, 2  ;;  %v1235_v26 = vmul.f32 %v3752_v45, %v3746_v42  ;;  %v841_v63 = vadd.f32 %v745_v32, %v3755_v46 }
 0x130   : > { %v2555_v30 = vadd.f32 %v4873_v23, %v2500_v16  ;;  %v2602_v56 = vmax.f32 %v2554_v48, 0.0  ;;  %v747_v2 = vsel %vm723_vm0, %v745_v32, %v746_v4  ;;  %v1327_v6 = vmul.f32 %v3752_v45, %v3748_v43 }
 0x131   : > { %v1793_v37 = vadd.f32 %v1695_v31, %v1517_v5  ;;  %v842_v58 = vadd.f32 %v747_v2, %v581_v24  ;;  %v1006_v11 = vsel %vm968_vm1, %v1004_v17, %v1005_v33  ;;  %v1118_v20 = vadd.f32 %v1004_v17, %v841_v63 }
 0x132   : > { %v2603_v8 = vmax.f32 %v2555_v30, 0.0  ;;  %v2650_v7 = vmin.f32 %v2602_v56, 6.0  ;;  %v4890_v29 = vmul.f32 %v3794_v9, %v3748_v43  ;;  %v1398_v61 = vrot.slane %v1327_v6, 1 }
 0x133   : > { %v1958_v59 = vadd.f32 %v1910_v36, %v1793_v37  ;;  %v1119_v19 = vadd.f32 %v1006_v11, %v842_v58  ;;  %v1546_v51 = vmul.f32 %v3752_v45, %v3750_v44  ;;  %v1282_v35 = vadd.f32 %v3762_v50, %v1118_v20 }
 0x134   : > { %v4894_v31 = vmin.f32 %v2603_v8, 6.0  ;;  %v2775_v24 = vrot.slane %v2650_v7, 7  ;;  %v1399_v27 = vrot.slane %v4890_v29, 1  ;;  %v1547_v16 = vmul.f32 %v3794_v9, %v3750_v44 }
 0x135   : > { %v2170_v0 = vadd.f32 %v2073_v41, %v1958_v59  ;;  %v1283_v34 = vadd.f32 %v1235_v26, %v1119_v19  ;;  %v1656_v48 = vrot.slane %v1546_v51, 2  ;;  %v1494_v5 = vadd.f32 %v1398_v61, %v1282_v35 }
 0x136   : > { %v2776_v36 = vrot.slane %v4894_v31, 7  ;;  %v1400_v32 = vsel %vm723_vm0, %v1398_v61, %v1399_v27  ;;  %v1888_v45 = vmul.f32 %v3820_v47, %v3759_v49  ;;  %v4904_v17 = vpop.f32.mrb[2].mxu0  ;;  %v1657_v2 = vrot.slane %v1547_v16, 2 }
 0x137   : > { %v2446_v30 = vadd.f32 %v2348_v14, %v2170_v0  ;;  %v1495_v56 = vadd.f32 %v1400_v32, %v1283_v34  ;;  %v1980_v41 = vmul.f32 %v3820_v47, %v3782_v1  ;;  %v4908_v26 = vpop.f32.mrb[3].mxu0  ;;  %v1770_v37 = vadd.f32 %v1656_v48, %v1494_v5 }
 0x138   : > { %v2777_v63 = vsel %vm2704_vm2, %v2775_v24, %v2776_v36  ;;  %v4913_v58 = vmul.f32 %v3825_v54, %v3782_v1  ;;  %v2199_v11 = vmul.f32 %v3820_v47, %v3785_v3  ;;  %v1658_v6 = vsel %vm968_vm1, %v1656_v48, %v1657_v2 }
 0x139   : > { %3533 = vmatprep.mubr.f32.mxu1 %v2777_v63  ;;  %v2501_v14 = vmul.f32 %v4816_v22, %v2446_v30  ;;  %v2051_v8 = vrot.slane %v1980_v41, 1  ;;  %v2200_v7 = vmul.f32 %v3825_v54, %v3785_v3  ;;  %v1771_v20 = vadd.f32 %v1658_v6, %v1495_v56 }
 0x13a   : > { %v1935_v29 = vadd.f32 %v3777_v60, %v1770_v37  ;;  %v2052_v59 = vrot.slane %v4913_v58, 1  ;;  %v2309_v19 = vrot.slane %v2199_v11, 2  ;;  %v582_v47 = vmul.f32 %v4550_v15, %v3739_v38 }
 0x13b   : > { %v2556_v61 = vadd.f32 %v4873_v23, %v2501_v14  ;;  %v2310_v51 = vrot.slane %v2200_v7, 2  ;;  %v1008_v31 = vsel %vm968_vm1, %v1005_v33, %v3770_v55  ;;  %v1936_v24 = vadd.f32 %v1888_v45, %v1771_v20 }
 0x13c   : > { %v2053_v35 = vsel %vm723_vm0, %v2051_v8, %v2052_v59  ;;  %v2147_v0 = vadd.f32 %v2051_v8, %v1935_v29  ;;  %v1236_v3 = vmul.f32 %v3794_v9, %v3746_v42  ;;  %v843_v48 = vadd.f32 %v746_v4, %v582_v47 }
 0x13d   : > { %v2604_v34 = vmax.f32 %v2556_v61, 0.0  ;;  %v2311_v16 = vsel %vm968_vm1, %v2309_v19, %v2310_v51  ;;  %v1660_v32 = vsel %vm968_vm1, %v1657_v2, %v3804_v13  ;;  %v2148_v15 = vadd.f32 %v2053_v35, %v1936_v24 }
 0x13e   : > { %v2423_v5 = vadd.f32 %v2309_v19, %v2147_v0  ;;  %v1889_v33 = vmul.f32 %v3825_v54, %v3759_v49  ;;  %v2313_v45 = vsel %vm968_vm1, %v2310_v51, %v3823_v53  ;;  %v1120_v56 = vadd.f32 %v1008_v31, %v843_v48 }
 0x13f   : > { %v2652_v30 = vmin.f32 %v2604_v34, 6.0  ;;  %v605_v9 = vmul.f32 %v4624_v28, %v3739_v38  ;;  %v689_v12 = vmul.f32 %v4624_v28, %v3741_v39  ;;  %v2424_v4 = vadd.f32 %v2311_v16, %v2148_v15 }
 0x140   : > { %v2478_v41 = vmul.f32 %v4816_v22, %v2423_v5  ;;  %v690_v2 = vmul.f32 %v4626_v62, %v3741_v39  ;;  %v917_v49 = vmul.f32 %v4624_v28, %v3743_v40  ;;  %v1284_v63 = vadd.f32 %v1236_v3, %v1120_v56 }
 0x141   : > { %v2778_v54 = vrot.slane %v2652_v30, 7  ;;  %v769_v37 = vrot.slane %v689_v12, 1  ;;  %v918_v58 = vmul.f32 %v4626_v62, %v3743_v40  ;;  %v2479_v11 = vmul.f32 %v4816_v22, %v2424_v4 }
 0x142   : > { %v2533_v14 = vadd.f32 %v4873_v23, %v2478_v41  ;;  %v770_v6 = vrot.slane %v690_v2, 1  ;;  %v1044_v8 = vrot.slane %v917_v49, 2  ;;  %v1496_v20 = vadd.f32 %v1399_v27, %v1284_v63 }
 0x143   : > { %v2779_v7 = vsel %vm2704_vm2, %v2776_v36, %v2778_v54  ;;  %v865_v39 = vadd.f32 %v769_v37, %v3755_v46  ;;  %v1045_v29 = vrot.slane %v918_v58, 2  ;;  %v2534_v28 = vadd.f32 %v4873_v23, %v2479_v11 }
 0x144   : > { %3534 = vmatmul.mubr.f32.gmra.mrb[12].mxu1 %v2779_v7  ;;  %v2581_v19 = vmax.f32 %v2533_v14, 0.0  ;;  %v771_v61 = vsel %vm723_vm0, %v769_v37, %v770_v6  ;;  %v1259_v40 = vmul.f32 %v4773_v25, %v3746_v42  ;;  %v1772_v51 = vadd.f32 %v1660_v32, %v1496_v20  ;;  %v5008_v14 = vld [vmem:[%s5184_s6] ss:$0 sm:$0xff] }
 0x145   : > { %v866_v47 = vadd.f32 %v771_v61, %v605_v9  ;;  %v1046_v31 = vsel %vm968_vm1, %v1044_v8, %v1045_v29  ;;  %v1142_v24 = vadd.f32 %v1044_v8, %v865_v39  ;;  %v2582_v36 = vmax.f32 %v2534_v28, 0.0  ;;  %v3136_v61 = vld [vmem:[%s4992_s24] sm:$0xff] }
 0x146   : > { %v2629_v27 = vmin.f32 %v2581_v19, 6.0  ;;  %v1343_v46 = vmul.f32 %v4773_v25, %v3748_v43  ;;  %v4964_v35 = vmul.f32 %v4775_v52, %v3748_v43  ;;  %v1937_v0 = vadd.f32 %v1889_v33, %v1772_v51 }
 0x147   : > { %v1143_v3 = vadd.f32 %v1046_v31, %v866_v47  ;;  %v1306_v34 = vadd.f32 %v3762_v50, %v1142_v24  ;;  %v1570_v16 = vmul.f32 %v4773_v25, %v3750_v44  ;;  %v4969_v48 = vmin.f32 %v2582_v36, 6.0  ;;  %v3152_v31 = vld [vmem:[%s4992_s24 + $0x80] sm:$0xff] }
 0x148   : > { %v2740_v32 = vrot.slane %v2629_v27, 7  ;;  %v1422_v15 = vrot.slane %v1343_v46, 1  ;;  %v1423_v5 = vrot.slane %v4964_v35, 1  ;;  %v2149_v30 = vadd.f32 %v2052_v59, %v1937_v0 }
 0x149   : > { %v1307_v56 = vadd.f32 %v1259_v40, %v1143_v3  ;;  %v1571_v43 = vmul.f32 %v4775_v52, %v3750_v44  ;;  %v1696_v33 = vrot.slane %v1570_v16, 2  ;;  %v3520_v9 = vpop.f32.mrb[2].mxu1  ;;  %v2741_v50 = vrot.slane %v4969_v48, 7  ;;  %v4985_v44 = vld [vmem:[%s5183_s5] ss:$0 sm:$0xff]  ;;  %v3153_v40 = vld [vmem:[%s4992_s24 + $0x88] sm:$0xff] }
 0x14a   : > { %v1424_v12 = vsel %vm723_vm0, %v1422_v15, %v1423_v5  ;;  %v1518_v25 = vadd.f32 %v1422_v15, %v1306_v34  ;;  %v1996_v4 = vmul.f32 0.0, %v3782_v1  ;;  %v4978_v41 = vpop.f32.mrb[3].mxu1  ;;  %v2425_v2 = vadd.f32 %v2313_v45, %v2149_v30 }
 0x14b   : > { %v1519_v49 = vadd.f32 %v1424_v12, %v1307_v56  ;;  %v1697_v54 = vrot.slane %v1571_v43, 2  ;;  %v606_v59 = vmul.f32 %v4626_v62, %v3739_v38  ;;  %v2742_v1 = vsel %vm2704_vm2, %v2740_v32, %v2741_v50 }
 0x14c   : > { %v1794_v45 = vadd.f32 %v1696_v33, %v1518_v25  ;;  %v4997_v63 = vrot.slane %v1996_v4, 1  ;;  %v1048_v38 = vsel %vm968_vm1, %v1045_v29, %v3770_v55  ;;  %3512 = vmatprep.mubr.f32.mxu0 %v2742_v1  ;;  %v2480_v62 = vmul.f32 %v4816_v22, %v2425_v2  ;;  %v3138_v2 = vld [vmem:[%s4992_s24 + $0x10] sm:$0xff] }
 0x14d   : > { %v1698_v37 = vsel %vm968_vm1, %v1696_v33, %v1697_v54  ;;  %v867_v58 = vadd.f32 %v770_v6, %v606_v59  ;;  %v1260_v11 = vmul.f32 %v4775_v52, %v3746_v42  ;;  %v1700_v7 = vsel %vm968_vm1, %v1697_v54, %v3804_v13  ;;  %v3137_v42 = vld [vmem:[%s4992_s24 + $0x8] sm:$0xff]  ;;  %v3154_v1 = vld [vmem:[%s4992_s24 + $0x90] sm:$0xff] }
 0x14e   : > { %v1795_v8 = vadd.f32 %v1698_v37, %v1519_v49  ;;  %v1959_v55 = vadd.f32 %v3777_v60, %v1794_v45  ;;  %v3066_v20 = vmul.f32 %v4719_v57, %v4985_v44  ;;  %v2535_v6 = vadd.f32 %v4873_v23, %v2480_v62 }
 0x14f   : > { %v1144_v39 = vadd.f32 %v1048_v38, %v867_v58  ;;  %v3065_v52 = vmul.f32 %v4985_v44, %v4723_v18  ;;  %v3082_v29 = vmul.f32 %v4822_v21, %v4985_v44  ;;  %v3081_v57 = vmul.f32 %v4985_v44, %v4829_v10 }
 0x150   : > { %v1960_v28 = vadd.f32 %v3777_v60, %v1795_v8  ;;  %v2171_v19 = vadd.f32 %v4997_v63, %v1959_v55  ;;  %v3105_v13 = vadd.f32 %v5008_v14, %v3066_v20  ;;  %v2583_v18 = vmax.f32 %v2535_v6, 0.0 }
 0x151   : > { %v1308_v21 = vadd.f32 %v1260_v11, %v1144_v39  ;;  %v3104_v51 = vadd.f32 %v5008_v14, %v3065_v52  ;;  %v3121_v47 = vadd.f32 %v5008_v14, %v3082_v29  ;;  %v3120_v27 = vadd.f32 %v5008_v14, %v3081_v57 }
 0x152   : > { %v2172_v24 = vadd.f32 %v4997_v63, %v1960_v28  ;;  %v2447_v10 = vadd.f32 %v3823_v53, %v2171_v19  ;;  %v3169_v36 = vadd.f32 %v3137_v42, %v3105_v13  ;;  %v2631_v46 = vmin.f32 %v2583_v18, 6.0  ;;  %v3141_v28 = vld [vmem:[%s4992_s24 + $0x28] sm:$0xff] }
 0x153   : > { %v1520_v35 = vadd.f32 %v1423_v5, %v1308_v21  ;;  %v3168_v0 = vadd.f32 %v3136_v61, %v3104_v51  ;;  %v3185_v3 = vadd.f32 %v3153_v40, %v3121_v47  ;;  %v3184_v32 = vadd.f32 %v3152_v31, %v3120_v27  ;;  %v3139_v5 = vld [vmem:[%s4992_s24 + $0x18] sm:$0xff]  ;;  %v3156_v27 = vld [vmem:[%s4992_s24 + $0xa0] sm:$0xff] }
 0x154   : > { %v2448_v34 = vadd.f32 %v3823_v53, %v2172_v24  ;;  %v2502_v16 = vmul.f32 %v4816_v22, %v2447_v10  ;;  %3201 = vst [vmem:[%s5033_s9 + $0x8] sm:$0xff] %v3169_v36  ;;  %v3068_v15 = vmul.f32 %v4904_v17, %v4985_v44  ;;  %v2743_v30 = vrot.slane %v2631_v46, 7  ;;  %v3155_v17 = vld [vmem:[%s4992_s24 + $0x98] sm:$0xff]  ;;  %v3157_v24 = vld [vmem:[%s4992_s24 + $0xa8] sm:$0xff] }
 0x155   : > { %v1796_v56 = vadd.f32 %v1700_v7, %v1520_v35  ;;  %3200 = vst [vmem:[%s5033_s9] sm:$0xff] %v3168_v0  ;;  %3217 = vst [vmem:[%s5033_s9 + $0x88] sm:$0xff] %v3185_v3  ;;  %v3067_v43 = vmul.f32 %v4985_v44, %v4908_v26  ;;  %v3084_v33 = vmul.f32 %v3520_v9, %v4985_v44 }
 0x156   : > { %v2503_v12 = vmul.f32 %v4816_v22, %v2448_v34  ;;  %v2557_v25 = vadd.f32 %v4873_v23, %v2502_v16  ;;  %3216 = vst [vmem:[%s5033_s9 + $0x80] sm:$0xff] %v3184_v32  ;;  %v3107_v4 = vadd.f32 %v5008_v14, %v3068_v15  ;;  %v3083_v49 = vmul.f32 %v4985_v44, %v4978_v41  ;;  %v3143_v32 = vld [vmem:[%s4992_s24 + $0x38] sm:$0xff] }
 0x157   : > { %v2744_v54 = vsel %vm2704_vm2, %v2741_v50, %v2743_v30  ;;  %v1961_v26 = vadd.f32 %v3777_v60, %v1796_v56  ;;  %v3106_v9 = vadd.f32 %v5008_v14, %v3067_v43  ;;  %v3123_v59 = vadd.f32 %v5008_v14, %v3084_v33  ;;  %v3142_v56 = vld [vmem:[%s4992_s24 + $0x30] sm:$0xff] }
 0x158   : > { %3513 = vmatmul.mubr.f32.gmra.mrb[14].mxu0 %v2744_v54  ;;  %v2558_v45 = vadd.f32 %v4873_v23, %v2503_v12  ;;  %v2605_v38 = vmax.f32 %v2557_v25, 0.0  ;;  %v3171_v41 = vadd.f32 %v3139_v5, %v3107_v4  ;;  %v3122_v48 = vadd.f32 %v5008_v14, %v3083_v49  ;;  %v3158_v54 = vld [vmem:[%s4992_s24 + $0xb0] sm:$0xff] }
 0x159   : > { %v2173_v62 = vadd.f32 %v4997_v63, %v1961_v26  ;;  %v3170_v50 = vadd.f32 %v3138_v2, %v3106_v9  ;;  %v3187_v37 = vadd.f32 %v3155_v17, %v3123_v59  ;;  %v3159_v2 = vld [vmem:[%s4992_s24 + $0xb8] sm:$0xff] }
 0x15a   : > { %v2606_v60 = vmax.f32 %v2558_v45, 0.0  ;;  %v2653_v58 = vmin.f32 %v2605_v38, 6.0  ;;  %3203 = vst [vmem:[%s5033_s9 + $0x18] sm:$0xff] %v3171_v41  ;;  %v3186_v11 = vadd.f32 %v3154_v1, %v3122_v48  ;;  %v3145_v41 = vld [vmem:[%s4992_s24 + $0x48] sm:$0xff] }
 0x15b   : > { %v2449_v8 = vadd.f32 %v3823_v53, %v2173_v62  ;;  %3202 = vst [vmem:[%s5033_s9 + $0x10] sm:$0xff] %v3170_v50  ;;  %3219 = vst [vmem:[%s5033_s9 + $0x98] sm:$0xff] %v3187_v37  ;;  %v3144_v50 = vld [vmem:[%s4992_s24 + $0x40] sm:$0xff] }
 0x15c   : > { %v2654_v55 = vmin.f32 %v2606_v60, 6.0  ;;  %v2780_v7 = vrot.slane %v2653_v58, 7  ;;  %3218 = vst [vmem:[%s5033_s9 + $0x90] sm:$0xff] %v3186_v11 }
 0x15d   : > { %v2504_v20 = vmul.f32 %v4816_v22, %v2449_v8  ;;  %v3140_v22 = vld [vmem:[%s4992_s24 + $0x20] sm:$0xff] }
 0x15e   : > { %v2781_v6 = vrot.slane %v2654_v55, 7 }
 0x15f   : > { %v2559_v63 = vadd.f32 %v4873_v23, %v2504_v20  ;;  %v3499_v39 = vpop.f32.mrb[4].mxu0 }
 0x160   : > { %v2782_v42 = vsel %vm2704_vm2, %v2780_v7, %v2781_v6  ;;  %v3070_v52 = vmul.f32 %v3499_v39, %v4985_v44  ;;  %v2919_v29 = vpop.f32.mrb[5].mxu0  ;;  %v3161_v7 = vld [vmem:[%s4992_s24 + $0xc8] sm:$0xff] }
 0x161   : > { %3536 = vmatprep.mubr.f32.mxu1 %v2782_v42  ;;  %v2607_v53 = vmax.f32 %v2559_v63, 0.0  ;;  %v3069_v19 = vmul.f32 %v4985_v44, %v2919_v29  ;;  %v3160_v63 = vld [vmem:[%s4992_s24 + $0xc0] sm:$0xff] }
 0x162   : > { %v3109_v13 = vadd.f32 %v5008_v14, %v3070_v52 }
 0x163   : > { %v2655_v61 = vmin.f32 %v2607_v53, 6.0  ;;  %v3108_v23 = vadd.f32 %v5008_v14, %v3069_v19  ;;  %v3147_v19 = vld [vmem:[%s4992_s24 + $0x58] sm:$0xff] }
 0x164   : > { %v3173_v40 = vadd.f32 %v3141_v28, %v3109_v13 }
 0x165   : > { %v2783_v57 = vrot.slane %v2655_v61, 7  ;;  %v3172_v18 = vadd.f32 %v3140_v22, %v3108_v23  ;;  %v3146_v61 = vld [vmem:[%s4992_s24 + $0x50] sm:$0xff] }
 0x166   : > { %3205 = vst [vmem:[%s5033_s9 + $0x28] sm:$0xff] %v3173_v40 }
 0x167   : > { %v2784_v21 = vsel %vm2704_vm2, %v2781_v6, %v2783_v57  ;;  %3204 = vst [vmem:[%s5033_s9 + $0x20] sm:$0xff] %v3172_v18 }
 0x168   : > { %3537 = vmatmul.mubr.f32.gmra.mrb[14].mxu1 %v2784_v21 }
 0x173   : > { %v3523_v51 = vpop.f32.mrb[4].mxu1 }
 0x174   : > { %v3086_v47 = vmul.f32 %v3523_v51, %v4985_v44  ;;  %v2999_v31 = vpop.f32.mrb[5].mxu1 }
 0x175   : > { %v3085_v10 = vmul.f32 %v4985_v44, %v2999_v31 }
 0x176   : > { %v3125_v36 = vadd.f32 %v5008_v14, %v3086_v47  ;;  %v3163_v47 = vld [vmem:[%s4992_s24 + $0xd8] sm:$0xff] }
 0x177   : > { %v3124_v46 = vadd.f32 %v5008_v14, %v3085_v10  ;;  %v3162_v10 = vld [vmem:[%s4992_s24 + $0xd0] sm:$0xff] }
 0x178   : > { %v3189_v35 = vadd.f32 %v3157_v24, %v3125_v36 }
 0x179   : > { %v3188_v0 = vadd.f32 %v3156_v27, %v3124_v46 }
 0x17a   : > { %3221 = vst [vmem:[%s5033_s9 + $0xa8] sm:$0xff] %v3189_v35 }
 0x17b   : > { %3220 = vst [vmem:[%s5033_s9 + $0xa0] sm:$0xff] %v3188_v0 }
 0x187   : > { %v3502_v3 = vpop.f32.mrb[6].mxu0 }
 0x188   : > { %v3072_v34 = vmul.f32 %v3502_v3, %v4985_v44  ;;  %v2929_v16 = vpop.f32.mrb[7].mxu0 }
 0x189   : > { %v3071_v15 = vmul.f32 %v4985_v44, %v2929_v16 }
 0x18a   : > { %v3111_v30 = vadd.f32 %v5008_v14, %v3072_v34  ;;  %v3149_v34 = vld [vmem:[%s4992_s24 + $0x68] sm:$0xff] }
 0x18b   : > { %v3110_v5 = vadd.f32 %v5008_v14, %v3071_v15  ;;  %v3148_v15 = vld [vmem:[%s4992_s24 + $0x60] sm:$0xff] }
 0x18c   : > { %v3175_v43 = vadd.f32 %v3143_v32, %v3111_v30 }
 0x18d   : > { %v3174_v33 = vadd.f32 %v3142_v56, %v3110_v5 }
 0x18e   : > { %3207 = vst [vmem:[%s5033_s9 + $0x38] sm:$0xff] %v3175_v43 }
 0x18f   : > { %3206 = vst [vmem:[%s5033_s9 + $0x30] sm:$0xff] %v3174_v33 }
 0x19c   : > { %v3526_v12 = vpop.f32.mrb[6].mxu1 }
 0x19d   : > { %v3088_v25 = vmul.f32 %v3526_v12, %v4985_v44  ;;  %v3009_v4 = vpop.f32.mrb[7].mxu1 }
 0x19e   : > { %v3087_v17 = vmul.f32 %v4985_v44, %v3009_v4 }
 0x19f   : > { %v3127_v49 = vadd.f32 %v5008_v14, %v3088_v25  ;;  %v3165_v25 = vld [vmem:[%s4992_s24 + $0xe8] sm:$0xff] }
 0x1a0   : > { %v3126_v26 = vadd.f32 %v5008_v14, %v3087_v17  ;;  %v3164_v17 = vld [vmem:[%s4992_s24 + $0xe0] sm:$0xff] }
 0x1a1   : > { %v3191_v9 = vadd.f32 %v3159_v2, %v3127_v49 }
 0x1a2   : > { %v3190_v59 = vadd.f32 %v3158_v54, %v3126_v26 }
 0x1a3   : > { %3223 = vst [vmem:[%s5033_s9 + $0xb8] sm:$0xff] %v3191_v9 }
 0x1a4   : > { %3222 = vst [vmem:[%s5033_s9 + $0xb0] sm:$0xff] %v3190_v59 }
 0x1b0   : > { %v3505_v1 = vpop.f32.mrb[8].mxu0 }
 0x1b1   : > { %v3074_v45 = vmul.f32 %v3505_v1, %v4985_v44  ;;  %v2939_v38 = vpop.f32.mrb[9].mxu0 }
 0x1b2   : > { %v3073_v48 = vmul.f32 %v4985_v44, %v2939_v38 }
 0x1b3   : > { %v3113_v62 = vadd.f32 %v5008_v14, %v3074_v45  ;;  %v3151_v45 = vld [vmem:[%s4992_s24 + $0x78] sm:$0xff] }
 0x1b4   : > { %v3112_v37 = vadd.f32 %v5008_v14, %v3073_v48  ;;  %v3150_v48 = vld [vmem:[%s4992_s24 + $0x70] sm:$0xff] }
 0x1b5   : > { %v3177_v60 = vadd.f32 %v3145_v41, %v3113_v62 }
 0x1b6   : > { %v3176_v58 = vadd.f32 %v3144_v50, %v3112_v37 }
 0x1b7   : > { %3209 = vst [vmem:[%s5033_s9 + $0x48] sm:$0xff] %v3177_v60 }
 0x1b8   : > { %3208 = vst [vmem:[%s5033_s9 + $0x40] sm:$0xff] %v3176_v58 }
 0x1c5   : > { %v3529_v11 = vpop.f32.mrb[8].mxu1 }
 0x1c6   : > { %v3090_v8 = vmul.f32 %v3529_v11, %v4985_v44  ;;  %v3019_v55 = vpop.f32.mrb[9].mxu1 }
 0x1c7   : > { %v3089_v20 = vmul.f32 %v4985_v44, %v3019_v55 }
 0x1c8   : > { %v3129_v6 = vadd.f32 %v5008_v14, %v3090_v8  ;;  %v3167_v8 = vld [vmem:[%s4992_s24 + $0xf8] sm:$0xff] }
 0x1c9   : > { %v3128_v39 = vadd.f32 %v5008_v14, %v3089_v20  ;;  %v3166_v20 = vld [vmem:[%s4992_s24 + $0xf0] sm:$0xff] }
 0x1ca   : > { %v3193_v42 = vadd.f32 %v3161_v7, %v3129_v6 }
 0x1cb   : > { %v3192_v52 = vadd.f32 %v3160_v63, %v3128_v39 }
 0x1cc   : > { %3225 = vst [vmem:[%s5033_s9 + $0xc8] sm:$0xff] %v3193_v42 }
 0x1cd   : > { %3224 = vst [vmem:[%s5033_s9 + $0xc0] sm:$0xff] %v3192_v52 }
 0x1d9   : > { %v3508_v29 = vpop.f32.mrb[10].mxu0 }
 0x1da   : > { %v3076_v53 = vmul.f32 %v3508_v29, %v4985_v44  ;;  %v2949_v28 = vpop.f32.mrb[11].mxu0 }
 0x1db   : > { %v3075_v13 = vmul.f32 %v4985_v44, %v2949_v28 }
 0x1dc   : > { %v3115_v22 = vadd.f32 %v5008_v14, %v3076_v53 }
 0x1dd   : > { %v3114_v23 = vadd.f32 %v5008_v14, %v3075_v13 }
 0x1de   : > { %v3179_v40 = vadd.f32 %v3147_v19, %v3115_v22 }
 0x1df   : > { %v3178_v57 = vadd.f32 %v3146_v61, %v3114_v23 }
 0x1e0   : > { %3211 = vst [vmem:[%s5033_s9 + $0x58] sm:$0xff] %v3179_v40 }
 0x1e1   : > { %3210 = vst [vmem:[%s5033_s9 + $0x50] sm:$0xff] %v3178_v57 }
 0x1ee   : > { %v3532_v18 = vpop.f32.mrb[10].mxu1 }
 0x1ef   : > { %v3092_v21 = vmul.f32 %v3532_v18, %v4985_v44  ;;  %v3029_v51 = vpop.f32.mrb[11].mxu1 }
 0x1f0   : > { %v3091_v31 = vmul.f32 %v4985_v44, %v3029_v51 }
 0x1f1   : > { %v3131_v24 = vadd.f32 %v5008_v14, %v3092_v21 }
 0x1f2   : > { %v3130_v36 = vadd.f32 %v5008_v14, %v3091_v31 }
 0x1f3   : > { %v3195_v27 = vadd.f32 %v3163_v47, %v3131_v24 }
 0x1f4   : > { %v3194_v46 = vadd.f32 %v3162_v10, %v3130_v36 }
 0x1f5   : > { %3227 = vst [vmem:[%s5033_s9 + $0xd8] sm:$0xff] %v3195_v27 }
 0x1f6   : > { %3226 = vst [vmem:[%s5033_s9 + $0xd0] sm:$0xff] %v3194_v46 }
 0x201   : > { %v3511_v35 = vpop.f32.mrb[12].mxu0 }
 0x202   : > { %v3078_v0 = vmul.f32 %v3511_v35, %v4985_v44  ;;  %v2959_v3 = vpop.f32.mrb[13].mxu0 }
 0x203   : > { %v3077_v16 = vmul.f32 %v4985_v44, %v2959_v3 }
 0x204   : > { %v3117_v32 = vadd.f32 %v5008_v14, %v3078_v0 }
 0x205   : > { %v3116_v30 = vadd.f32 %v5008_v14, %v3077_v16 }
 0x206   : > { %v3181_v56 = vadd.f32 %v3149_v34, %v3117_v32 }
 0x207   : > { %v3180_v5 = vadd.f32 %v3148_v15, %v3116_v30 }
 0x208   : > { %3213 = vst [vmem:[%s5033_s9 + $0x68] sm:$0xff] %v3181_v56 }
 0x209   : > { %3212 = vst [vmem:[%s5033_s9 + $0x60] sm:$0xff] %v3180_v5 }
 0x217   : > { %v3535_v43 = vpop.f32.mrb[12].mxu1 }
 0x218   : > { %v3094_v33 = vmul.f32 %v3535_v43, %v4985_v44  ;;  %v3039_v12 = vpop.f32.mrb[13].mxu1 }
 0x219   : > { %v3093_v4 = vmul.f32 %v4985_v44, %v3039_v12 }
 0x21a   : > { %v3133_v2 = vadd.f32 %v5008_v14, %v3094_v33 }
 0x21b   : > { %v3132_v49 = vadd.f32 %v5008_v14, %v3093_v4 }
 0x21c   : > { %v3197_v54 = vadd.f32 %v3165_v25, %v3133_v2 }
 0x21d   : > { %v3196_v26 = vadd.f32 %v3164_v17, %v3132_v49 }
 0x21e   : > { %3229 = vst [vmem:[%s5033_s9 + $0xe8] sm:$0xff] %v3197_v54 }
 0x21f   : > { %3228 = vst [vmem:[%s5033_s9 + $0xe0] sm:$0xff] %v3196_v26 }
 0x22b   : > { %v3514_v9 = vpop.f32.mrb[14].mxu0 }
 0x22c   : > { %v3080_v59 = vmul.f32 %v3514_v9, %v4985_v44  ;;  %v2969_v1 = vpop.f32.mrb[15].mxu0 }
 0x22d   : > { %v3079_v38 = vmul.f32 %v4985_v44, %v2969_v1 }
 0x22e   : > { %v3119_v41 = vadd.f32 %v5008_v14, %v3080_v59 }
 0x22f   : > { %v3118_v62 = vadd.f32 %v5008_v14, %v3079_v38 }
 0x230   : > { %v3183_v50 = vadd.f32 %v3151_v45, %v3119_v41 }
 0x231   : > { %v3182_v37 = vadd.f32 %v3150_v48, %v3118_v62 }
 0x232   : > { %3215 = vst [vmem:[%s5033_s9 + $0x78] sm:$0xff] %v3183_v50 }
 0x233   : > { %3214 = vst [vmem:[%s5033_s9 + $0x70] sm:$0xff] %v3182_v37 }
 0x23b   : > { %v3538_v60 = vpop.f32.mrb[14].mxu1 }
 0x23c   : > { %v3096_v58 = vmul.f32 %v3538_v60, %v4985_v44  ;;  %v3049_v11 = vpop.f32.mrb[15].mxu1 }
 0x23d   : > { %v3095_v55 = vmul.f32 %v4985_v44, %v3049_v11 }
 0x23e   : > { %v3135_v7 = vadd.f32 %v5008_v14, %v3096_v58 }
 0x23f   : > { %v3134_v6 = vadd.f32 %v5008_v14, %v3095_v55 }
 0x240   : > { %v3199_v63 = vadd.f32 %v3167_v8, %v3135_v7 }
 0x241   : > { %v3198_v39 = vadd.f32 %v3166_v20, %v3134_v6 }
 0x242   : > { %3231 = vst [vmem:[%s5033_s9 + $0xf8] sm:$0xff] %v3199_v63 }
 0x243   : > { %3230 = vst [vmem:[%s5033_s9 + $0xf0] sm:$0xff] %v3198_v39 }
 0x244 PF: > { %s18_s27 = sadd.s32 1, %s3606_s27  }
 0x245   : > { %p15_p4 = scmp.ge.s32.totalorder %s18_s27, 4  }
 0x247   :  { %17 = sbr.rel (!%p15_p4) target bundleno = 1 (0x1), region = 91 }

</bundles_post_ra>
